<compile_context>
chip_gen: v7x
topology: tpu7x:2x2x1
jax: 0.10.0
libtpu: 0.0.40
codegen_flags: <defaults>
</compile_context>

<pallas_src>
import functools

import jax
import jax.numpy as jnp
from jax.experimental import pallas as pl
from jax.experimental.pallas import tpu as pltpu


def _round_up(x, m):
    return ((x + m - 1) // m) * m


@functools.lru_cache(maxsize=None)
def _multi_tensorcore():
    """True on chips with >1 TensorCore (v7x); False otherwise / on failure."""
    try:
        kind = jax.devices()[0].device_kind.lower()
    except Exception:
        return False
    return "v7" in kind


# ---------------------------------------------------------------------------
# Pallas kernel: tiled matmul, f32 accumulator, bias folded into init,
# LeakyReLU(0.3) fused into finalize.
# ---------------------------------------------------------------------------
def _conv_mm_kernel(apply_act, a_ref, w_ref, b_ref, o_ref, acc_ref):
    @pl.when(pl.program_id(2) == 0)
    def _():
        # Bias folded into the accumulator init (saves an epilogue add).
        acc_ref[...] = jnp.broadcast_to(b_ref[...], acc_ref.shape)

    acc_ref[...] += jnp.dot(a_ref[...], w_ref[...],
                            preferred_element_type=jnp.float32)

    @pl.when(pl.program_id(2) == pl.num_programs(2) - 1)
    def _():
        acc = acc_ref[...]
        if apply_act:
            acc = jnp.where(acc > 0, acc, jnp.float32(0.3) * acc)  # LeakyReLU(0.3)
        o_ref[...] = acc.astype(o_ref.dtype)


def _choose_tm(m, split):
    if m >= 512:
        return 256            # >= 2 M-blocks
    if m >= 256:
        return 128
    if split and m >= 128 and (m // 2) % 8 == 0:
        return m // 2         # give the 2nd TensorCore an M block
    return _round_up(m, 8)    # single block, sublane-aligned


def _pick_tile(dim, max_tile, granule=128):
    """Largest multiple of `granule` that divides `dim` and is <= max_tile."""
    best = granule
    t = granule
    limit = min(dim, max_tile)
    while t <= limit:
        if dim % t == 0:
            best = t
        t += granule
    return best


def conv_matmul(patches, w, b_row, *, apply_act, out_dtype):
    """patches:(M,K) bf16, w:(K,N) bf16, b_row:(1,N) f32 -> (M,N) out_dtype.

    K and N must be multiples of 128 (guaranteed by prepare_conv)."""
    m, k = patches.shape
    k2, n = w.shape
    assert k == k2 and k % 128 == 0 and n % 128 == 0, (patches.shape, w.shape)

    split = _multi_tensorcore()
    tm = _choose_tm(m, split)
    mp = _round_up(m, tm)
    if mp != m:
        patches = jnp.pad(patches, ((0, mp - m), (0, 0)))
    nm = mp // tm

    tk = _pick_tile(k, 1024)
    tn = _pick_tile(n, 512)
    # On 2-TC chips make sure at least one "parallel" axis has >=2 blocks.
    if split and nm == 1 and tn == n and n >= 256 and (n // 2) % 128 == 0:
        tn = n // 2
    nn, nk = n // tn, k // tk

    # Tile-derived VMEM budget: double-buffered A/W/bias tiles + output tile
    # + f32 accumulator, x2 headroom, clamped to <= 48 MiB (v7x has 64 MiB).
    need = (2 * (tm * tk * 2 + tk * tn * 2 + tn * 4)
            + 2 * tm * tn * jnp.dtype(out_dtype).itemsize
            + tm * tn * 4)
    vmem_limit = int(min(48 << 20, max(16 << 20, 2 * need)))

    out = pl.pallas_call(
        functools.partial(_conv_mm_kernel, apply_act),
        out_shape=jax.ShapeDtypeStruct((mp, n), out_dtype),
        grid_spec=pltpu.PrefetchScalarGridSpec(
            num_scalar_prefetch=0,
            grid=(nm, nn, nk),
            in_specs=[
                pl.BlockSpec((tm, tk), lambda i, j, kk: (i, kk)),
                pl.BlockSpec((tk, tn), lambda i, j, kk: (kk, j)),
                pl.BlockSpec((1, tn), lambda i, j, kk: (0, j)),
            ],
            out_specs=pl.BlockSpec((tm, tn), lambda i, j, kk: (i, j)),
            scratch_shapes=[pltpu.VMEM((tm, tn), jnp.float32)],
        ),
        compiler_params=pltpu.CompilerParams(
            dimension_semantics=("parallel", "parallel", "arbitrary"),
            vmem_limit_bytes=vmem_limit,
        ),
    )(patches, w, b_row)

    return out[:m] if mp != m else out


# ---------------------------------------------------------------------------
# Plain-JAX glue: im2col (padding + strided window extraction), in bf16.
# kh/kw/stride/pad are static Python ints (never traced).
# ---------------------------------------------------------------------------
def im2col(x_nhwc, kh, kw, stride, pad):
    """pad = (top, bottom, left, right). Returns (M, K) patches and (N, OH, OW)."""
    x = jnp.pad(x_nhwc, ((0, 0), (pad[0], pad[1]), (pad[2], pad[3]), (0, 0)))
    n, hp, wp, c = x.shape
    oh = (hp - kh) // stride + 1
    ow = (wp - kw) // stride + 1
    cols = []
    for i in range(kh):
        for j in range(kw):
            cols.append(x[:, i:i + stride * oh:stride, j:j + stride * ow:stride, :])
    patches = jnp.concatenate(cols, axis=-1)            # (N, OH, OW, KH*KW*C)
    return patches.reshape(n * oh * ow, kh * kw * c), (n, oh, ow)


def conv2d_layer(x_nhwc, w_mat, b_row, *, kh, kw, oc, stride, pad,
                 apply_act, out_dtype):
    patches, (n, oh, ow) = im2col(x_nhwc, kh, kw, stride, pad)
    kp = w_mat.shape[0]
    if kp != patches.shape[1]:                           # zero-pad K to 128 multiple
        patches = jnp.pad(patches, ((0, 0), (0, kp - patches.shape[1])))
    out = conv_matmul(patches.astype(jnp.bfloat16), w_mat, b_row,
                      apply_act=apply_act, out_dtype=out_dtype)
    if out.shape[1] != oc:                               # drop padded output channels
        out = out[:, :oc]
    return out.reshape(n, oh, ow, oc)


# ---------------------------------------------------------------------------
# Static layer configuration (kept OUT of the traced params pytree).
#   (name, in_ch, out_ch, stride, pad(top,bottom,left,right), apply_act)
# ---------------------------------------------------------------------------
KH = KW = 4
LAYER_CFG = (
    ("conv1", 3, 64, 2, (1, 1, 1, 1), True),
    ("conv2", 64, 128, 2, (1, 1, 1, 1), True),
    ("conv3", 128, 256, 2, (1, 1, 1, 1), True),
    ("conv4", 256, 512, 1, (1, 2, 1, 2), True),   # ZeroPad2d((1,2,1,2)) + conv
    ("conv5", 512, 1, 1, (1, 2, 1, 2), False),    # ZeroPad2d((1,2,1,2)) + conv
)


# ---------------------------------------------------------------------------
# Parameters: PyTorch-like init, then one-time layout prep (hoisted transposes).
# The params dict contains ONLY arrays (jit-safe).
# ---------------------------------------------------------------------------
def init_conv(key, oc, ic, kh, kw):
    kw_, kb_ = jax.random.split(key)
    fan_in = ic * kh * kw
    bound = 1.0 / jnp.sqrt(fan_in)
    w = jax.random.uniform(kw_, (oc, ic, kh, kw), jnp.float32, -bound, bound)
    b = jax.random.uniform(kb_, (oc,), jnp.float32, -bound, bound)
    return w, b


def prepare_conv(w_oihw, b):
    """(OC,IC,KH,KW) f32 -> lane-dense bf16 (Kp, Np) matmul weight + f32 bias row."""
    oc, ic, kh, kw = w_oihw.shape
    k = kh * kw * ic
    kp = _round_up(k, 128)
    np_ = _round_up(max(oc, 128), 128)
    w_mat = jnp.transpose(w_oihw, (2, 3, 1, 0)).reshape(k, oc)   # (kh,kw,ic) x oc
    w_mat = jnp.pad(w_mat, ((0, kp - k), (0, np_ - oc))).astype(jnp.bfloat16)
    b_row = jnp.pad(b, (0, np_ - oc)).astype(jnp.float32).reshape(1, np_)
    return {"w": w_mat, "b": b_row}


def make_params(key):
    ks = jax.random.split(key, len(LAYER_CFG))
    params = {}
    for (name, ic, oc, _, _, _), k in zip(LAYER_CFG, ks):
        w, b = init_conv(k, oc, ic, KH, KW)
        params[name] = prepare_conv(w, b)   # one-time, outside the jit
    return params


# ---------------------------------------------------------------------------
# Full discriminator forward (NCHW in / NCHW out, like the PyTorch module)
# ---------------------------------------------------------------------------
def discriminator_forward(params, x_nchw):
    x = jnp.transpose(x_nchw, (0, 2, 3, 1)).astype(jnp.bfloat16)   # NCHW -> NHWC

    for li, (name, _, oc, stride, pad, apply_act) in enumerate(LAYER_CFG):
        last = li == len(LAYER_CFG) - 1
        x = conv2d_layer(
            x, params[name]["w"], params[name]["b"],
            kh=KH, kw=KW, oc=oc, stride=stride, pad=pad,
            apply_act=apply_act,
            out_dtype=jnp.float32 if last else jnp.bfloat16,
        )

    return jnp.transpose(x, (0, 3, 1, 2))                          # NHWC -> NCHW


if __name__ == "__main__":
    key = jax.random.PRNGKey(0)
    k_x, k_p = jax.random.split(key)

    # Small input consistent with the module: NCHW, 3 channels, 32x32 spatial.
    x = jax.random.normal(k_x, (2, 3, 32, 32), dtype=jnp.float32)
    params = make_params(k_p)   # layout prep happens once, outside the jit

    out = jax.jit(discriminator_forward)(params, x)
    out = jax.block_until_ready(out)

    assert out.shape == (2, 1, 4, 4), out.shape
    assert jnp.all(jnp.isfinite(out))
    print("KERNEL_OK")
</pallas_src>

<mosaic_0001>
module attributes {stable_mosaic.version = 11 : i64} {
  func.func @_conv_mm_kernel(%arg0: i32, %arg1: i32, %arg2: i32, %arg3: memref<256x128xbf16, #tpu.memory_space<vmem>>, %arg4: memref<128x128xbf16, #tpu.memory_space<vmem>>, %arg5: memref<1x128xf32, #tpu.memory_space<vmem>>, %arg6: memref<256x128xbf16, #tpu.memory_space<vmem>>, %arg7: memref<256x128xf32, #tpu.memory_space<vmem>>) attributes {dimension_semantics = [#tpu.dimension_semantics<parallel>, #tpu.dimension_semantics<parallel>, #tpu.dimension_semantics<arbitrary>], iteration_bounds = array<i64: 2, 1, 1>, scalar_prefetch = 0 : i64, scratch_operands = 1 : i64, tpu.core_type = #tpu.core_type<tc>, window_params = [{transform_indices = @transform_0, window_bounds = array<i64: 256, 128>}, {transform_indices = @transform_1, window_bounds = array<i64: 128, 128>}, {transform_indices = @transform_2, window_bounds = array<i64: 1, 128>}, {transform_indices = @transform_3, window_bounds = array<i64: 256, 128>}]} {
    %c0_i32 = arith.constant 0 : i32
    %0 = arith.cmpi eq, %arg2, %c0_i32 : i32
    %1 = arith.extui %0 : i1 to i32
    %c0_i32_0 = arith.constant 0 : i32
    %2 = arith.cmpi ne, %1, %c0_i32_0 : i32
    scf.if %2 {
      %c0_10 = arith.constant 0 : index
      %c0_11 = arith.constant 0 : index
      %12 = vector.load %arg5[%c0_10, %c0_11] : memref<1x128xf32, #tpu.memory_space<vmem>>, vector<1x128xf32>
      %13 = vector.shape_cast %12 : vector<1x128xf32> to vector<1x128xf32>
      %14 = vector.broadcast %13 : vector<1x128xf32> to vector<256x128xf32>
      %c0_12 = arith.constant 0 : index
      %c0_13 = arith.constant 0 : index
      %15 = vector.load %arg7[%c0_12, %c0_13] : memref<256x128xf32, #tpu.memory_space<vmem>>, vector<256x128xf32>
      tpu.vector_store %arg7[%c0_12, %c0_13], %14 {strides = array<i32>} : memref<256x128xf32, #tpu.memory_space<vmem>>, vector<256x128xf32>,
    } else {
    }
    %c0 = arith.constant 0 : index
    %c0_1 = arith.constant 0 : index
    %3 = vector.load %arg7[%c0, %c0_1] : memref<256x128xf32, #tpu.memory_space<vmem>>, vector<256x128xf32>
    %c0_2 = arith.constant 0 : index
    %c0_3 = arith.constant 0 : index
    %4 = vector.load %arg3[%c0_2, %c0_3] : memref<256x128xbf16, #tpu.memory_space<vmem>>, vector<256x128xbf16>
    %c0_4 = arith.constant 0 : index
    %c0_5 = arith.constant 0 : index
    %5 = vector.load %arg4[%c0_4, %c0_5] : memref<128x128xbf16, #tpu.memory_space<vmem>>, vector<128x128xbf16>
    %cst = arith.constant dense<0.000000e+00> : vector<256x128xf32>
    %6 = tpu.matmul %4, %5, %cst {dimension_numbers = #tpu.dot_dimension_numbers<[1], [0], [0], [1], [0, 0, 1, 1], [], []>} : vector<256x128xbf16>, vector<128x128xbf16>, vector<256x128xf32> -> vector<256x128xf32>
    %7 = arith.addf %3, %6 : vector<256x128xf32>
    %c0_6 = arith.constant 0 : index
    %c0_7 = arith.constant 0 : index
    %8 = vector.load %arg7[%c0_6, %c0_7] : memref<256x128xf32, #tpu.memory_space<vmem>>, vector<256x128xf32>
    tpu.vector_store %arg7[%c0_6, %c0_7], %7 {strides = array<i32>} : memref<256x128xf32, #tpu.memory_space<vmem>>, vector<256x128xf32>,
    %c0_i32_8 = arith.constant 0 : i32
    %9 = arith.cmpi eq, %arg2, %c0_i32_8 : i32
    %10 = arith.extui %9 : i1 to i32
    %c0_i32_9 = arith.constant 0 : i32
    %11 = arith.cmpi ne, %10, %c0_i32_9 : i32
    scf.if %11 {
      %c0_10 = arith.constant 0 : index
      %c0_11 = arith.constant 0 : index
      %12 = vector.load %arg7[%c0_10, %c0_11] : memref<256x128xf32, #tpu.memory_space<vmem>>, vector<256x128xf32>
      %cst_12 = arith.constant 0.000000e+00 : f32
      %13 = vector.broadcast %cst_12 : f32 to vector<256x128xf32>
      %14 = arith.cmpf ogt, %12, %13 : vector<256x128xf32>
      %cst_13 = arith.constant 3.000000e-01 : f32
      %15 = vector.broadcast %cst_13 : f32 to vector<256x128xf32>
      %16 = arith.mulf %15, %12 : vector<256x128xf32>
      %17 = arith.select %14, %12, %16 : vector<256x128xi1>, vector<256x128xf32>
      %18 = arith.truncf %17 : vector<256x128xf32> to vector<256x128xbf16>
      %c0_14 = arith.constant 0 : index
      %c0_15 = arith.constant 0 : index
      %19 = vector.load %arg6[%c0_14, %c0_15] : memref<256x128xbf16, #tpu.memory_space<vmem>>, vector<256x128xbf16>
      tpu.vector_store %arg6[%c0_14, %c0_15], %18 {strides = array<i32>} : memref<256x128xbf16, #tpu.memory_space<vmem>>, vector<256x128xbf16>,
    } else {
    }
    return
  }
  func.func @transform_0(%arg0: i32, %arg1: i32, %arg2: i32) -> (i32, i32) {
    %c0_i32 = arith.constant 0 : i32
    return %arg0, %arg2 : i32, i32
  }
  func.func @transform_1(%arg0: i32, %arg1: i32, %arg2: i32) -> (i32, i32) {
    %c0_i32 = arith.constant 0 : i32
    return %arg2, %arg1 : i32, i32
  }
  func.func @transform_2(%arg0: i32, %arg1: i32, %arg2: i32) -> (i32, i32) {
    %c0_i32 = arith.constant 0 : i32
    %c0_i32_0 = arith.constant 0 : i32
    return %c0_i32, %arg1 : i32, i32
  }
  func.func @transform_3(%arg0: i32, %arg1: i32, %arg2: i32) -> (i32, i32) {
    %c0_i32 = arith.constant 0 : i32
    return %arg0, %arg1 : i32, i32
  }
}

module attributes {stable_mosaic.version = 11 : i64} {
  func.func @_conv_mm_kernel(%arg0: i32, %arg1: i32, %arg2: i32, %arg3: memref<128x1024xbf16, #tpu.memory_space<vmem>>, %arg4: memref<1024x128xbf16, #tpu.memory_space<vmem>>, %arg5: memref<1x128xf32, #tpu.memory_space<vmem>>, %arg6: memref<128x128xbf16, #tpu.memory_space<vmem>>, %arg7: memref<128x128xf32, #tpu.memory_space<vmem>>) attributes {dimension_semantics = [#tpu.dimension_semantics<parallel>, #tpu.dimension_semantics<parallel>, #tpu.dimension_semantics<arbitrary>], iteration_bounds = array<i64: 1, 1, 1>, scalar_prefetch = 0 : i64, scratch_operands = 1 : i64, tpu.core_type = #tpu.core_type<tc>, window_params = [{transform_indices = @transform_0, window_bounds = array<i64: 128, 1024>}, {transform_indices = @transform_1, window_bounds = array<i64: 1024, 128>}, {transform_indices = @transform_2, window_bounds = array<i64: 1, 128>}, {transform_indices = @transform_3, window_bounds = array<i64: 128, 128>}]} {
    %c0_i32 = arith.constant 0 : i32
    %0 = arith.cmpi eq, %arg2, %c0_i32 : i32
    %1 = arith.extui %0 : i1 to i32
    %c0_i32_0 = arith.constant 0 : i32
    %2 = arith.cmpi ne, %1, %c0_i32_0 : i32
    scf.if %2 {
      %c0_10 = arith.constant 0 : index
      %c0_11 = arith.constant 0 : index
      %12 = vector.load %arg5[%c0_10, %c0_11] : memref<1x128xf32, #tpu.memory_space<vmem>>, vector<1x128xf32>
      %13 = vector.shape_cast %12 : vector<1x128xf32> to vector<1x128xf32>
      %14 = vector.broadcast %13 : vector<1x128xf32> to vector<128x128xf32>
      %c0_12 = arith.constant 0 : index
      %c0_13 = arith.constant 0 : index
      %15 = vector.load %arg7[%c0_12, %c0_13] : memref<128x128xf32, #tpu.memory_space<vmem>>, vector<128x128xf32>
      tpu.vector_store %arg7[%c0_12, %c0_13], %14 {strides = array<i32>} : memref<128x128xf32, #tpu.memory_space<vmem>>, vector<128x128xf32>,
    } else {
    }
    %c0 = arith.constant 0 : index
    %c0_1 = arith.constant 0 : index
    %3 = vector.load %arg7[%c0, %c0_1] : memref<128x128xf32, #tpu.memory_space<vmem>>, vector<128x128xf32>
    %c0_2 = arith.constant 0 : index
    %c0_3 = arith.constant 0 : index
    %4 = vector.load %arg3[%c0_2, %c0_3] : memref<128x1024xbf16, #tpu.memory_space<vmem>>, vector<128x1024xbf16>
    %c0_4 = arith.constant 0 : index
    %c0_5 = arith.constant 0 : index
    %5 = vector.load %arg4[%c0_4, %c0_5] : memref<1024x128xbf16, #tpu.memory_space<vmem>>, vector<1024x128xbf16>
    %cst = arith.constant dense<0.000000e+00> : vector<128x128xf32>
    %6 = tpu.matmul %4, %5, %cst {dimension_numbers = #tpu.dot_dimension_numbers<[1], [0], [0], [1], [0, 0, 1, 1], [], []>} : vector<128x1024xbf16>, vector<1024x128xbf16>, vector<128x128xf32> -> vector<128x128xf32>
    %7 = arith.addf %3, %6 : vector<128x128xf32>
    %c0_6 = arith.constant 0 : index
    %c0_7 = arith.constant 0 : index
    %8 = vector.load %arg7[%c0_6, %c0_7] : memref<128x128xf32, #tpu.memory_space<vmem>>, vector<128x128xf32>
    tpu.vector_store %arg7[%c0_6, %c0_7], %7 {strides = array<i32>} : memref<128x128xf32, #tpu.memory_space<vmem>>, vector<128x128xf32>,
    %c0_i32_8 = arith.constant 0 : i32
    %9 = arith.cmpi eq, %arg2, %c0_i32_8 : i32
    %10 = arith.extui %9 : i1 to i32
    %c0_i32_9 = arith.constant 0 : i32
    %11 = arith.cmpi ne, %10, %c0_i32_9 : i32
    scf.if %11 {
      %c0_10 = arith.constant 0 : index
      %c0_11 = arith.constant 0 : index
      %12 = vector.load %arg7[%c0_10, %c0_11] : memref<128x128xf32, #tpu.memory_space<vmem>>, vector<128x128xf32>
      %cst_12 = arith.constant 0.000000e+00 : f32
      %13 = vector.broadcast %cst_12 : f32 to vector<128x128xf32>
      %14 = arith.cmpf ogt, %12, %13 : vector<128x128xf32>
      %cst_13 = arith.constant 3.000000e-01 : f32
      %15 = vector.broadcast %cst_13 : f32 to vector<128x128xf32>
      %16 = arith.mulf %15, %12 : vector<128x128xf32>
      %17 = arith.select %14, %12, %16 : vector<128x128xi1>, vector<128x128xf32>
      %18 = arith.truncf %17 : vector<128x128xf32> to vector<128x128xbf16>
      %c0_14 = arith.constant 0 : index
      %c0_15 = arith.constant 0 : index
      %19 = vector.load %arg6[%c0_14, %c0_15] : memref<128x128xbf16, #tpu.memory_space<vmem>>, vector<128x128xbf16>
      tpu.vector_store %arg6[%c0_14, %c0_15], %18 {strides = array<i32>} : memref<128x128xbf16, #tpu.memory_space<vmem>>, vector<128x128xbf16>,
    } else {
    }
    return
  }
  func.func @transform_0(%arg0: i32, %arg1: i32, %arg2: i32) -> (i32, i32) {
    %c0_i32 = arith.constant 0 : i32
    return %arg0, %arg2 : i32, i32
  }
  func.func @transform_1(%arg0: i32, %arg1: i32, %arg2: i32) -> (i32, i32) {
    %c0_i32 = arith.constant 0 : i32
    return %arg2, %arg1 : i32, i32
  }
  func.func @transform_2(%arg0: i32, %arg1: i32, %arg2: i32) -> (i32, i32) {
    %c0_i32 = arith.constant 0 : i32
    %c0_i32_0 = arith.constant 0 : i32
    return %c0_i32, %arg1 : i32, i32
  }
  func.func @transform_3(%arg0: i32, %arg1: i32, %arg2: i32) -> (i32, i32) {
    %c0_i32 = arith.constant 0 : i32
    return %arg0, %arg1 : i32, i32
  }
}

module attributes {stable_mosaic.version = 11 : i64} {
  func.func @_conv_mm_kernel(%arg0: i32, %arg1: i32, %arg2: i32, %arg3: memref<32x1024xbf16, #tpu.memory_space<vmem>>, %arg4: memref<1024x256xbf16, #tpu.memory_space<vmem>>, %arg5: memref<1x256xf32, #tpu.memory_space<vmem>>, %arg6: memref<32x256xbf16, #tpu.memory_space<vmem>>, %arg7: memref<32x256xf32, #tpu.memory_space<vmem>>) attributes {dimension_semantics = [#tpu.dimension_semantics<parallel>, #tpu.dimension_semantics<parallel>, #tpu.dimension_semantics<arbitrary>], iteration_bounds = array<i64: 1, 1, 2>, scalar_prefetch = 0 : i64, scratch_operands = 1 : i64, tpu.core_type = #tpu.core_type<tc>, window_params = [{transform_indices = @transform_0, window_bounds = array<i64: 32, 1024>}, {transform_indices = @transform_1, window_bounds = array<i64: 1024, 256>}, {transform_indices = @transform_2, window_bounds = array<i64: 1, 256>}, {transform_indices = @transform_3, window_bounds = array<i64: 32, 256>}]} {
    %c0_i32 = arith.constant 0 : i32
    %0 = arith.cmpi eq, %arg2, %c0_i32 : i32
    %1 = arith.extui %0 : i1 to i32
    %c0_i32_0 = arith.constant 0 : i32
    %2 = arith.cmpi ne, %1, %c0_i32_0 : i32
    scf.if %2 {
      %c0_9 = arith.constant 0 : index
      %c0_10 = arith.constant 0 : index
      %12 = vector.load %arg5[%c0_9, %c0_10] : memref<1x256xf32, #tpu.memory_space<vmem>>, vector<1x256xf32>
      %13 = vector.shape_cast %12 : vector<1x256xf32> to vector<1x256xf32>
      %14 = vector.broadcast %13 : vector<1x256xf32> to vector<32x256xf32>
      %c0_11 = arith.constant 0 : index
      %c0_12 = arith.constant 0 : index
      %15 = vector.load %arg7[%c0_11, %c0_12] : memref<32x256xf32, #tpu.memory_space<vmem>>, vector<32x256xf32>
      tpu.vector_store %arg7[%c0_11, %c0_12], %14 {strides = array<i32>} : memref<32x256xf32, #tpu.memory_space<vmem>>, vector<32x256xf32>,
    } else {
    }
    %c0 = arith.constant 0 : index
    %c0_1 = arith.constant 0 : index
    %3 = vector.load %arg7[%c0, %c0_1] : memref<32x256xf32, #tpu.memory_space<vmem>>, vector<32x256xf32>
    %c0_2 = arith.constant 0 : index
    %c0_3 = arith.constant 0 : index
    %4 = vector.load %arg3[%c0_2, %c0_3] : memref<32x1024xbf16, #tpu.memory_space<vmem>>, vector<32x1024xbf16>
    %c0_4 = arith.constant 0 : index
    %c0_5 = arith.constant 0 : index
    %5 = vector.load %arg4[%c0_4, %c0_5] : memref<1024x256xbf16, #tpu.memory_space<vmem>>, vector<1024x256xbf16>
    %cst = arith.constant dense<0.000000e+00> : vector<32x256xf32>
    %6 = tpu.matmul %4, %5, %cst {dimension_numbers = #tpu.dot_dimension_numbers<[1], [0], [0], [1], [0, 0, 1, 1], [], []>} : vector<32x1024xbf16>, vector<1024x256xbf16>, vector<32x256xf32> -> vector<32x256xf32>
    %7 = arith.addf %3, %6 : vector<32x256xf32>
    %c0_6 = arith.constant 0 : index
    %c0_7 = arith.constant 0 : index
    %8 = vector.load %arg7[%c0_6, %c0_7] : memref<32x256xf32, #tpu.memory_space<vmem>>, vector<32x256xf32>
    tpu.vector_store %arg7[%c0_6, %c0_7], %7 {strides = array<i32>} : memref<32x256xf32, #tpu.memory_space<vmem>>, vector<32x256xf32>,
    %c1_i32 = arith.constant 1 : i32
    %9 = arith.cmpi eq, %arg2, %c1_i32 : i32
    %10 = arith.extui %9 : i1 to i32
    %c0_i32_8 = arith.constant 0 : i32
    %11 = arith.cmpi ne, %10, %c0_i32_8 : i32
    scf.if %11 {
      %c0_9 = arith.constant 0 : index
      %c0_10 = arith.constant 0 : index
      %12 = vector.load %arg7[%c0_9, %c0_10] : memref<32x256xf32, #tpu.memory_space<vmem>>, vector<32x256xf32>
      %cst_11 = arith.constant 0.000000e+00 : f32
      %13 = vector.broadcast %cst_11 : f32 to vector<32x256xf32>
      %14 = arith.cmpf ogt, %12, %13 : vector<32x256xf32>
      %cst_12 = arith.constant 3.000000e-01 : f32
      %15 = vector.broadcast %cst_12 : f32 to vector<32x256xf32>
      %16 = arith.mulf %15, %12 : vector<32x256xf32>
      %17 = arith.select %14, %12, %16 : vector<32x256xi1>, vector<32x256xf32>
      %18 = arith.truncf %17 : vector<32x256xf32> to vector<32x256xbf16>
      %c0_13 = arith.constant 0 : index
      %c0_14 = arith.constant 0 : index
      %19 = vector.load %arg6[%c0_13, %c0_14] : memref<32x256xbf16, #tpu.memory_space<vmem>>, vector<32x256xbf16>
      tpu.vector_store %arg6[%c0_13, %c0_14], %18 {strides = array<i32>} : memref<32x256xbf16, #tpu.memory_space<vmem>>, vector<32x256xbf16>,
    } else {
    }
    return
  }
  func.func @transform_0(%arg0: i32, %arg1: i32, %arg2: i32) -> (i32, i32) {
    %c0_i32 = arith.constant 0 : i32
    return %arg0, %arg2 : i32, i32
  }
  func.func @transform_1(%arg0: i32, %arg1: i32, %arg2: i32) -> (i32, i32) {
    %c0_i32 = arith.constant 0 : i32
    return %arg2, %arg1 : i32, i32
  }
  func.func @transform_2(%arg0: i32, %arg1: i32, %arg2: i32) -> (i32, i32) {
    %c0_i32 = arith.constant 0 : i32
    %c0_i32_0 = arith.constant 0 : i32
    return %c0_i32, %arg1 : i32, i32
  }
  func.func @transform_3(%arg0: i32, %arg1: i32, %arg2: i32) -> (i32, i32) {
    %c0_i32 = arith.constant 0 : i32
    return %arg0, %arg1 : i32, i32
  }
}

module attributes {stable_mosaic.version = 11 : i64} {
  func.func @_conv_mm_kernel(%arg0: i32, %arg1: i32, %arg2: i32, %arg3: memref<32x1024xbf16, #tpu.memory_space<vmem>>, %arg4: memref<1024x512xbf16, #tpu.memory_space<vmem>>, %arg5: memref<1x512xf32, #tpu.memory_space<vmem>>, %arg6: memref<32x512xbf16, #tpu.memory_space<vmem>>, %arg7: memref<32x512xf32, #tpu.memory_space<vmem>>) attributes {dimension_semantics = [#tpu.dimension_semantics<parallel>, #tpu.dimension_semantics<parallel>, #tpu.dimension_semantics<arbitrary>], iteration_bounds = array<i64: 1, 1, 4>, scalar_prefetch = 0 : i64, scratch_operands = 1 : i64, tpu.core_type = #tpu.core_type<tc>, window_params = [{transform_indices = @transform_0, window_bounds = array<i64: 32, 1024>}, {transform_indices = @transform_1, window_bounds = array<i64: 1024, 512>}, {transform_indices = @transform_2, window_bounds = array<i64: 1, 512>}, {transform_indices = @transform_3, window_bounds = array<i64: 32, 512>}]} {
    %c0_i32 = arith.constant 0 : i32
    %0 = arith.cmpi eq, %arg2, %c0_i32 : i32
    %1 = arith.extui %0 : i1 to i32
    %c0_i32_0 = arith.constant 0 : i32
    %2 = arith.cmpi ne, %1, %c0_i32_0 : i32
    scf.if %2 {
      %c0_9 = arith.constant 0 : index
      %c0_10 = arith.constant 0 : index
      %12 = vector.load %arg5[%c0_9, %c0_10] : memref<1x512xf32, #tpu.memory_space<vmem>>, vector<1x512xf32>
      %13 = vector.shape_cast %12 : vector<1x512xf32> to vector<1x512xf32>
      %14 = vector.broadcast %13 : vector<1x512xf32> to vector<32x512xf32>
      %c0_11 = arith.constant 0 : index
      %c0_12 = arith.constant 0 : index
      %15 = vector.load %arg7[%c0_11, %c0_12] : memref<32x512xf32, #tpu.memory_space<vmem>>, vector<32x512xf32>
      tpu.vector_store %arg7[%c0_11, %c0_12], %14 {strides = array<i32>} : memref<32x512xf32, #tpu.memory_space<vmem>>, vector<32x512xf32>,
    } else {
    }
    %c0 = arith.constant 0 : index
    %c0_1 = arith.constant 0 : index
    %3 = vector.load %arg7[%c0, %c0_1] : memref<32x512xf32, #tpu.memory_space<vmem>>, vector<32x512xf32>
    %c0_2 = arith.constant 0 : index
    %c0_3 = arith.constant 0 : index
    %4 = vector.load %arg3[%c0_2, %c0_3] : memref<32x1024xbf16, #tpu.memory_space<vmem>>, vector<32x1024xbf16>
    %c0_4 = arith.constant 0 : index
    %c0_5 = arith.constant 0 : index
    %5 = vector.load %arg4[%c0_4, %c0_5] : memref<1024x512xbf16, #tpu.memory_space<vmem>>, vector<1024x512xbf16>
    %cst = arith.constant dense<0.000000e+00> : vector<32x512xf32>
    %6 = tpu.matmul %4, %5, %cst {dimension_numbers = #tpu.dot_dimension_numbers<[1], [0], [0], [1], [0, 0, 1, 1], [], []>} : vector<32x1024xbf16>, vector<1024x512xbf16>, vector<32x512xf32> -> vector<32x512xf32>
    %7 = arith.addf %3, %6 : vector<32x512xf32>
    %c0_6 = arith.constant 0 : index
    %c0_7 = arith.constant 0 : index
    %8 = vector.load %arg7[%c0_6, %c0_7] : memref<32x512xf32, #tpu.memory_space<vmem>>, vector<32x512xf32>
    tpu.vector_store %arg7[%c0_6, %c0_7], %7 {strides = array<i32>} : memref<32x512xf32, #tpu.memory_space<vmem>>, vector<32x512xf32>,
    %c3_i32 = arith.constant 3 : i32
    %9 = arith.cmpi eq, %arg2, %c3_i32 : i32
    %10 = arith.extui %9 : i1 to i32
    %c0_i32_8 = arith.constant 0 : i32
    %11 = arith.cmpi ne, %10, %c0_i32_8 : i32
    scf.if %11 {
      %c0_9 = arith.constant 0 : index
      %c0_10 = arith.constant 0 : index
      %12 = vector.load %arg7[%c0_9, %c0_10] : memref<32x512xf32, #tpu.memory_space<vmem>>, vector<32x512xf32>
      %cst_11 = arith.constant 0.000000e+00 : f32
      %13 = vector.broadcast %cst_11 : f32 to vector<32x512xf32>
      %14 = arith.cmpf ogt, %12, %13 : vector<32x512xf32>
      %cst_12 = arith.constant 3.000000e-01 : f32
      %15 = vector.broadcast %cst_12 : f32 to vector<32x512xf32>
      %16 = arith.mulf %15, %12 : vector<32x512xf32>
      %17 = arith.select %14, %12, %16 : vector<32x512xi1>, vector<32x512xf32>
      %18 = arith.truncf %17 : vector<32x512xf32> to vector<32x512xbf16>
      %c0_13 = arith.constant 0 : index
      %c0_14 = arith.constant 0 : index
      %19 = vector.load %arg6[%c0_13, %c0_14] : memref<32x512xbf16, #tpu.memory_space<vmem>>, vector<32x512xbf16>
      tpu.vector_store %arg6[%c0_13, %c0_14], %18 {strides = array<i32>} : memref<32x512xbf16, #tpu.memory_space<vmem>>, vector<32x512xbf16>,
    } else {
    }
    return
  }
  func.func @transform_0(%arg0: i32, %arg1: i32, %arg2: i32) -> (i32, i32) {
    %c0_i32 = arith.constant 0 : i32
    return %arg0, %arg2 : i32, i32
  }
  func.func @transform_1(%arg0: i32, %arg1: i32, %arg2: i32) -> (i32, i32) {
    %c0_i32 = arith.constant 0 : i32
    return %arg2, %arg1 : i32, i32
  }
  func.func @transform_2(%arg0: i32, %arg1: i32, %arg2: i32) -> (i32, i32) {
    %c0_i32 = arith.constant 0 : i32
    %c0_i32_0 = arith.constant 0 : i32
    return %c0_i32, %arg1 : i32, i32
  }
  func.func @transform_3(%arg0: i32, %arg1: i32, %arg2: i32) -> (i32, i32) {
    %c0_i32 = arith.constant 0 : i32
    return %arg0, %arg1 : i32, i32
  }
}

module attributes {stable_mosaic.version = 11 : i64} {
  func.func @_conv_mm_kernel(%arg0: i32, %arg1: i32, %arg2: i32, %arg3: memref<32x1024xbf16, #tpu.memory_space<vmem>>, %arg4: memref<1024x128xbf16, #tpu.memory_space<vmem>>, %arg5: memref<1x128xf32, #tpu.memory_space<vmem>>, %arg6: memref<32x128xf32, #tpu.memory_space<vmem>>, %arg7: memref<32x128xf32, #tpu.memory_space<vmem>>) attributes {dimension_semantics = [#tpu.dimension_semantics<parallel>, #tpu.dimension_semantics<parallel>, #tpu.dimension_semantics<arbitrary>], iteration_bounds = array<i64: 1, 1, 8>, scalar_prefetch = 0 : i64, scratch_operands = 1 : i64, tpu.core_type = #tpu.core_type<tc>, window_params = [{transform_indices = @transform_0, window_bounds = array<i64: 32, 1024>}, {transform_indices = @transform_1, window_bounds = array<i64: 1024, 128>}, {transform_indices = @transform_2, window_bounds = array<i64: 1, 128>}, {transform_indices = @transform_3, window_bounds = array<i64: 32, 128>}]} {
    %c0_i32 = arith.constant 0 : i32
    %0 = arith.cmpi eq, %arg2, %c0_i32 : i32
    %1 = arith.extui %0 : i1 to i32
    %c0_i32_0 = arith.constant 0 : i32
    %2 = arith.cmpi ne, %1, %c0_i32_0 : i32
    scf.if %2 {
      %c0_9 = arith.constant 0 : index
      %c0_10 = arith.constant 0 : index
      %12 = vector.load %arg5[%c0_9, %c0_10] : memref<1x128xf32, #tpu.memory_space<vmem>>, vector<1x128xf32>
      %13 = vector.shape_cast %12 : vector<1x128xf32> to vector<1x128xf32>
      %14 = vector.broadcast %13 : vector<1x128xf32> to vector<32x128xf32>
      %c0_11 = arith.constant 0 : index
      %c0_12 = arith.constant 0 : index
      %15 = vector.load %arg7[%c0_11, %c0_12] : memref<32x128xf32, #tpu.memory_space<vmem>>, vector<32x128xf32>
      tpu.vector_store %arg7[%c0_11, %c0_12], %14 {strides = array<i32>} : memref<32x128xf32, #tpu.memory_space<vmem>>, vector<32x128xf32>,
    } else {
    }
    %c0 = arith.constant 0 : index
    %c0_1 = arith.constant 0 : index
    %3 = vector.load %arg7[%c0, %c0_1] : memref<32x128xf32, #tpu.memory_space<vmem>>, vector<32x128xf32>
    %c0_2 = arith.constant 0 : index
    %c0_3 = arith.constant 0 : index
    %4 = vector.load %arg3[%c0_2, %c0_3] : memref<32x1024xbf16, #tpu.memory_space<vmem>>, vector<32x1024xbf16>
    %c0_4 = arith.constant 0 : index
    %c0_5 = arith.constant 0 : index
    %5 = vector.load %arg4[%c0_4, %c0_5] : memref<1024x128xbf16, #tpu.memory_space<vmem>>, vector<1024x128xbf16>
    %cst = arith.constant dense<0.000000e+00> : vector<32x128xf32>
    %6 = tpu.matmul %4, %5, %cst {dimension_numbers = #tpu.dot_dimension_numbers<[1], [0], [0], [1], [0, 0, 1, 1], [], []>} : vector<32x1024xbf16>, vector<1024x128xbf16>, vector<32x128xf32> -> vector<32x128xf32>
    %7 = arith.addf %3, %6 : vector<32x128xf32>
    %c0_6 = arith.constant 0 : index
    %c0_7 = arith.constant 0 : index
    %8 = vector.load %arg7[%c0_6, %c0_7] : memref<32x128xf32, #tpu.memory_space<vmem>>, vector<32x128xf32>
    tpu.vector_store %arg7[%c0_6, %c0_7], %7 {strides = array<i32>} : memref<32x128xf32, #tpu.memory_space<vmem>>, vector<32x128xf32>,
    %c7_i32 = arith.constant 7 : i32
    %9 = arith.cmpi eq, %arg2, %c7_i32 : i32
    %10 = arith.extui %9 : i1 to i32
    %c0_i32_8 = arith.constant 0 : i32
    %11 = arith.cmpi ne, %10, %c0_i32_8 : i32
    scf.if %11 {
      %c0_9 = arith.constant 0 : index
      %c0_10 = arith.constant 0 : index
      %12 = vector.load %arg7[%c0_9, %c0_10] : memref<32x128xf32, #tpu.memory_space<vmem>>, vector<32x128xf32>
      %c0_11 = arith.constant 0 : index
      %c0_12 = arith.constant 0 : index
      %13 = vector.load %arg6[%c0_11, %c0_12] : memref<32x128xf32, #tpu.memory_space<vmem>>, vector<32x128xf32>
      tpu.vector_store %arg6[%c0_11, %c0_12], %12 {strides = array<i32>} : memref<32x128xf32, #tpu.memory_space<vmem>>, vector<32x128xf32>,
    } else {
    }
    return
  }
  func.func @transform_0(%arg0: i32, %arg1: i32, %arg2: i32) -> (i32, i32) {
    %c0_i32 = arith.constant 0 : i32
    return %arg0, %arg2 : i32, i32
  }
  func.func @transform_1(%arg0: i32, %arg1: i32, %arg2: i32) -> (i32, i32) {
    %c0_i32 = arith.constant 0 : i32
    return %arg2, %arg1 : i32, i32
  }
  func.func @transform_2(%arg0: i32, %arg1: i32, %arg2: i32) -> (i32, i32) {
    %c0_i32 = arith.constant 0 : i32
    %c0_i32_0 = arith.constant 0 : i32
    return %c0_i32, %arg1 : i32, i32
  }
  func.func @transform_3(%arg0: i32, %arg1: i32, %arg2: i32) -> (i32, i32) {
    %c0_i32 = arith.constant 0 : i32
    return %arg0, %arg1 : i32, i32
  }
}

</mosaic_0001>

<bundles_post_ra>
// kernel: discriminator_forward.5
= control target key start
LH: loop header
LB: loop body
LE: loop exit
PB: predicated region body
PF: predicated region fallthrough
CT: control target
= control target key end

     0   :  { %s1531_s12 = smov 0   ;;  %s1533_s13 = smov 0   ;;  %s1674_s0 = inlined_call_operand.vmem [shape: bf16[512,128], index: 0, kind: input, shape index: {}]   ;;  %s1675_s1 = inlined_call_operand.vmem [shape: bf16[128,128], index: 1, kind: input, shape index: {}]   ;;  %s1676_s2 = inlined_call_operand.vmem [shape: f32[1,128], index: 2, kind: input, shape index: {}]   ;;  %s1677_s3 = inlined_call_operand.vmem [shape: bf16[512,128], index: 3, kind: output, shape index: {}]  }
   0x1   :  { %s1535_s14 = smov 0  }
   0x2 LB: > { %s32_s15 = sadd.s32 1, %s1505_s13  ;;  %p1160_p0 = scmp.ge.s32.totalorder %s1509_s14, 1  ;;  %s1509_s14 = sphi %s1535_s14, %s13_s14   ;;  %s1505_s13 = sphi %s1533_s13, %s1679_s13   ;;  %s1501_s12 = sphi %s1531_s12, %s1678_s12  }
   0x3   : > { %p34_p1 = scmp.ge.s32.totalorder %s32_s15, 2  ;;  %p188_p2 = scmp.lt.s32.totalorder %s1509_s14, 3 }
   0x5   : > { %s1681_s15 = smov (%p34_p1, %s32_s15), 0  ;;  %p189_p3 = pnand %p1160_p0, %p188_p2 }
   0x6   : > { %v1463_v0 = vld [vmem:[%s1675_s1] sm:$0xff] (!%p189_p3)   ;;  %s1161_s18 = sshll.u32 (!%p189_p3), %s1501_s12, 5  ;;  %v1464_v1 = vld [vmem:[%s1675_s1 + $0x8] sm:$0xff] (!%p189_p3)   ;;  %v1465_v2 = vld [vmem:[%s1675_s1 + $0x10] sm:$0xff] (!%p189_p3)  }
   0x7   : > { %192 = sbr.rel (%p189_p3) target bundleno = 294 (0x126), region = 32  ;;  %p230_p4 = scmp.lt.s32.totalorder (!%p189_p3), %s1161_s18, 63  ;;  %1375 = vmatprep.subr.bf16.mxu0 (!%p189_p3), %v1463_v0  ;;  %1423 = vmatprep.subr.bf16.mxu1 (!%p189_p3), %v1463_v0  ;;  %v1466_v3 = vld [vmem:[%s1675_s1 + $0x18] sm:$0xff] (!%p189_p3)   ;;  %v1467_v6 = vld [vmem:[%s1675_s1 + $0x20] sm:$0xff] (!%p189_p3)   ;;  %v1468_v7 = vld [vmem:[%s1675_s1 + $0x28] sm:$0xff] (!%p189_p3)  }
   0x8   : > { %1376 = vmatpush3.bf16.msra.mxu0 (!%p189_p3), %v1463_v0  ;;  %1431 = vmatpush3.bf16.msra.mxu1 (!%p189_p3), %v1463_v0  ;;  %v1469_v8 = vld [vmem:[%s1675_s1 + $0x30] sm:$0xff] (!%p189_p3)   ;;  %v1470_v9 = vld [vmem:[%s1675_s1 + $0x38] sm:$0xff] (!%p189_p3)   ;;  %v1602_v24 = vld [vmem:[%s1676_s2] ss:$0 sm:$0xff] (!%p189_p3) }
   0x9   : > { %1377 = vmatprep.subr.bf16.mxu0 (!%p189_p3), %v1464_v1  ;;  %1424 = vmatprep.subr.bf16.mxu1 (!%p189_p3), %v1464_v1 }
   0xc   : > { %1378 = vmatpush3.bf16.msra.mxu0 (!%p189_p3), %v1464_v1  ;;  %1432 = vmatpush3.bf16.msra.mxu1 (!%p189_p3), %v1464_v1 }
   0xd   : > { %1379 = vmatprep.subr.bf16.mxu0 (!%p189_p3), %v1465_v2  ;;  %1425 = vmatprep.subr.bf16.mxu1 (!%p189_p3), %v1465_v2 }
   0xe   : > { %s1683_s18 = smov (!%p230_p4, %s1161_s18), 63 }
   0xf   : > { %s1162_s23 = sshll.u32 %s1683_s18, 2 }
  0x10   : > { %s1566_s26 = scalar_lea.vmem %s1674_s0, %s1162_s23  ;;  %1380 = vmatpush3.bf16.msra.mxu0 %v1465_v2  ;;  %1433 = vmatpush3.bf16.msra.mxu1 %v1465_v2  ;;  %s1619_s17 = scalar_lea.vmem %s1677_s3, %s1162_s23 }
  0x11   : > { %v1471_v4 = vld [vmem:[%s1566_s26] sm:$0xff]   ;;  %1381 = vmatprep.subr.bf16.mxu0 %v1466_v3  ;;  %1426 = vmatprep.subr.bf16.mxu1 %v1466_v3  ;;  %v1473_v10 = vld [vmem:[%s1566_s26 + $0x8] sm:$0xff]   ;;  %v1475_v12 = vld [vmem:[%s1566_s26 + $0x10] sm:$0xff]  }
  0x12   : > { %v1472_v5 = vld [vmem:[%s1566_s26 + $0x40] sm:$0xff]   ;;  %1391 = vmatprep.mubr.bf16.mxu0 %v1471_v4  ;;  %v1474_v11 = vld [vmem:[%s1566_s26 + $0x48] sm:$0xff]   ;;  %v1476_v13 = vld [vmem:[%s1566_s26 + $0x50] sm:$0xff]  }
  0x13   : > { %1407 = vmatprep.mubr.bf16.mxu1 %v1472_v5  ;;  %v1477_v14 = vld [vmem:[%s1566_s26 + $0x18] sm:$0xff]   ;;  %v1479_v16 = vld [vmem:[%s1566_s26 + $0x20] sm:$0xff]   ;;  %v1481_v18 = vld [vmem:[%s1566_s26 + $0x28] sm:$0xff]  }
  0x14   : > { %1382 = vmatpush3.bf16.msra.mxu0 %v1466_v3  ;;  %1434 = vmatpush3.bf16.msra.mxu1 %v1466_v3  ;;  %v1478_v15 = vld [vmem:[%s1566_s26 + $0x58] sm:$0xff]   ;;  %v1480_v17 = vld [vmem:[%s1566_s26 + $0x60] sm:$0xff]   ;;  %v1482_v19 = vld [vmem:[%s1566_s26 + $0x68] sm:$0xff]  }
  0x15   : > { %1383 = vmatprep.subr.bf16.mxu0 %v1467_v6  ;;  %1427 = vmatprep.subr.bf16.mxu1 %v1467_v6  ;;  %v1483_v20 = vld [vmem:[%s1566_s26 + $0x30] sm:$0xff]   ;;  %v1485_v22 = vld [vmem:[%s1566_s26 + $0x38] sm:$0xff]  }
  0x16   : > { %v1484_v21 = vld [vmem:[%s1566_s26 + $0x70] sm:$0xff]   ;;  %v1486_v23 = vld [vmem:[%s1566_s26 + $0x78] sm:$0xff]  }
  0x18   : > { %1384 = vmatpush3.bf16.msra.mxu0 %v1467_v6  ;;  %1435 = vmatpush3.bf16.msra.mxu1 %v1467_v6 }
  0x19   : > { %1385 = vmatprep.subr.bf16.mxu0 %v1468_v7  ;;  %1428 = vmatprep.subr.bf16.mxu1 %v1468_v7 }
  0x1c   : > { %1386 = vmatpush3.bf16.msra.mxu0 %v1468_v7  ;;  %1436 = vmatpush3.bf16.msra.mxu1 %v1468_v7 }
  0x1d   : > { %1387 = vmatprep.subr.bf16.mxu0 %v1469_v8  ;;  %1429 = vmatprep.subr.bf16.mxu1 %v1469_v8 }
  0x20   : > { %1388 = vmatpush3.bf16.msra.mxu0 %v1469_v8  ;;  %1437 = vmatpush3.bf16.msra.mxu1 %v1469_v8 }
  0x21   : > { %1389 = vmatprep.subr.bf16.mxu0 %v1470_v9  ;;  %1430 = vmatprep.subr.bf16.mxu1 %v1470_v9 }
  0x24   : > { %1390 = vmatpush3.bf16.msra.mxu0 %v1470_v9  ;;  %1438 = vmatpush3.bf16.msra.mxu1 %v1470_v9 }
  0x27   : > { %1392 = vmatmul.mubr.bf16.vlgmr.msra.gmra.mrb[0].mxu0 %v1473_v10  ;;  %1408 = vmatmul.mubr.bf16.vlgmr.msra.gmra.mrb[0].mxu1 %v1474_v11 }
  0x28   : > { %1395 = vmatprep.mubr.bf16.mxu0 %v1475_v12  ;;  %1411 = vmatprep.mubr.bf16.mxu1 %v1476_v13 }
  0x2f   : > { %1396 = vmatmul.mubr.bf16.gmra.mrb[4].mxu0 %v1477_v14  ;;  %1412 = vmatmul.mubr.bf16.gmra.mrb[4].mxu1 %v1478_v15 }
  0x30   : > { %1399 = vmatprep.mubr.bf16.mxu0 %v1479_v16  ;;  %1415 = vmatprep.mubr.bf16.mxu1 %v1480_v17 }
  0x37   : > { %1400 = vmatmul.mubr.bf16.gmra.mrb[8].mxu0 %v1481_v18  ;;  %1416 = vmatmul.mubr.bf16.gmra.mrb[8].mxu1 %v1482_v19 }
  0x38   : > { %1403 = vmatprep.mubr.bf16.mxu0 %v1483_v20  ;;  %1419 = vmatprep.mubr.bf16.mxu1 %v1484_v21 }
  0x3f   : > { %1404 = vmatmul.mubr.bf16.gmra.mrb[12].mxu0 %v1485_v22  ;;  %1420 = vmatmul.mubr.bf16.gmra.mrb[12].mxu1 %v1486_v23 }
  0xfa   : > { %v1393_v25 = vpop.f32.mrb[0].mxu0  ;;  %v1409_v26 = vpop.f32.mrb[0].mxu1 }
  0xfb   : > { %v690_v27 = vadd.f32 %v1393_v25, %v1602_v24  ;;  %v706_v28 = vadd.f32 %v1409_v26, %v1602_v24  ;;  %v561_v29 = vpop.f32.mrb[1].mxu0  ;;  %v625_v30 = vpop.f32.mrb[1].mxu1 }
  0xfc   : > { %v688_v31 = vadd.f32 %v1602_v24, %v561_v29  ;;  %v704_v32 = vadd.f32 %v1602_v24, %v625_v30  ;;  %v1394_v33 = vpop.f32.mrb[2].mxu0  ;;  %v1410_v34 = vpop.f32.mrb[2].mxu1 }
  0xfd   : > { %vm789_vm0 = vcmp.gt.f32.partialorder %v690_v27, 0.0  ;;  %v821_v35 = vmul.f32 0.3, %v690_v27  ;;  %vm805_vm1 = vcmp.gt.f32.partialorder %v706_v28, 0.0  ;;  %v837_v36 = vmul.f32 0.3, %v706_v28 }
  0xfe   : > { %vm787_vm2 = vcmp.gt.f32.partialorder %v688_v31, 0.0  ;;  %v819_v37 = vmul.f32 0.3, %v688_v31  ;;  %vm803_vm3 = vcmp.gt.f32.partialorder %v704_v32, 0.0  ;;  %v835_v38 = vmul.f32 0.3, %v704_v32 }
  0xff   : > { %v691_v39 = vadd.f32 %v1394_v33, %v1602_v24  ;;  %v707_v40 = vadd.f32 %v1410_v34, %v1602_v24  ;;  %v564_v41 = vpop.f32.mrb[3].mxu0  ;;  %v628_v42 = vpop.f32.mrb[3].mxu1  ;;  %v853_v43 = vsel %vm789_vm0, %v690_v27, %v821_v35  ;;  %v869_v44 = vsel %vm805_vm1, %v706_v28, %v837_v36 }
 0x100   : > { %v689_v45 = vadd.f32 %v1602_v24, %v564_v41  ;;  %v705_v46 = vadd.f32 %v1602_v24, %v628_v42  ;;  %v851_v51 = vsel %vm787_vm2, %v688_v31, %v819_v37  ;;  %v867_v52 = vsel %vm803_vm3, %v704_v32, %v835_v38 }
 0x101   : > { %vm790_vm4 = vcmp.gt.f32.partialorder %v691_v39, 0.0  ;;  %v822_v47 = vmul.f32 0.3, %v691_v39  ;;  %vm806_vm5 = vcmp.gt.f32.partialorder %v707_v40, 0.0  ;;  %v838_v48 = vmul.f32 0.3, %v707_v40 }
 0x102   : > { %vm788_vm6 = vcmp.gt.f32.partialorder %v689_v45, 0.0  ;;  %v820_v49 = vmul.f32 0.3, %v689_v45  ;;  %vm804_vm7 = vcmp.gt.f32.partialorder %v705_v46, 0.0  ;;  %v836_v50 = vmul.f32 0.3, %v705_v46 }
 0x103   : > { %v854_v53 = vsel %vm790_vm4, %v691_v39, %v822_v47  ;;  %v870_v54 = vsel %vm806_vm5, %v707_v40, %v838_v48  ;;  %v1397_v55 = vpop.f32.mrb[4].mxu0  ;;  %v1413_v56 = vpop.f32.mrb[4].mxu1 }
 0x104   : > { %v1264_v57 = vpack.c.bf16 %v854_v53, %v853_v43  ;;  %v1304_v58 = vpack.c.bf16 %v870_v54, %v869_v44  ;;  %v852_v59 = vsel %vm788_vm6, %v689_v45, %v820_v49  ;;  %v868_v60 = vsel %vm804_vm7, %v705_v46, %v836_v50  ;;  %v577_v61 = vpop.f32.mrb[5].mxu0  ;;  %v641_v62 = vpop.f32.mrb[5].mxu1 }
 0x105   : > { %v1259_v63 = vpack.c.bf16 %v852_v59, %v851_v51  ;;  %v1299_v0 = vpack.c.bf16 %v868_v60, %v867_v52  ;;  %v694_v1 = vadd.f32 %v1397_v55, %v1602_v24  ;;  %v710_v2 = vadd.f32 %v1413_v56, %v1602_v24  ;;  %v1398_v3 = vpop.f32.mrb[6].mxu0  ;;  %v1414_v4 = vpop.f32.mrb[6].mxu1 }
 0x106   : > { %1336 = vst [vmem:[%s1619_s17 + $0x8] sm:$0xff] %v1264_v57   ;;  %1344 = vst [vmem:[%s1619_s17 + $0x48] sm:$0xff] %v1304_v58   ;;  %v692_v5 = vadd.f32 %v1602_v24, %v577_v61  ;;  %v708_v6 = vadd.f32 %v1602_v24, %v641_v62  ;;  %v695_v7 = vadd.f32 %v1398_v3, %v1602_v24  ;;  %v580_v9 = vpop.f32.mrb[7].mxu0  ;;  %v644_v10 = vpop.f32.mrb[7].mxu1 }
 0x107   : > { %v711_v8 = vadd.f32 %v1414_v4, %v1602_v24  ;;  %1260 = vst [vmem:[%s1619_s17] sm:$0xff] %v1259_v63   ;;  %1343 = vst [vmem:[%s1619_s17 + $0x40] sm:$0xff] %v1299_v0   ;;  %vm793_vm8 = vcmp.gt.f32.partialorder %v694_v1, 0.0  ;;  %v825_v11 = vmul.f32 0.3, %v694_v1  ;;  %vm809_vm9 = vcmp.gt.f32.partialorder %v710_v2, 0.0 }
 0x108   : > { %v841_v12 = vmul.f32 0.3, %v710_v2  ;;  %vm791_vm10 = vcmp.gt.f32.partialorder %v692_v5, 0.0  ;;  %v823_v13 = vmul.f32 0.3, %v692_v5  ;;  %vm807_vm11 = vcmp.gt.f32.partialorder %v708_v6, 0.0 }
 0x109   : > { %v857_v14 = vsel %vm793_vm8, %v694_v1, %v825_v11  ;;  %v839_v15 = vmul.f32 0.3, %v708_v6  ;;  %vm794_vm12 = vcmp.gt.f32.partialorder %v695_v7, 0.0  ;;  %v826_v16 = vmul.f32 0.3, %v695_v7 }
 0x10a   : > { %v873_v17 = vsel %vm809_vm9, %v710_v2, %v841_v12  ;;  %v855_v18 = vsel %vm791_vm10, %v692_v5, %v823_v13  ;;  %vm810_vm13 = vcmp.gt.f32.partialorder %v711_v8, 0.0  ;;  %v842_v19 = vmul.f32 0.3, %v711_v8  ;;  %v1401_v20 = vpop.f32.mrb[8].mxu0  ;;  %v1417_v21 = vpop.f32.mrb[8].mxu1 }
 0x10b   : > { %v858_v22 = vsel %vm794_vm12, %v695_v7, %v826_v16  ;;  %v693_v23 = vadd.f32 %v1602_v24, %v580_v9  ;;  %v709_v25 = vadd.f32 %v1602_v24, %v644_v10  ;;  %v698_v26 = vadd.f32 %v1401_v20, %v1602_v24  ;;  %v593_v27 = vpop.f32.mrb[9].mxu0  ;;  %v657_v28 = vpop.f32.mrb[9].mxu1 }
 0x10c   : > { %v1274_v29 = vpack.c.bf16 %v858_v22, %v857_v14  ;;  %v874_v30 = vsel %vm810_vm13, %v711_v8, %v842_v19  ;;  %v714_v31 = vadd.f32 %v1417_v21, %v1602_v24  ;;  %v696_v32 = vadd.f32 %v1602_v24, %v593_v27  ;;  %v1402_v33 = vpop.f32.mrb[10].mxu0  ;;  %v1418_v34 = vpop.f32.mrb[10].mxu1 }
 0x10d   : > { %v1314_v35 = vpack.c.bf16 %v874_v30, %v873_v17  ;;  %vm792_vm14 = vcmp.gt.f32.partialorder %v693_v23, 0.0  ;;  %v824_v36 = vmul.f32 0.3, %v693_v23  ;;  %vm808_vm15 = vcmp.gt.f32.partialorder %v709_v25, 0.0  ;;  %v596_v37 = vpop.f32.mrb[11].mxu0  ;;  %v660_v38 = vpop.f32.mrb[11].mxu1 }
 0x10e   : > { %1338 = vst [vmem:[%s1619_s17 + $0x18] sm:$0xff] %v1274_v29   ;;  %v840_v39 = vmul.f32 0.3, %v709_v25  ;;  %vm797_vm0 = vcmp.gt.f32.partialorder %v698_v26, 0.0  ;;  %v829_v40 = vmul.f32 0.3, %v698_v26  ;;  %v871_v41 = vsel %vm807_vm11, %v708_v6, %v839_v15 }
 0x10f   : > { %vm813_vm1 = vcmp.gt.f32.partialorder %v714_v31, 0.0  ;;  %1346 = vst [vmem:[%s1619_s17 + $0x58] sm:$0xff] %v1314_v35   ;;  %v856_v42 = vsel %vm792_vm14, %v693_v23, %v824_v36  ;;  %v845_v43 = vmul.f32 0.3, %v714_v31  ;;  %vm795_vm2 = vcmp.gt.f32.partialorder %v696_v32, 0.0 }
 0x110   : > { %v1269_v44 = vpack.c.bf16 %v856_v42, %v855_v18  ;;  %v872_v45 = vsel %vm808_vm15, %v709_v25, %v840_v39  ;;  %v827_v46 = vmul.f32 0.3, %v696_v32  ;;  %v712_v47 = vadd.f32 %v1602_v24, %v657_v28 }
 0x111   : > { %v1309_v48 = vpack.c.bf16 %v872_v45, %v871_v41  ;;  %v861_v49 = vsel %vm797_vm0, %v698_v26, %v829_v40  ;;  %v877_v50 = vsel %vm813_vm1, %v714_v31, %v845_v43  ;;  %v699_v51 = vadd.f32 %v1402_v33, %v1602_v24 }
 0x112   : > { %1337 = vst [vmem:[%s1619_s17 + $0x10] sm:$0xff] %v1269_v44   ;;  %vm811_vm3 = vcmp.gt.f32.partialorder %v712_v47, 0.0  ;;  %v843_v52 = vmul.f32 0.3, %v712_v47  ;;  %v715_v53 = vadd.f32 %v1418_v34, %v1602_v24  ;;  %v697_v54 = vadd.f32 %v1602_v24, %v596_v37  ;;  %v1405_v55 = vpop.f32.mrb[12].mxu0  ;;  %v1421_v56 = vpop.f32.mrb[12].mxu1 }
 0x113   : > { %1345 = vst [vmem:[%s1619_s17 + $0x50] sm:$0xff] %v1309_v48   ;;  %vm798_vm4 = vcmp.gt.f32.partialorder %v699_v51, 0.0  ;;  %v830_v57 = vmul.f32 0.3, %v699_v51  ;;  %v713_v58 = vadd.f32 %v1602_v24, %v660_v38  ;;  %v702_v59 = vadd.f32 %v1405_v55, %v1602_v24  ;;  %v609_v60 = vpop.f32.mrb[13].mxu0  ;;  %v673_v61 = vpop.f32.mrb[13].mxu1 }
 0x114   : > { %v859_v62 = vsel %vm795_vm2, %v696_v32, %v827_v46  ;;  %vm814_vm5 = vcmp.gt.f32.partialorder %v715_v53, 0.0  ;;  %v846_v63 = vmul.f32 0.3, %v715_v53  ;;  %vm796_vm6 = vcmp.gt.f32.partialorder %v697_v54, 0.0  ;;  %v1406_v0 = vpop.f32.mrb[14].mxu0  ;;  %v1422_v1 = vpop.f32.mrb[14].mxu1 }
 0x115   : > { %v862_v2 = vsel %vm798_vm4, %v699_v51, %v830_v57  ;;  %v828_v3 = vmul.f32 0.3, %v697_v54  ;;  %vm812_vm7 = vcmp.gt.f32.partialorder %v713_v58, 0.0  ;;  %v844_v4 = vmul.f32 0.3, %v713_v58  ;;  %v612_v5 = vpop.f32.mrb[15].mxu0 }
 0x116   : > { %v875_v6 = vsel %vm811_vm3, %v712_v47, %v843_v52  ;;  %v1284_v7 = vpack.c.bf16 %v862_v2, %v861_v49  ;;  %v878_v8 = vsel %vm814_vm5, %v715_v53, %v846_v63  ;;  %v833_v9 = vmul.f32 0.3, %v702_v59  ;;  %v676_v10 = vpop.f32.mrb[15].mxu1 }
 0x117   : > { %v1324_v11 = vpack.c.bf16 %v878_v8, %v877_v50  ;;  %v860_v12 = vsel %vm796_vm6, %v697_v54, %v828_v3  ;;  %v876_v13 = vsel %vm812_vm7, %v713_v58, %v844_v4  ;;  %v718_v14 = vadd.f32 %v1421_v56, %v1602_v24 }
 0x118   : > { %1340 = vst [vmem:[%s1619_s17 + $0x28] sm:$0xff] %v1284_v7   ;;  %v1279_v15 = vpack.c.bf16 %v860_v12, %v859_v62  ;;  %v1319_v16 = vpack.c.bf16 %v876_v13, %v875_v6  ;;  %vm801_vm8 = vcmp.gt.f32.partialorder %v702_v59, 0.0  ;;  %v700_v17 = vadd.f32 %v1602_v24, %v609_v60 }
 0x119   : > { %1348 = vst [vmem:[%s1619_s17 + $0x68] sm:$0xff] %v1324_v11   ;;  %vm817_vm9 = vcmp.gt.f32.partialorder %v718_v14, 0.0  ;;  %v849_v18 = vmul.f32 0.3, %v718_v14  ;;  %v716_v19 = vadd.f32 %v1602_v24, %v673_v61  ;;  %v703_v20 = vadd.f32 %v1406_v0, %v1602_v24 }
 0x11a   : > { %1339 = vst [vmem:[%s1619_s17 + $0x20] sm:$0xff] %v1279_v15   ;;  %1347 = vst [vmem:[%s1619_s17 + $0x60] sm:$0xff] %v1319_v16   ;;  %v831_v21 = vmul.f32 0.3, %v700_v17  ;;  %v719_v22 = vadd.f32 %v1422_v1, %v1602_v24  ;;  %v701_v23 = vadd.f32 %v1602_v24, %v612_v5  ;;  %v865_v25 = vsel %vm801_vm8, %v702_v59, %v833_v9 }
 0x11b   : > { %vm799_vm10 = vcmp.gt.f32.partialorder %v700_v17, 0.0  ;;  %vm802_vm11 = vcmp.gt.f32.partialorder %v703_v20, 0.0  ;;  %v881_v26 = vsel %vm817_vm9, %v718_v14, %v849_v18  ;;  %v834_v27 = vmul.f32 0.3, %v703_v20 }
 0x11c   : > { %vm818_vm12 = vcmp.gt.f32.partialorder %v719_v22, 0.0  ;;  %v850_v28 = vmul.f32 0.3, %v719_v22  ;;  %vm815_vm13 = vcmp.gt.f32.partialorder %v716_v19, 0.0  ;;  %vm800_vm14 = vcmp.gt.f32.partialorder %v701_v23, 0.0 }
 0x11d   : > { %v832_v29 = vmul.f32 0.3, %v701_v23  ;;  %v717_v30 = vadd.f32 %v1602_v24, %v676_v10  ;;  %v863_v31 = vsel %vm799_vm10, %v700_v17, %v831_v21  ;;  %v847_v32 = vmul.f32 0.3, %v716_v19 }
 0x11e   : > { %v866_v33 = vsel %vm802_vm11, %v703_v20, %v834_v27  ;;  %v882_v34 = vsel %vm818_vm12, %v719_v22, %v850_v28 }
 0x11f   : > { %v1294_v35 = vpack.c.bf16 %v866_v33, %v865_v25  ;;  %v1334_v36 = vpack.c.bf16 %v882_v34, %v881_v26  ;;  %v864_v37 = vsel %vm800_vm14, %v701_v23, %v832_v29  ;;  %vm816_vm15 = vcmp.gt.f32.partialorder %v717_v30, 0.0 }
 0x120   : > { %v1289_v38 = vpack.c.bf16 %v864_v37, %v863_v31  ;;  %v848_v39 = vmul.f32 0.3, %v717_v30  ;;  %v879_v40 = vsel %vm815_vm13, %v716_v19, %v847_v32 }
 0x121   : > { %1342 = vst [vmem:[%s1619_s17 + $0x38] sm:$0xff] %v1294_v35   ;;  %1350 = vst [vmem:[%s1619_s17 + $0x78] sm:$0xff] %v1334_v36  }
 0x122   : > { %1341 = vst [vmem:[%s1619_s17 + $0x30] sm:$0xff] %v1289_v38   ;;  %v880_v41 = vsel %vm816_vm15, %v717_v30, %v848_v39 }
 0x123   : > { %v1329_v42 = vpack.c.bf16 %v880_v41, %v879_v40 }
 0x125   : > { %1349 = vst [vmem:[%s1619_s17 + $0x70] sm:$0xff] %v1329_v42  }
 0x126 PF: > { %s13_s14 = sadd.s32 1, %s1509_s14   ;;  %s1678_s12 = smov %s1505_s13 }
 0x127   : > { %p10_p5 = scmp.ge.s32.totalorder %s13_s14, 4   ;;  %s1679_s13 = smov %s1681_s15 }
 0x129   :  { %12 = sbr.rel (!%p10_p5) target bundleno = 2 (0x2), region = 76 }

// kernel: discriminator_forward.6
= control target key start
LH: loop header
LB: loop body
LE: loop exit
PB: predicated region body
PF: predicated region fallthrough
CT: control target
= control target key end

     0   :  { %s2550_s1 = inlined_call_operand.vmem [shape: bf16[1024,128], index: 1, kind: input, shape index: {}]   ;;  %s2551_s0 = inlined_call_operand.vmem [shape: bf16[128,1024], index: 0, kind: input, shape index: {}]   ;;  %s2552_s2 = inlined_call_operand.vmem [shape: f32[1,128], index: 2, kind: input, shape index: {}]   ;;  %s2553_s3 = inlined_call_operand.vmem [shape: bf16[128,128], index: 3, kind: output, shape index: {}]  }
   0x1   :  { %v1989_v0 = vld [vmem:[%s2550_s1 + $0x40] sm:$0xff]   ;;  %v1993_v4 = vld [vmem:[%s2550_s1 + $0x48] sm:$0xff]   ;;  %v1997_v8 = vld [vmem:[%s2550_s1 + $0x50] sm:$0xff]  }
   0x2   :  { %v1990_v1 = vld [vmem:[%s2550_s1 + $0xc0] sm:$0xff]   ;;  %1733 = vmatprep.subr.bf16.mxu0 %v1989_v0  ;;  %v1994_v5 = vld [vmem:[%s2550_s1 + $0xc8] sm:$0xff]   ;;  %v1998_v9 = vld [vmem:[%s2550_s1 + $0xd0] sm:$0xff]  }
   0x3   :  { %v1991_v2 = vld [vmem:[%s2550_s1] sm:$0xff]   ;;  %1797 = vmatprep.subr.bf16.mxu1 %v1990_v1  ;;  %v1995_v6 = vld [vmem:[%s2550_s1 + $0x8] sm:$0xff]   ;;  %v1999_v10 = vld [vmem:[%s2550_s1 + $0x10] sm:$0xff]  }
   0x4   :  { %v1992_v3 = vld [vmem:[%s2550_s1 + $0x80] sm:$0xff]   ;;  %1734 = vmatpush3.bf16.msra.mxu0 %v1991_v2  ;;  %v1996_v7 = vld [vmem:[%s2550_s1 + $0x88] sm:$0xff]   ;;  %v2000_v11 = vld [vmem:[%s2550_s1 + $0x90] sm:$0xff]  }
   0x5   :  { %1798 = vmatpush3.bf16.msra.mxu1 %v1992_v3  ;;  %1735 = vmatprep.subr.bf16.mxu0 %v1993_v4  ;;  %v2001_v12 = vld [vmem:[%s2550_s1 + $0x58] sm:$0xff]   ;;  %v2005_v16 = vld [vmem:[%s2550_s1 + $0x60] sm:$0xff]   ;;  %v2009_v20 = vld [vmem:[%s2550_s1 + $0x68] sm:$0xff]  }
   0x6   :  { %1799 = vmatprep.subr.bf16.mxu1 %v1994_v5  ;;  %v2002_v13 = vld [vmem:[%s2550_s1 + $0xd8] sm:$0xff]   ;;  %v2006_v17 = vld [vmem:[%s2550_s1 + $0xe0] sm:$0xff]   ;;  %v2010_v21 = vld [vmem:[%s2550_s1 + $0xe8] sm:$0xff]  }
   0x7   :  { %v2003_v14 = vld [vmem:[%s2550_s1 + $0x18] sm:$0xff]   ;;  %v2007_v18 = vld [vmem:[%s2550_s1 + $0x20] sm:$0xff]   ;;  %v2011_v22 = vld [vmem:[%s2550_s1 + $0x28] sm:$0xff]  }
   0x8   :  { %1736 = vmatpush3.bf16.msra.mxu0 %v1995_v6  ;;  %v2004_v15 = vld [vmem:[%s2550_s1 + $0x98] sm:$0xff]   ;;  %v2008_v19 = vld [vmem:[%s2550_s1 + $0xa0] sm:$0xff]   ;;  %v2012_v23 = vld [vmem:[%s2550_s1 + $0xa8] sm:$0xff]  }
   0x9   :  { %1800 = vmatpush3.bf16.msra.mxu1 %v1996_v7  ;;  %1737 = vmatprep.subr.bf16.mxu0 %v1997_v8  ;;  %v2013_v24 = vld [vmem:[%s2550_s1 + $0x70] sm:$0xff]   ;;  %v2017_v28 = vld [vmem:[%s2550_s1 + $0x78] sm:$0xff]   ;;  %v58_v32 = vld [vmem:[%s2551_s0] sm:$0xff] }
   0xa   :  { %1801 = vmatprep.subr.bf16.mxu1 %v1998_v9  ;;  %v2014_v25 = vld [vmem:[%s2550_s1 + $0xf0] sm:$0xff]   ;;  %v2018_v29 = vld [vmem:[%s2550_s1 + $0xf8] sm:$0xff]   ;;  %v62_v33 = vld [vmem:[%s2551_s0 + $0x20] sm:$0xff] }
   0xb   :  { %v2015_v26 = vld [vmem:[%s2550_s1 + $0x30] sm:$0xff]   ;;  %v2019_v30 = vld [vmem:[%s2550_s1 + $0x38] sm:$0xff]   ;;  %v59_v34 = vld [vmem:[%s2551_s0 + $0x8] sm:$0xff]  ;;  %v1526_v35 = vcombine.low %v58_v32, %v62_v33  ;;  %v1527_v36 = vcombine.high %v58_v32, %v62_v33 }
   0xc   :  { %1738 = vmatpush3.bf16.msra.mxu0 %v1999_v10  ;;  %v2016_v27 = vld [vmem:[%s2550_s1 + $0xb0] sm:$0xff]   ;;  %v2020_v31 = vld [vmem:[%s2550_s1 + $0xb8] sm:$0xff]   ;;  %v63_v37 = vld [vmem:[%s2551_s0 + $0x28] sm:$0xff] }
   0xd   :  { %1802 = vmatpush3.bf16.msra.mxu1 %v2000_v11  ;;  %1739 = vmatprep.subr.bf16.mxu0 %v2001_v12  ;;  %v1528_v38 = vcombine.low %v59_v34, %v63_v37  ;;  %v1529_v39 = vcombine.high %v59_v34, %v63_v37  ;;  %v2021_v40 = vld [vmem:[%s2550_s1 + $0x140] sm:$0xff]   ;;  %v67_v47 = vld [vmem:[%s2551_s0 + $0x48] sm:$0xff]  ;;  %v2029_v62 = vld [vmem:[%s2550_s1 + $0x150] sm:$0xff]  }
   0xe   :  { %1803 = vmatprep.subr.bf16.mxu1 %v2002_v13  ;;  %986 = vmatprep.mubr.bf16.mxu0 %v1527_v36  ;;  %v2022_v41 = vld [vmem:[%s2550_s1 + $0x100] sm:$0xff]   ;;  %v71_v48 = vld [vmem:[%s2551_s0 + $0x68] sm:$0xff]  ;;  %v2030_v63 = vld [vmem:[%s2550_s1 + $0x110] sm:$0xff]  }
   0xf   :  { %1083 = vmatprep.mubr.bf16.mxu1 %v1529_v39  ;;  %v2023_v42 = vld [vmem:[%s2550_s1 + $0x1c0] sm:$0xff]   ;;  %v1537_v49 = vcombine.high %v67_v47, %v71_v48  ;;  %v2025_v50 = vld [vmem:[%s2550_s1 + $0x148] sm:$0xff]   ;;  %v1536_v53 = vcombine.low %v67_v47, %v71_v48  ;;  %v2031_v0 = vld [vmem:[%s2550_s1 + $0x1d0] sm:$0xff]  }
  0x10   :  { %1740 = vmatpush3.bf16.msra.mxu0 %v2003_v14  ;;  %v2024_v43 = vld [vmem:[%s2550_s1 + $0x180] sm:$0xff]   ;;  %v2026_v52 = vld [vmem:[%s2550_s1 + $0x108] sm:$0xff]   ;;  %v2032_v1 = vld [vmem:[%s2550_s1 + $0x190] sm:$0xff]  }
  0x11   :  { %1804 = vmatpush3.bf16.msra.mxu1 %v2004_v15  ;;  %1741 = vmatprep.subr.bf16.mxu0 %v2005_v16  ;;  %v66_v44 = vld [vmem:[%s2551_s0 + $0x40] sm:$0xff]  ;;  %v2027_v54 = vld [vmem:[%s2550_s1 + $0x1c8] sm:$0xff]   ;;  %v2033_v10 = vld [vmem:[%s2550_s1 + $0x158] sm:$0xff]  }
  0x12   :  { %1805 = vmatprep.subr.bf16.mxu1 %v2006_v17  ;;  %v70_v45 = vld [vmem:[%s2551_s0 + $0x60] sm:$0xff]  ;;  %v2028_v55 = vld [vmem:[%s2550_s1 + $0x188] sm:$0xff]   ;;  %v2034_v11 = vld [vmem:[%s2550_s1 + $0x118] sm:$0xff]  }
  0x13   :  { %v1535_v46 = vcombine.high %v66_v44, %v70_v45  ;;  %v1534_v51 = vcombine.low %v66_v44, %v70_v45  ;;  %v74_v56 = vld [vmem:[%s2551_s0 + $0x80] sm:$0xff]  ;;  %v75_v58 = vld [vmem:[%s2551_s0 + $0x88] sm:$0xff]  ;;  %v2035_v12 = vld [vmem:[%s2550_s1 + $0x1d8] sm:$0xff]  }
  0x14   :  { %1742 = vmatpush3.bf16.msra.mxu0 %v2007_v18  ;;  %v78_v57 = vld [vmem:[%s2551_s0 + $0xa0] sm:$0xff]  ;;  %v79_v59 = vld [vmem:[%s2551_s0 + $0xa8] sm:$0xff]  ;;  %v2036_v13 = vld [vmem:[%s2550_s1 + $0x198] sm:$0xff]  }
  0x15   :  { %1806 = vmatpush3.bf16.msra.mxu1 %v2008_v19  ;;  %1743 = vmatprep.subr.bf16.mxu0 %v2009_v20  ;;  %v1543_v60 = vcombine.high %v74_v56, %v78_v57  ;;  %v1545_v61 = vcombine.high %v75_v58, %v79_v59  ;;  %v1542_v2 = vcombine.low %v74_v56, %v78_v57  ;;  %v82_v3 = vld [vmem:[%s2551_s0 + $0xc0] sm:$0xff]  ;;  %v83_v5 = vld [vmem:[%s2551_s0 + $0xc8] sm:$0xff]  ;;  %v2046_v39 = vld [vmem:[%s2550_s1 + $0x130] sm:$0xff]  }
  0x16   :  { %1807 = vmatprep.subr.bf16.mxu1 %v2010_v21  ;;  %v86_v4 = vld [vmem:[%s2551_s0 + $0xe0] sm:$0xff]  ;;  %v1544_v6 = vcombine.low %v75_v58, %v79_v59  ;;  %v87_v8 = vld [vmem:[%s2551_s0 + $0xe8] sm:$0xff]  ;;  %v2050_v48 = vld [vmem:[%s2550_s1 + $0x138] sm:$0xff]  }
  0x17   :  { %v1551_v7 = vcombine.high %v82_v3, %v86_v4  ;;  %v1553_v9 = vcombine.high %v83_v5, %v87_v8  ;;  %v90_v14 = vld [vmem:[%s2551_s0 + $0x100] sm:$0xff]  ;;  %v91_v16 = vld [vmem:[%s2551_s0 + $0x108] sm:$0xff]  ;;  %v1550_v19 = vcombine.low %v82_v3, %v86_v4  ;;  %v1552_v21 = vcombine.low %v83_v5, %v87_v8  ;;  %v69_v8 = vld [vmem:[%s2551_s0 + $0x58] sm:$0xff] }
  0x18   :  { %1744 = vmatpush3.bf16.msra.mxu0 %v2011_v22  ;;  %v94_v15 = vld [vmem:[%s2551_s0 + $0x120] sm:$0xff]  ;;  %v95_v17 = vld [vmem:[%s2551_s0 + $0x128] sm:$0xff] }
  0x19   :  { %1808 = vmatpush3.bf16.msra.mxu1 %v2012_v23  ;;  %1745 = vmatprep.subr.bf16.mxu0 %v2013_v24  ;;  %v2037_v18 = vld [vmem:[%s2550_s1 + $0x160] sm:$0xff]   ;;  %v1559_v22 = vcombine.high %v90_v14, %v94_v15  ;;  %v1561_v24 = vcombine.high %v91_v16, %v95_v17  ;;  %v2043_v32 = vld [vmem:[%s2550_s1 + $0x1e8] sm:$0xff]   ;;  %v1558_v34 = vcombine.low %v90_v14, %v94_v15  ;;  %v76_v14 = vld [vmem:[%s2551_s0 + $0x90] sm:$0xff] }
  0x1a   :  { %1809 = vmatprep.subr.bf16.mxu1 %v2014_v25  ;;  %v2038_v20 = vld [vmem:[%s2550_s1 + $0x120] sm:$0xff]   ;;  %v2044_v33 = vld [vmem:[%s2550_s1 + $0x1a8] sm:$0xff]   ;;  %v80_v15 = vld [vmem:[%s2551_s0 + $0xb0] sm:$0xff] }
  0x1b   :  { %v2039_v23 = vld [vmem:[%s2550_s1 + $0x1e0] sm:$0xff]   ;;  %v107_v44 = vld [vmem:[%s2551_s0 + $0x188] sm:$0xff] }
  0x1c   :  { %1746 = vmatpush3.bf16.msra.mxu0 %v2015_v26  ;;  %v2040_v25 = vld [vmem:[%s2550_s1 + $0x1a0] sm:$0xff]   ;;  %v111_v45 = vld [vmem:[%s2551_s0 + $0x1a8] sm:$0xff] }
  0x1d   :  { %1810 = vmatpush3.bf16.msra.mxu1 %v2016_v27  ;;  %1747 = vmatprep.subr.bf16.mxu0 %v2017_v28  ;;  %v98_v26 = vld [vmem:[%s2551_s0 + $0x140] sm:$0xff]  ;;  %v2041_v28 = vld [vmem:[%s2550_s1 + $0x168] sm:$0xff]   ;;  %v1576_v59 = vcombine.low %v107_v44, %v111_v45 }
  0x1e   :  { %1811 = vmatprep.subr.bf16.mxu1 %v2018_v29  ;;  %v102_v27 = vld [vmem:[%s2551_s0 + $0x160] sm:$0xff]  ;;  %v99_v29 = vld [vmem:[%s2551_s0 + $0x148] sm:$0xff] }
  0x1f   :  { %v1567_v36 = vcombine.high %v98_v26, %v102_v27  ;;  %v1566_v47 = vcombine.low %v98_v26, %v102_v27  ;;  %v115_v56 = vld [vmem:[%s2551_s0 + $0x1c8] sm:$0xff]  ;;  %v1546_v26 = vcombine.low %v76_v14, %v80_v15 }
  0x20   :  { %1748 = vmatpush3.bf16.msra.mxu0 %v2019_v30  ;;  %v103_v30 = vld [vmem:[%s2551_s0 + $0x168] sm:$0xff] }
  0x21   :  { %1812 = vmatpush3.bf16.msra.mxu1 %v2020_v31  ;;  %1861 = vmatprep.subr.bf16.mxu0 %v2021_v40  ;;  %v2042_v31 = vld [vmem:[%s2550_s1 + $0x128] sm:$0xff]   ;;  %v1569_v37 = vcombine.high %v99_v29, %v103_v30  ;;  %v2047_v40 = vld [vmem:[%s2550_s1 + $0x1f0] sm:$0xff]  }
  0x22   :  { %1925 = vmatprep.subr.bf16.mxu1 %v2023_v42  ;;  %v110_v42 = vld [vmem:[%s2551_s0 + $0x1a0] sm:$0xff]  ;;  %v119_v57 = vld [vmem:[%s2551_s0 + $0x1e8] sm:$0xff] }
  0x23   :  { %987 = vmatmul.mubr.bf16.vlgmr.msra.gmra.mrb[0].mxu0 %v1526_v35  ;;  %v1560_v35 = vcombine.low %v91_v16, %v95_v17  ;;  %v1584_v3 = vcombine.low %v115_v56, %v119_v57  ;;  %v77_v16 = vld [vmem:[%s2551_s0 + $0x98] sm:$0xff] }
  0x24   :  { %1084 = vmatmul.mubr.bf16.vlgmr.msra.gmra.mrb[0].mxu1 %v1528_v38  ;;  %1862 = vmatpush3.bf16.msra.mxu0 %v2022_v41  ;;  %v2045_v38 = vld [vmem:[%s2550_s1 + $0x170] sm:$0xff]   ;;  %v106_v41 = vld [vmem:[%s2551_s0 + $0x180] sm:$0xff]  ;;  %v81_v17 = vld [vmem:[%s2551_s0 + $0xb8] sm:$0xff] }
  0x25   :  { %1926 = vmatpush3.bf16.msra.mxu1 %v2024_v43  ;;  %994 = vmatprep.mubr.bf16.mxu0 %v1535_v46  ;;  %v2048_v43 = vld [vmem:[%s2550_s1 + $0x1b0] sm:$0xff]   ;;  %v2049_v46 = vld [vmem:[%s2550_s1 + $0x178] sm:$0xff]   ;;  %v1574_v58 = vcombine.low %v106_v41, %v110_v42  ;;  %v1548_v27 = vcombine.low %v77_v16, %v81_v17 }
  0x26   :  { %1091 = vmatprep.mubr.bf16.mxu1 %v1537_v49  ;;  %1863 = vmatprep.subr.bf16.mxu0 %v2025_v50  ;;  %v1568_v49 = vcombine.low %v99_v29, %v103_v30  ;;  %v1575_v50 = vcombine.high %v106_v41, %v110_v42  ;;  %v92_v30 = vld [vmem:[%s2551_s0 + $0x110] sm:$0xff]  ;;  %v105_v41 = vld [vmem:[%s2551_s0 + $0x178] sm:$0xff] }
  0x27   :  { %1927 = vmatprep.subr.bf16.mxu1 %v2027_v54  ;;  %v114_v54 = vld [vmem:[%s2551_s0 + $0x1c0] sm:$0xff] }
  0x28   :  { %1864 = vmatpush3.bf16.msra.mxu0 %v2026_v52  ;;  %v1577_v52 = vcombine.high %v107_v44, %v111_v45 }
  0x29   :  { %1928 = vmatpush3.bf16.msra.mxu1 %v2028_v55  ;;  %1865 = vmatprep.subr.bf16.mxu0 %v2029_v62  ;;  %v118_v55 = vld [vmem:[%s2551_s0 + $0x1e0] sm:$0xff]  ;;  %v60_v62 = vld [vmem:[%s2551_s0 + $0x10] sm:$0xff] }
  0x2a   :  { %1929 = vmatprep.subr.bf16.mxu1 %v2031_v0  ;;  %v61_v0 = vld [vmem:[%s2551_s0 + $0x18] sm:$0xff] }
  0x2b   :  { %995 = vmatmul.mubr.bf16.gmra.mrb[4].mxu0 %v1534_v51  ;;  %v2051_v51 = vld [vmem:[%s2550_s1 + $0x1f8] sm:$0xff]  }
  0x2c   :  { %1092 = vmatmul.mubr.bf16.gmra.mrb[4].mxu1 %v1536_v53  ;;  %1002 = vmatprep.mubr.bf16.mxu0 %v1543_v60  ;;  %v2052_v53 = vld [vmem:[%s2550_s1 + $0x1b8] sm:$0xff]   ;;  %v1583_v60 = vcombine.high %v114_v54, %v118_v55 }
  0x2d   :  { %1099 = vmatprep.mubr.bf16.mxu1 %v1545_v61  ;;  %1866 = vmatpush3.bf16.msra.mxu0 %v2030_v63  ;;  %v1585_v61 = vcombine.high %v115_v56, %v119_v57  ;;  %v64_v63 = vld [vmem:[%s2551_s0 + $0x30] sm:$0xff]  ;;  %v117_v56 = vld [vmem:[%s2551_s0 + $0x1d8] sm:$0xff] }
  0x2e   :  { %1930 = vmatpush3.bf16.msra.mxu1 %v2032_v1  ;;  %1867 = vmatprep.subr.bf16.mxu0 %v2033_v10  ;;  %v65_v1 = vld [vmem:[%s2551_s0 + $0x38] sm:$0xff]  ;;  %v1531_v4 = vcombine.high %v60_v62, %v64_v63  ;;  %v1530_v10 = vcombine.low %v60_v62, %v64_v63 }
  0x2f   :  { %1931 = vmatprep.subr.bf16.mxu1 %v2035_v12  ;;  %v1533_v5 = vcombine.high %v61_v0, %v65_v1  ;;  %v121_v57 = vld [vmem:[%s2551_s0 + $0x1f8] sm:$0xff] }
  0x30   :  { %v1588_v63 = vcombine.low %v117_v56, %v121_v57 }
  0x31   :  { %1868 = vmatpush3.bf16.msra.mxu0 %v2034_v11  ;;  %v1532_v11 = vcombine.low %v61_v0, %v65_v1 }
  0x32   :  { %1932 = vmatpush3.bf16.msra.mxu1 %v2036_v13  ;;  %1869 = vmatprep.subr.bf16.mxu0 %v2037_v18 }
  0x33   :  { %1003 = vmatmul.mubr.bf16.gmra.mrb[8].mxu0 %v1542_v2  ;;  %1933 = vmatprep.subr.bf16.mxu1 %v2039_v23  ;;  %v1582_v2 = vcombine.low %v114_v54, %v118_v55  ;;  %v88_v23 = vld [vmem:[%s2551_s0 + $0xf0] sm:$0xff] }
  0x34   :  { %1100 = vmatmul.mubr.bf16.gmra.mrb[8].mxu1 %v1544_v6  ;;  %1010 = vmatprep.mubr.bf16.mxu0 %v1551_v7  ;;  %v68_v6 = vld [vmem:[%s2551_s0 + $0x50] sm:$0xff] }
  0x35   :  { %1107 = vmatprep.mubr.bf16.mxu1 %v1553_v9  ;;  %1870 = vmatpush3.bf16.msra.mxu0 %v2038_v20  ;;  %v72_v7 = vld [vmem:[%s2551_s0 + $0x70] sm:$0xff]  ;;  %v73_v9 = vld [vmem:[%s2551_s0 + $0x78] sm:$0xff]  ;;  %v1547_v20 = vcombine.high %v76_v14, %v80_v15 }
  0x36   :  { %1934 = vmatpush3.bf16.msra.mxu1 %v2040_v25  ;;  %1871 = vmatprep.subr.bf16.mxu0 %v2041_v28  ;;  %v1539_v12 = vcombine.high %v68_v6, %v72_v7  ;;  %v1541_v13 = vcombine.high %v69_v8, %v73_v9  ;;  %v1538_v18 = vcombine.low %v68_v6, %v72_v7  ;;  %v89_v25 = vld [vmem:[%s2551_s0 + $0xf8] sm:$0xff]  ;;  %v116_v54 = vld [vmem:[%s2551_s0 + $0x1d0] sm:$0xff] }
  0x37   :  { %1935 = vmatprep.subr.bf16.mxu1 %v2043_v32  ;;  %v93_v32 = vld [vmem:[%s2551_s0 + $0x118] sm:$0xff]  ;;  %v120_v55 = vld [vmem:[%s2551_s0 + $0x1f0] sm:$0xff] }
  0x38   :  { %v1586_v62 = vcombine.low %v116_v54, %v120_v55 }
  0x39   :  { %1872 = vmatpush3.bf16.msra.mxu0 %v2042_v31  ;;  %v96_v31 = vld [vmem:[%s2551_s0 + $0x130] sm:$0xff] }
  0x3a   :  { %1936 = vmatpush3.bf16.msra.mxu1 %v2044_v33  ;;  %1873 = vmatprep.subr.bf16.mxu0 %v2045_v38  ;;  %v97_v33 = vld [vmem:[%s2551_s0 + $0x138] sm:$0xff]  ;;  %v100_v38 = vld [vmem:[%s2551_s0 + $0x150] sm:$0xff]  ;;  %v1562_v42 = vcombine.low %v92_v30, %v96_v31 }
  0x3b   :  { %1011 = vmatmul.mubr.bf16.gmra.mrb[12].mxu0 %v1550_v19  ;;  %1937 = vmatprep.subr.bf16.mxu1 %v2047_v40  ;;  %v1540_v19 = vcombine.low %v69_v8, %v73_v9  ;;  %v101_v40 = vld [vmem:[%s2551_s0 + $0x158] sm:$0xff] }
  0x3c   :  { %1108 = vmatmul.mubr.bf16.gmra.mrb[12].mxu1 %v1552_v21  ;;  %1018 = vmatprep.mubr.bf16.mxu0 %v1559_v22  ;;  %v1549_v21 = vcombine.high %v77_v16, %v81_v17  ;;  %v84_v22 = vld [vmem:[%s2551_s0 + $0xd0] sm:$0xff]  ;;  %v1573_v45 = vcombine.high %v101_v40, %v105_v41 }
  0x3d   :  { %1115 = vmatprep.mubr.bf16.mxu1 %v1561_v24  ;;  %1874 = vmatpush3.bf16.msra.mxu0 %v2046_v39  ;;  %v85_v24 = vld [vmem:[%s2551_s0 + $0xd8] sm:$0xff]  ;;  %v1555_v28 = vcombine.high %v84_v22, %v88_v23  ;;  %v104_v39 = vld [vmem:[%s2551_s0 + $0x170] sm:$0xff] }
  0x3e   :  { %1938 = vmatpush3.bf16.msra.mxu1 %v2048_v43  ;;  %1875 = vmatprep.subr.bf16.mxu0 %v2049_v46  ;;  %v1557_v29 = vcombine.high %v85_v24, %v89_v25  ;;  %v1564_v43 = vcombine.low %v93_v32, %v97_v33  ;;  %v1571_v44 = vcombine.high %v100_v38, %v104_v39  ;;  %v108_v46 = vld [vmem:[%s2551_s0 + $0x190] sm:$0xff] }
  0x3f   :  { %1939 = vmatprep.subr.bf16.mxu1 %v2051_v51  ;;  %v1572_v51 = vcombine.low %v101_v40, %v105_v41 }
  0x41   :  { %1876 = vmatpush3.bf16.msra.mxu0 %v2050_v48  ;;  %v109_v48 = vld [vmem:[%s2551_s0 + $0x198] sm:$0xff] }
  0x42   :  { %1940 = vmatpush3.bf16.msra.mxu1 %v2052_v53 }
  0x43   :  { %1019 = vmatmul.mubr.bf16.gmra.mrb[16].mxu0 %v1558_v34  ;;  %v1554_v34 = vcombine.low %v84_v22, %v88_v23 }
  0x44   :  { %1116 = vmatmul.mubr.bf16.gmra.mrb[16].mxu1 %v1560_v35  ;;  %1026 = vmatprep.mubr.bf16.mxu0 %v1567_v36  ;;  %v1556_v35 = vcombine.low %v85_v24, %v89_v25  ;;  %v1563_v36 = vcombine.high %v92_v30, %v96_v31 }
  0x45   :  { %1123 = vmatprep.mubr.bf16.mxu1 %v1569_v37  ;;  %v1565_v37 = vcombine.high %v93_v32, %v97_v33 }
  0x4b   :  { %1027 = vmatmul.mubr.bf16.gmra.mrb[20].mxu0 %v1566_v47  ;;  %v112_v47 = vld [vmem:[%s2551_s0 + $0x1b0] sm:$0xff] }
  0x4c   :  { %1124 = vmatmul.mubr.bf16.gmra.mrb[20].mxu1 %v1568_v49  ;;  %1034 = vmatprep.mubr.bf16.mxu0 %v1575_v50  ;;  %v113_v49 = vld [vmem:[%s2551_s0 + $0x1b8] sm:$0xff]  ;;  %v1570_v50 = vcombine.low %v100_v38, %v104_v39 }
  0x4d   :  { %1131 = vmatprep.mubr.bf16.mxu1 %v1577_v52  ;;  %v1579_v52 = vcombine.high %v108_v46, %v112_v47  ;;  %v1581_v53 = vcombine.high %v109_v48, %v113_v49 }
  0x53   :  { %1035 = vmatmul.mubr.bf16.gmra.mrb[24].mxu0 %v1574_v58  ;;  %v1578_v58 = vcombine.low %v108_v46, %v112_v47 }
  0x54   :  { %1132 = vmatmul.mubr.bf16.gmra.mrb[24].mxu1 %v1576_v59  ;;  %1042 = vmatprep.mubr.bf16.mxu0 %v1583_v60  ;;  %v1580_v59 = vcombine.low %v109_v48, %v113_v49  ;;  %v1587_v60 = vcombine.high %v116_v54, %v120_v55 }
  0x55   :  { %1139 = vmatprep.mubr.bf16.mxu1 %v1585_v61  ;;  %v1589_v61 = vcombine.high %v117_v56, %v121_v57 }
  0x5b   :  { %1043 = vmatmul.mubr.bf16.gmra.mrb[28].mxu0 %v1582_v2 }
  0x5c   :  { %1140 = vmatmul.mubr.bf16.gmra.mrb[28].mxu1 %v1584_v3  ;;  %1180 = vmatprep.mubr.bf16.mxu0 %v1531_v4 }
  0x5d   :  { %1277 = vmatprep.mubr.bf16.mxu1 %v1533_v5 }
  0x63   :  { %1181 = vmatmul.mubr.bf16.vlgmr.msra.gmra.mrb[32].mxu0 %v1530_v10 }
  0x64   :  { %1278 = vmatmul.mubr.bf16.vlgmr.msra.gmra.mrb[32].mxu1 %v1532_v11  ;;  %1188 = vmatprep.mubr.bf16.mxu0 %v1539_v12 }
  0x65   :  { %1285 = vmatprep.mubr.bf16.mxu1 %v1541_v13 }
  0x6b   :  { %1189 = vmatmul.mubr.bf16.gmra.mrb[36].mxu0 %v1538_v18 }
  0x6c   :  { %1286 = vmatmul.mubr.bf16.gmra.mrb[36].mxu1 %v1540_v19  ;;  %1196 = vmatprep.mubr.bf16.mxu0 %v1547_v20 }
  0x6d   :  { %1293 = vmatprep.mubr.bf16.mxu1 %v1549_v21 }
  0x73   :  { %1197 = vmatmul.mubr.bf16.gmra.mrb[40].mxu0 %v1546_v26 }
  0x74   :  { %1294 = vmatmul.mubr.bf16.gmra.mrb[40].mxu1 %v1548_v27  ;;  %1204 = vmatprep.mubr.bf16.mxu0 %v1555_v28 }
  0x75   :  { %1301 = vmatprep.mubr.bf16.mxu1 %v1557_v29 }
  0x7b   :  { %1205 = vmatmul.mubr.bf16.gmra.mrb[44].mxu0 %v1554_v34 }
  0x7c   :  { %1302 = vmatmul.mubr.bf16.gmra.mrb[44].mxu1 %v1556_v35  ;;  %1212 = vmatprep.mubr.bf16.mxu0 %v1563_v36 }
  0x7d   :  { %1309 = vmatprep.mubr.bf16.mxu1 %v1565_v37 }
  0x83   :  { %1213 = vmatmul.mubr.bf16.gmra.mrb[48].mxu0 %v1562_v42 }
  0x84   :  { %1310 = vmatmul.mubr.bf16.gmra.mrb[48].mxu1 %v1564_v43  ;;  %1220 = vmatprep.mubr.bf16.mxu0 %v1571_v44 }
  0x85   :  { %1317 = vmatprep.mubr.bf16.mxu1 %v1573_v45 }
  0x8b   :  { %1221 = vmatmul.mubr.bf16.gmra.mrb[52].mxu0 %v1570_v50 }
  0x8c   :  { %1318 = vmatmul.mubr.bf16.gmra.mrb[52].mxu1 %v1572_v51  ;;  %1228 = vmatprep.mubr.bf16.mxu0 %v1579_v52 }
  0x8d   :  { %1325 = vmatprep.mubr.bf16.mxu1 %v1581_v53 }
  0x93   :  { %1229 = vmatmul.mubr.bf16.gmra.mrb[56].mxu0 %v1578_v58 }
  0x94   :  { %1326 = vmatmul.mubr.bf16.gmra.mrb[56].mxu1 %v1580_v59  ;;  %1236 = vmatprep.mubr.bf16.mxu0 %v1587_v60 }
  0x95   :  { %1333 = vmatprep.mubr.bf16.mxu1 %v1589_v61 }
  0x9b   :  { %1237 = vmatmul.mubr.bf16.gmra.mrb[60].mxu0 %v1586_v62 }
  0x9c   :  { %1334 = vmatmul.mubr.bf16.gmra.mrb[60].mxu1 %v1588_v63 }
  0xf6   :  { %v1749_v0 = vpop.f32.mrb[0].mxu0 }
  0xf7   :  { %v1813_v1 = vpop.f32.mrb[0].mxu1  ;;  %v1750_v2 = vpop.f32.mrb[1].mxu0 }
  0xf8   :  { %v1751_v3 = vadd.f32 %v1750_v2, %v1749_v0  ;;  %v1814_v4 = vpop.f32.mrb[1].mxu1  ;;  %v1752_v5 = vpop.f32.mrb[2].mxu0 }
  0xf9   :  { %v1815_v6 = vadd.f32 %v1814_v4, %v1813_v1  ;;  %v1816_v7 = vpop.f32.mrb[2].mxu1  ;;  %v1753_v8 = vpop.f32.mrb[3].mxu0 }
  0xfa   :  { %v1754_v9 = vadd.f32 %v1753_v8, %v1752_v5  ;;  %v1817_v10 = vpop.f32.mrb[3].mxu1 }
  0xfb   :  { %v2457_v11 = vadd.f32 %v1815_v6, %v1751_v3  ;;  %v1818_v12 = vadd.f32 %v1817_v10, %v1816_v7 }
  0xfd   :  { %v2459_v13 = vadd.f32 %v1818_v12, %v1754_v9 }
  0xfe   :  { %v1755_v14 = vpop.f32.mrb[4].mxu0 }
  0xff   :  { %v1819_v15 = vpop.f32.mrb[4].mxu1  ;;  %v1756_v16 = vpop.f32.mrb[5].mxu0 }
 0x100   :  { %v1757_v17 = vadd.f32 %v1756_v16, %v1755_v14  ;;  %v1820_v18 = vpop.f32.mrb[5].mxu1  ;;  %v1758_v19 = vpop.f32.mrb[6].mxu0 }
 0x101   :  { %v1821_v20 = vadd.f32 %v1820_v18, %v1819_v15  ;;  %v1822_v21 = vpop.f32.mrb[6].mxu1  ;;  %v1759_v22 = vpop.f32.mrb[7].mxu0 }
 0x102   :  { %v1760_v23 = vadd.f32 %v1759_v22, %v1758_v19  ;;  %v1823_v24 = vpop.f32.mrb[7].mxu1 }
 0x103   :  { %v2461_v25 = vadd.f32 %v1821_v20, %v1757_v17  ;;  %v1824_v26 = vadd.f32 %v1823_v24, %v1822_v21 }
 0x105   :  { %v2463_v27 = vadd.f32 %v1824_v26, %v1760_v23 }
 0x106   :  { %v1761_v28 = vpop.f32.mrb[8].mxu0 }
 0x107   :  { %v1825_v29 = vpop.f32.mrb[8].mxu1  ;;  %v1762_v30 = vpop.f32.mrb[9].mxu0 }
 0x108   :  { %v1763_v31 = vadd.f32 %v1762_v30, %v1761_v28  ;;  %v1826_v32 = vpop.f32.mrb[9].mxu1  ;;  %v1764_v33 = vpop.f32.mrb[10].mxu0 }
 0x109   :  { %v1827_v34 = vadd.f32 %v1826_v32, %v1825_v29  ;;  %v1828_v35 = vpop.f32.mrb[10].mxu1  ;;  %v1765_v36 = vpop.f32.mrb[11].mxu0 }
 0x10a   :  { %v1766_v37 = vadd.f32 %v1765_v36, %v1764_v33  ;;  %v1829_v38 = vpop.f32.mrb[11].mxu1 }
 0x10b   :  { %v2465_v39 = vadd.f32 %v1827_v34, %v1763_v31  ;;  %v1830_v40 = vadd.f32 %v1829_v38, %v1828_v35 }
 0x10d   :  { %v2467_v41 = vadd.f32 %v1830_v40, %v1766_v37 }
 0x10e   :  { %v1767_v42 = vpop.f32.mrb[12].mxu0 }
 0x10f   :  { %v1831_v43 = vpop.f32.mrb[12].mxu1  ;;  %v1768_v44 = vpop.f32.mrb[13].mxu0 }
 0x110   :  { %v1769_v45 = vadd.f32 %v1768_v44, %v1767_v42  ;;  %v1832_v46 = vpop.f32.mrb[13].mxu1  ;;  %v1770_v47 = vpop.f32.mrb[14].mxu0 }
 0x111   :  { %v1833_v48 = vadd.f32 %v1832_v46, %v1831_v43  ;;  %v1834_v49 = vpop.f32.mrb[14].mxu1  ;;  %v1771_v50 = vpop.f32.mrb[15].mxu0 }
 0x112   :  { %v1772_v51 = vadd.f32 %v1771_v50, %v1770_v47  ;;  %v1835_v52 = vpop.f32.mrb[15].mxu1 }
 0x113   :  { %v2469_v53 = vadd.f32 %v1833_v48, %v1769_v45  ;;  %v1836_v54 = vadd.f32 %v1835_v52, %v1834_v49 }
 0x115   :  { %v2471_v55 = vadd.f32 %v1836_v54, %v1772_v51 }
 0x116   :  { %v1773_v56 = vpop.f32.mrb[16].mxu0 }
 0x117   :  { %v1837_v57 = vpop.f32.mrb[16].mxu1  ;;  %v1774_v58 = vpop.f32.mrb[17].mxu0 }
 0x118   :  { %v1775_v59 = vadd.f32 %v1774_v58, %v1773_v56  ;;  %v1838_v60 = vpop.f32.mrb[17].mxu1  ;;  %v1776_v61 = vpop.f32.mrb[18].mxu0 }
 0x119   :  { %v1839_v62 = vadd.f32 %v1838_v60, %v1837_v57  ;;  %v1840_v63 = vpop.f32.mrb[18].mxu1  ;;  %v1777_v0 = vpop.f32.mrb[19].mxu0 }
 0x11a   :  { %v1778_v1 = vadd.f32 %v1777_v0, %v1776_v61  ;;  %v1841_v2 = vpop.f32.mrb[19].mxu1 }
 0x11b   :  { %v2473_v3 = vadd.f32 %v1839_v62, %v1775_v59  ;;  %v1842_v4 = vadd.f32 %v1841_v2, %v1840_v63 }
 0x11d   :  { %v2475_v5 = vadd.f32 %v1842_v4, %v1778_v1 }
 0x11e   :  { %v1779_v6 = vpop.f32.mrb[20].mxu0 }
 0x11f   :  { %v1843_v7 = vpop.f32.mrb[20].mxu1  ;;  %v1780_v8 = vpop.f32.mrb[21].mxu0 }
 0x120   :  { %v1781_v9 = vadd.f32 %v1780_v8, %v1779_v6  ;;  %v1844_v10 = vpop.f32.mrb[21].mxu1  ;;  %v1782_v12 = vpop.f32.mrb[22].mxu0  ;;  %v2493_v6 = vld [vmem:[%s2552_s2] ss:$0 sm:$0xff] }
 0x121   :  { %v1845_v14 = vadd.f32 %v1844_v10, %v1843_v7  ;;  %v1846_v15 = vpop.f32.mrb[22].mxu1  ;;  %v1783_v16 = vpop.f32.mrb[23].mxu0 }
 0x122   :  { %v1784_v17 = vadd.f32 %v1783_v16, %v1782_v12  ;;  %v1847_v18 = vpop.f32.mrb[23].mxu1 }
 0x123   :  { %v2477_v19 = vadd.f32 %v1845_v14, %v1781_v9  ;;  %v1848_v20 = vadd.f32 %v1847_v18, %v1846_v15 }
 0x125   :  { %v2479_v21 = vadd.f32 %v1848_v20, %v1784_v17 }
 0x126   :  { %v1785_v22 = vpop.f32.mrb[24].mxu0 }
 0x127   :  { %v1849_v23 = vpop.f32.mrb[24].mxu1  ;;  %v1786_v24 = vpop.f32.mrb[25].mxu0 }
 0x128   :  { %v1787_v26 = vadd.f32 %v1786_v24, %v1785_v22  ;;  %v1850_v28 = vpop.f32.mrb[25].mxu1  ;;  %v1788_v29 = vpop.f32.mrb[26].mxu0 }
 0x129   :  { %v1851_v30 = vadd.f32 %v1850_v28, %v1849_v23  ;;  %v1852_v31 = vpop.f32.mrb[26].mxu1  ;;  %v1789_v32 = vpop.f32.mrb[27].mxu0 }
 0x12a   :  { %v1790_v33 = vadd.f32 %v1789_v32, %v1788_v29  ;;  %v1853_v34 = vpop.f32.mrb[27].mxu1 }
 0x12b   :  { %v2481_v35 = vadd.f32 %v1851_v30, %v1787_v26  ;;  %v1854_v36 = vadd.f32 %v1853_v34, %v1852_v31 }
 0x12d   :  { %v2483_v37 = vadd.f32 %v1854_v36, %v1790_v33 }
 0x12e   :  { %v1791_v38 = vpop.f32.mrb[28].mxu0 }
 0x12f   :  { %v1855_v40 = vpop.f32.mrb[28].mxu1  ;;  %v1792_v42 = vpop.f32.mrb[29].mxu0 }
 0x130   :  { %v1793_v43 = vadd.f32 %v1792_v42, %v1791_v38  ;;  %v1856_v44 = vpop.f32.mrb[29].mxu1  ;;  %v1794_v45 = vpop.f32.mrb[30].mxu0 }
 0x131   :  { %v1857_v46 = vadd.f32 %v1856_v44, %v1855_v40  ;;  %v1858_v47 = vpop.f32.mrb[30].mxu1  ;;  %v1795_v48 = vpop.f32.mrb[31].mxu0 }
 0x132   :  { %v1796_v49 = vadd.f32 %v1795_v48, %v1794_v45  ;;  %v1859_v50 = vpop.f32.mrb[31].mxu1 }
 0x133   :  { %v2485_v51 = vadd.f32 %v1857_v46, %v1793_v43  ;;  %v1860_v52 = vadd.f32 %v1859_v50, %v1858_v47 }
 0x135   :  { %v2487_v54 = vadd.f32 %v1860_v52, %v1796_v49 }
 0x136   :  { %v1877_v56 = vpop.f32.mrb[32].mxu0 }
 0x137   :  { %v1941_v57 = vpop.f32.mrb[32].mxu1  ;;  %v1878_v58 = vpop.f32.mrb[33].mxu0 }
 0x138   :  { %v1879_v59 = vadd.f32 %v1878_v58, %v1877_v56  ;;  %v1942_v60 = vpop.f32.mrb[33].mxu1  ;;  %v1880_v61 = vpop.f32.mrb[34].mxu0 }
 0x139   :  { %v1943_v62 = vadd.f32 %v1942_v60, %v1941_v57  ;;  %v1944_v63 = vpop.f32.mrb[34].mxu1  ;;  %v1881_v0 = vpop.f32.mrb[35].mxu0 }
 0x13a   :  { %v1183_v1 = vadd.f32 %v1879_v59, %v2457_v11  ;;  %v1882_v2 = vadd.f32 %v1881_v0, %v1880_v61  ;;  %v1945_v4 = vpop.f32.mrb[35].mxu1 }
 0x13b   :  { %v1946_v7 = vadd.f32 %v1945_v4, %v1944_v63 }
 0x13c   :  { %v1280_v8 = vadd.f32 %v1943_v62, %v1183_v1  ;;  %v1186_v9 = vadd.f32 %v1882_v2, %v2459_v13 }
 0x13e   :  { %v1342_v10 = vadd.f32 %v2493_v6, %v1280_v8  ;;  %v1283_v12 = vadd.f32 %v1946_v7, %v1186_v9  ;;  %v1883_v14 = vpop.f32.mrb[36].mxu0 }
 0x13f   :  { %v1947_v15 = vpop.f32.mrb[36].mxu1  ;;  %v1884_v16 = vpop.f32.mrb[37].mxu0 }
 0x140   :  { %v1409_v17 = vmul.f32 0.3, %v1342_v10  ;;  %v1343_v11 = vadd.f32 %v2493_v6, %v1283_v12  ;;  %v1885_v18 = vadd.f32 %v1884_v16, %v1883_v14  ;;  %v1948_v20 = vpop.f32.mrb[37].mxu1  ;;  %v1886_v22 = vpop.f32.mrb[38].mxu0  ;;  %vm1393_vm0 = vcmp.gt.f32.partialorder %v1342_v10, 0.0 }
 0x141   :  { %v1949_v23 = vadd.f32 %v1948_v20, %v1947_v15  ;;  %v1950_v24 = vpop.f32.mrb[38].mxu1  ;;  %v1887_v26 = vpop.f32.mrb[39].mxu0 }
 0x142   :  { %vm1394_vm1 = vcmp.gt.f32.partialorder %v1343_v11, 0.0  ;;  %v1410_v28 = vmul.f32 0.3, %v1343_v11  ;;  %v1191_v13 = vadd.f32 %v1885_v18, %v2461_v25  ;;  %v1951_v29 = vpop.f32.mrb[39].mxu1  ;;  %v1888_v30 = vadd.f32 %v1887_v26, %v1886_v22 }
 0x143   :  { %v1952_v31 = vadd.f32 %v1951_v29, %v1950_v24  ;;  %v1425_v32 = vsel %vm1393_vm0, %v1342_v10, %v1409_v17 }
 0x144   :  { %v1426_v33 = vsel %vm1394_vm1, %v1343_v11, %v1410_v28  ;;  %v1288_v34 = vadd.f32 %v1949_v23, %v1191_v13  ;;  %v1194_v38 = vadd.f32 %v1888_v30, %v2463_v27 }
 0x145   :  { %v1689_v36 = vpack.c.bf16 %v1426_v33, %v1425_v32 }
 0x146   :  { %v1344_v40 = vadd.f32 %v2493_v6, %v1288_v34  ;;  %v1889_v42 = vpop.f32.mrb[40].mxu0  ;;  %v1291_v43 = vadd.f32 %v1952_v31, %v1194_v38 }
 0x147   :  { %1690 = vst [vmem:[%s2553_s3] sm:$0xff] %v1689_v36   ;;  %v1953_v44 = vpop.f32.mrb[40].mxu1  ;;  %v1890_v45 = vpop.f32.mrb[41].mxu0 }
 0x148   :  { %v1891_v25 = vadd.f32 %v1890_v45, %v1889_v42  ;;  %v1954_v46 = vpop.f32.mrb[41].mxu1  ;;  %v1892_v47 = vpop.f32.mrb[42].mxu0  ;;  %v1411_v48 = vmul.f32 0.3, %v1344_v40  ;;  %v1345_v49 = vadd.f32 %v2493_v6, %v1291_v43  ;;  %vm1395_vm2 = vcmp.gt.f32.partialorder %v1344_v40, 0.0 }
 0x149   :  { %v1955_v50 = vadd.f32 %v1954_v46, %v1953_v44  ;;  %v1956_v52 = vpop.f32.mrb[42].mxu1  ;;  %v1893_v56 = vpop.f32.mrb[43].mxu0 }
 0x14a   :  { %v1199_v27 = vadd.f32 %v1891_v25, %v2465_v39  ;;  %v1894_v57 = vadd.f32 %v1893_v56, %v1892_v47  ;;  %v1957_v58 = vpop.f32.mrb[43].mxu1  ;;  %vm1396_vm3 = vcmp.gt.f32.partialorder %v1345_v49, 0.0  ;;  %v1412_v59 = vmul.f32 0.3, %v1345_v49 }
 0x14b   :  { %v1958_v60 = vadd.f32 %v1957_v58, %v1956_v52  ;;  %v1427_v63 = vsel %vm1395_vm2, %v1344_v40, %v1411_v48 }
 0x14c   :  { %v1296_v61 = vadd.f32 %v1955_v50, %v1199_v27  ;;  %v1202_v62 = vadd.f32 %v1894_v57, %v2467_v41  ;;  %v1428_v0 = vsel %vm1396_vm3, %v1345_v49, %v1412_v59 }
 0x14d   :  { %v1694_v1 = vpack.c.bf16 %v1428_v0, %v1427_v63 }
 0x14e   :  { %v1346_v2 = vadd.f32 %v2493_v6, %v1296_v61  ;;  %v1299_v4 = vadd.f32 %v1958_v60, %v1202_v62  ;;  %v1895_v7 = vpop.f32.mrb[44].mxu0 }
 0x14f   :  { %v1959_v8 = vpop.f32.mrb[44].mxu1  ;;  %v1896_v9 = vpop.f32.mrb[45].mxu0  ;;  %1726 = vst [vmem:[%s2553_s3 + $0x8] sm:$0xff] %v1694_v1  }
 0x150   :  { %v1413_v39 = vmul.f32 0.3, %v1346_v2  ;;  %v1347_v10 = vadd.f32 %v2493_v6, %v1299_v4  ;;  %v1897_v12 = vadd.f32 %v1896_v9, %v1895_v7  ;;  %v1960_v14 = vpop.f32.mrb[45].mxu1  ;;  %v1898_v15 = vpop.f32.mrb[46].mxu0  ;;  %vm1397_vm4 = vcmp.gt.f32.partialorder %v1346_v2, 0.0 }
 0x151   :  { %v1961_v41 = vadd.f32 %v1960_v14, %v1959_v8  ;;  %v1962_v16 = vpop.f32.mrb[46].mxu1  ;;  %v1899_v17 = vpop.f32.mrb[47].mxu0 }
 0x152   :  { %vm1398_vm5 = vcmp.gt.f32.partialorder %v1347_v10, 0.0  ;;  %v1414_v11 = vmul.f32 0.3, %v1347_v10  ;;  %v1207_v18 = vadd.f32 %v1897_v12, %v2469_v53  ;;  %v1963_v20 = vpop.f32.mrb[47].mxu1  ;;  %v1900_v22 = vadd.f32 %v1899_v17, %v1898_v15 }
 0x153   :  { %v1964_v23 = vadd.f32 %v1963_v20, %v1962_v16  ;;  %v1429_v24 = vsel %vm1397_vm4, %v1346_v2, %v1413_v39 }
 0x154   :  { %v1430_v26 = vsel %vm1398_vm5, %v1347_v10, %v1414_v11  ;;  %v1304_v28 = vadd.f32 %v1961_v41, %v1207_v18  ;;  %v1210_v29 = vadd.f32 %v1900_v22, %v2471_v55 }
 0x155   :  { %v1699_v13 = vpack.c.bf16 %v1430_v26, %v1429_v24 }
 0x156   :  { %v1348_v30 = vadd.f32 %v2493_v6, %v1304_v28  ;;  %v1901_v31 = vpop.f32.mrb[48].mxu0  ;;  %v1307_v32 = vadd.f32 %v1964_v23, %v1210_v29 }
 0x157   :  { %1727 = vst [vmem:[%s2553_s3 + $0x10] sm:$0xff] %v1699_v13   ;;  %v1965_v33 = vpop.f32.mrb[48].mxu1  ;;  %v1902_v34 = vpop.f32.mrb[49].mxu0 }
 0x158   :  { %v1903_v53 = vadd.f32 %v1902_v34, %v1901_v31  ;;  %v1966_v36 = vpop.f32.mrb[49].mxu1  ;;  %v1904_v38 = vpop.f32.mrb[50].mxu0  ;;  %v1415_v40 = vmul.f32 0.3, %v1348_v30  ;;  %v1349_v42 = vadd.f32 %v2493_v6, %v1307_v32  ;;  %vm1399_vm6 = vcmp.gt.f32.partialorder %v1348_v30, 0.0 }
 0x159   :  { %v1967_v43 = vadd.f32 %v1966_v36, %v1965_v33  ;;  %v1968_v44 = vpop.f32.mrb[50].mxu1  ;;  %v1905_v45 = vpop.f32.mrb[51].mxu0 }
 0x15a   :  { %v1215_v55 = vadd.f32 %v1903_v53, %v2473_v3  ;;  %v1906_v25 = vadd.f32 %v1905_v45, %v1904_v38  ;;  %v1969_v46 = vpop.f32.mrb[51].mxu1  ;;  %vm1400_vm7 = vcmp.gt.f32.partialorder %v1349_v42, 0.0  ;;  %v1416_v47 = vmul.f32 0.3, %v1349_v42 }
 0x15b   :  { %v1970_v48 = vadd.f32 %v1969_v46, %v1968_v44  ;;  %v1431_v52 = vsel %vm1399_vm6, %v1348_v30, %v1415_v40 }
 0x15c   :  { %v1312_v49 = vadd.f32 %v1967_v43, %v1215_v55  ;;  %v1218_v50 = vadd.f32 %v1906_v25, %v2475_v5  ;;  %v1432_v56 = vsel %vm1400_vm7, %v1349_v42, %v1416_v47 }
 0x15d   :  { %v1704_v27 = vpack.c.bf16 %v1432_v56, %v1431_v52 }
 0x15e   :  { %v1350_v57 = vadd.f32 %v2493_v6, %v1312_v49  ;;  %v1315_v58 = vadd.f32 %v1970_v48, %v1218_v50  ;;  %v1907_v59 = vpop.f32.mrb[52].mxu0 }
 0x15f   :  { %v1971_v60 = vpop.f32.mrb[52].mxu1  ;;  %v1908_v61 = vpop.f32.mrb[53].mxu0  ;;  %1728 = vst [vmem:[%s2553_s3 + $0x18] sm:$0xff] %v1704_v27  }
 0x160   :  { %v1417_v3 = vmul.f32 0.3, %v1350_v57  ;;  %v1351_v62 = vadd.f32 %v2493_v6, %v1315_v58  ;;  %v1909_v63 = vadd.f32 %v1908_v61, %v1907_v59  ;;  %v1972_v0 = vpop.f32.mrb[53].mxu1  ;;  %v1910_v1 = vpop.f32.mrb[54].mxu0  ;;  %vm1401_vm8 = vcmp.gt.f32.partialorder %v1350_v57, 0.0 }
 0x161   :  { %v1973_v5 = vadd.f32 %v1972_v0, %v1971_v60  ;;  %v1974_v2 = vpop.f32.mrb[54].mxu1  ;;  %v1911_v4 = vpop.f32.mrb[55].mxu0 }
 0x162   :  { %vm1402_vm9 = vcmp.gt.f32.partialorder %v1351_v62, 0.0  ;;  %v1418_v7 = vmul.f32 0.3, %v1351_v62  ;;  %v1223_v8 = vadd.f32 %v1909_v63, %v2477_v19  ;;  %v1975_v9 = vpop.f32.mrb[55].mxu1  ;;  %v1912_v39 = vadd.f32 %v1911_v4, %v1910_v1 }
 0x163   :  { %v1976_v10 = vadd.f32 %v1975_v9, %v1974_v2  ;;  %v1433_v12 = vsel %vm1401_vm8, %v1350_v57, %v1417_v3 }
 0x164   :  { %v1434_v14 = vsel %vm1402_vm9, %v1351_v62, %v1418_v7  ;;  %v1320_v15 = vadd.f32 %v1973_v5, %v1223_v8  ;;  %v1226_v16 = vadd.f32 %v1912_v39, %v2479_v21 }
 0x165   :  { %v1709_v41 = vpack.c.bf16 %v1434_v14, %v1433_v12 }
 0x166   :  { %v1352_v17 = vadd.f32 %v2493_v6, %v1320_v15  ;;  %v1913_v11 = vpop.f32.mrb[56].mxu0  ;;  %v1323_v18 = vadd.f32 %v1976_v10, %v1226_v16 }
 0x167   :  { %1729 = vst [vmem:[%s2553_s3 + $0x20] sm:$0xff] %v1709_v41   ;;  %v1977_v20 = vpop.f32.mrb[56].mxu1  ;;  %v1914_v22 = vpop.f32.mrb[57].mxu0 }
 0x168   :  { %v1915_v19 = vadd.f32 %v1914_v22, %v1913_v11  ;;  %v1978_v23 = vpop.f32.mrb[57].mxu1  ;;  %v1916_v24 = vpop.f32.mrb[58].mxu0  ;;  %v1419_v26 = vmul.f32 0.3, %v1352_v17  ;;  %v1353_v28 = vadd.f32 %v2493_v6, %v1323_v18  ;;  %vm1403_vm10 = vcmp.gt.f32.partialorder %v1352_v17, 0.0 }
 0x169   :  { %v1979_v13 = vadd.f32 %v1978_v23, %v1977_v20  ;;  %v1980_v29 = vpop.f32.mrb[58].mxu1  ;;  %v1917_v30 = vpop.f32.mrb[59].mxu0 }
 0x16a   :  { %v1231_v21 = vadd.f32 %v1915_v19, %v2481_v35  ;;  %v1918_v31 = vadd.f32 %v1917_v30, %v1916_v24  ;;  %v1981_v32 = vpop.f32.mrb[59].mxu1  ;;  %vm1404_vm11 = vcmp.gt.f32.partialorder %v1353_v28, 0.0  ;;  %v1420_v33 = vmul.f32 0.3, %v1353_v28 }
 0x16b   :  { %v1982_v34 = vadd.f32 %v1981_v32, %v1980_v29  ;;  %v1435_v38 = vsel %vm1403_vm10, %v1352_v17, %v1419_v26 }
 0x16c   :  { %v1328_v53 = vadd.f32 %v1979_v13, %v1231_v21  ;;  %v1234_v36 = vadd.f32 %v1918_v31, %v2483_v37  ;;  %v1436_v40 = vsel %vm1404_vm11, %v1353_v28, %v1420_v33 }
 0x16d   :  { %v1714_v42 = vpack.c.bf16 %v1436_v40, %v1435_v38 }
 0x16e   :  { %v1354_v43 = vadd.f32 %v2493_v6, %v1328_v53  ;;  %v1331_v44 = vadd.f32 %v1982_v34, %v1234_v36  ;;  %v1919_v45 = vpop.f32.mrb[60].mxu0 }
 0x16f   :  { %v1983_v55 = vpop.f32.mrb[60].mxu1  ;;  %v1920_v25 = vpop.f32.mrb[61].mxu0  ;;  %1730 = vst [vmem:[%s2553_s3 + $0x28] sm:$0xff] %v1714_v42  }
 0x170   :  { %v1421_v35 = vmul.f32 0.3, %v1354_v43  ;;  %v1355_v46 = vadd.f32 %v2493_v6, %v1331_v44  ;;  %v1921_v47 = vadd.f32 %v1920_v25, %v1919_v45  ;;  %v1984_v48 = vpop.f32.mrb[61].mxu1  ;;  %v1922_v49 = vpop.f32.mrb[62].mxu0  ;;  %vm1405_vm12 = vcmp.gt.f32.partialorder %v1354_v43, 0.0 }
 0x171   :  { %v1985_v37 = vadd.f32 %v1984_v48, %v1983_v55  ;;  %v1986_v50 = vpop.f32.mrb[62].mxu1  ;;  %v1923_v52 = vpop.f32.mrb[63].mxu0 }
 0x172   :  { %vm1406_vm13 = vcmp.gt.f32.partialorder %v1355_v46, 0.0  ;;  %v1422_v56 = vmul.f32 0.3, %v1355_v46  ;;  %v1239_v27 = vadd.f32 %v1921_v47, %v2485_v51  ;;  %v1987_v57 = vpop.f32.mrb[63].mxu1  ;;  %v1924_v58 = vadd.f32 %v1923_v52, %v1922_v49 }
 0x173   :  { %v1988_v59 = vadd.f32 %v1987_v57, %v1986_v50  ;;  %v1437_v60 = vsel %vm1405_vm12, %v1354_v43, %v1421_v35 }
 0x174   :  { %v1438_v61 = vsel %vm1406_vm13, %v1355_v46, %v1422_v56  ;;  %v1336_v3 = vadd.f32 %v1985_v37, %v1239_v27  ;;  %v1242_v63 = vadd.f32 %v1924_v58, %v2487_v54 }
 0x175   :  { %v1719_v62 = vpack.c.bf16 %v1438_v61, %v1437_v60 }
 0x176   :  { %v1356_v0 = vadd.f32 %v2493_v6, %v1336_v3  ;;  %v1339_v1 = vadd.f32 %v1988_v59, %v1242_v63 }
 0x177   :  { %1731 = vst [vmem:[%s2553_s3 + $0x30] sm:$0xff] %v1719_v62  }
 0x178   :  { %v1423_v5 = vmul.f32 0.3, %v1356_v0  ;;  %v1357_v2 = vadd.f32 %v2493_v6, %v1339_v1  ;;  %vm1407_vm14 = vcmp.gt.f32.partialorder %v1356_v0, 0.0 }
 0x17a   :  { %vm1408_vm15 = vcmp.gt.f32.partialorder %v1357_v2, 0.0  ;;  %v1424_v51 = vmul.f32 0.3, %v1357_v2  ;;  %v1439_v4 = vsel %vm1407_vm14, %v1356_v0, %v1423_v5 }
 0x17c   :  { %v1440_v7 = vsel %vm1408_vm15, %v1357_v2, %v1424_v51 }
 0x17d   :  { %v1724_v8 = vpack.c.bf16 %v1440_v7, %v1439_v4 }
 0x17f   :  { %1732 = vst [vmem:[%s2553_s3 + $0x38] sm:$0xff] %v1724_v8  }

// kernel: discriminator_forward.7
= control target key start
LH: loop header
LB: loop body
LE: loop exit
PB: predicated region body
PF: predicated region fallthrough
CT: control target
= control target key end

     0   :  { %s2120_s12 = smov 0   ;;  %s2122_s13 = smov 0   ;;  %s2384_s0 = inlined_call_operand.vmem [shape: bf16[32,2048], index: 0, kind: input, shape index: {}]   ;;  %s2385_s1 = inlined_call_operand.vmem [shape: bf16[2048,256], index: 1, kind: input, shape index: {}]   ;;  %s2386_s2 = inlined_call_operand.vmem [shape: f32[1,256], index: 2, kind: input, shape index: {}]   ;;  %s2387_s3 = inlined_call_operand.vmem [shape: bf16[32,256], index: 3, kind: output, shape index: {}]  }
   0x1   :  { %s2124_s14 = smov 0   ;;  %s2126_s15 = smov 0  }
   0x2   :  { %s2128_s16 = smov 0  }
   0x3 LB: > { %s25_s17 = sadd.s32 1, %s2094_s15  ;;  %p48_p1 = scmp.ne.s32.totalorder %s2086_s13, %s2082_s12  ;;  %s2098_s16 = sphi %s2128_s16, %s13_s16   ;;  %s2094_s15 = sphi %s2126_s15, %s2391_s15   ;;  %s2090_s14 = sphi %s2124_s14, %s2390_s14   ;;  %s2086_s13 = sphi %s2122_s13, %s2389_s13   ;;  %s2082_s12 = sphi %s2120_s12, %s2388_s12  }
   0x4   : > { %p26_p0 = scmp.ge.s32.totalorder %s25_s17, 2  ;;  %p49_p2 = scmp.eq.s32.totalorder %s2098_s16, 0 }
   0x5   : > { %s41_s19 = sadd.s32 1, %s2086_s13  ;;  %p1635_p5 = scmp.ge.s32.totalorder %s2098_s16, 2 }
   0x6   : > { %s2393_s17 = smov (%p26_p0, %s25_s17), 0  ;;  %p50_p3 = por %p49_p2, %p48_p1 }
   0x7   : > { %s37_s18 = ssub.s32 %s2094_s15, %s2393_s17  ;;  %164 = sbr.rel (%p1635_p5) target bundleno = 26 (0x1a), region = 20 }
   0x8   : > { %p39_p4 = scmp.eq.s32.totalorder %s37_s18, 0 }
   0xa   : > { %s2155_s20 = scalar_select %p39_p4, %s2086_s13, %s41_s19  }
   0xe   : > { %167 = sbr.rel (!%p50_p3) target bundleno = 26 (0x1a), region = 24  ;;  %s169_s21 = sand.u32 (%p50_p3), 1, %s2086_s13  }
   0xf   : > { %s1798_s22 = sshll.u32 (%p50_p3), %s2094_s15, 5  ;;  %s1636_s23 = sshll.u32 (%p50_p3), %s169_s21, 7 }
  0x10   : > { %s2163_s26 = scalar_lea.vmem (%p50_p3), %s2384_s0, %s1798_s22  ;;  %s171_s27 = scalar_lea.vmem (%p50_p3), [#allocation3], %s1636_s23 }
  0x11   : > { %v190_v0 = vld [vmem:[%s2163_s26] sm:$0xff] (%p50_p3)  ;;  %v192_v1 = vld [vmem:[%s2163_s26 + $0x8] sm:$0xff] (%p50_p3)  ;;  %v194_v2 = vld [vmem:[%s2163_s26 + $0x10] sm:$0xff] (%p50_p3) }
  0x12   : > { %191 = vst [vmem:[%s171_s27] sm:$0xff] (%p50_p3), %v190_v0  ;;  %193 = vst [vmem:[%s171_s27 + $0x8] sm:$0xff] (%p50_p3), %v192_v1  ;;  %v196_v3 = vld [vmem:[%s2163_s26 + $0x18] sm:$0xff] (%p50_p3)  ;;  %v198_v4 = vld [vmem:[%s2163_s26 + $0x40] sm:$0xff] (%p50_p3) }
  0x13   : > { %195 = vst [vmem:[%s171_s27 + $0x10] sm:$0xff] (%p50_p3), %v194_v2  ;;  %v200_v5 = vld [vmem:[%s2163_s26 + $0x48] sm:$0xff] (%p50_p3)  ;;  %197 = vst [vmem:[%s171_s27 + $0x18] sm:$0xff] (%p50_p3), %v196_v3  ;;  %v202_v6 = vld [vmem:[%s2163_s26 + $0x50] sm:$0xff] (%p50_p3) }
  0x14   : > { %199 = vst [vmem:[%s171_s27 + $0x20] sm:$0xff] (%p50_p3), %v198_v4  ;;  %201 = vst [vmem:[%s171_s27 + $0x28] sm:$0xff] (%p50_p3), %v200_v5  ;;  %v204_v7 = vld [vmem:[%s2163_s26 + $0x58] sm:$0xff] (%p50_p3)  ;;  %v206_v8 = vld [vmem:[%s2163_s26 + $0x80] sm:$0xff] (%p50_p3) }
  0x15   : > { %203 = vst [vmem:[%s171_s27 + $0x30] sm:$0xff] %v202_v6  ;;  %205 = vst [vmem:[%s171_s27 + $0x38] sm:$0xff] %v204_v7  ;;  %v208_v9 = vld [vmem:[%s2163_s26 + $0x88] sm:$0xff]  ;;  %v210_v10 = vld [vmem:[%s2163_s26 + $0x90] sm:$0xff] }
  0x16   : > { %207 = vst [vmem:[%s171_s27 + $0x40] sm:$0xff] %v206_v8  ;;  %v212_v11 = vld [vmem:[%s2163_s26 + $0x98] sm:$0xff]  ;;  %209 = vst [vmem:[%s171_s27 + $0x48] sm:$0xff] %v208_v9  ;;  %v214_v12 = vld [vmem:[%s2163_s26 + $0xc0] sm:$0xff] }
  0x17   : > { %211 = vst [vmem:[%s171_s27 + $0x50] sm:$0xff] %v210_v10  ;;  %213 = vst [vmem:[%s171_s27 + $0x58] sm:$0xff] %v212_v11  ;;  %v216_v13 = vld [vmem:[%s2163_s26 + $0xc8] sm:$0xff]  ;;  %v218_v14 = vld [vmem:[%s2163_s26 + $0xd0] sm:$0xff] }
  0x18   : > { %215 = vst [vmem:[%s171_s27 + $0x60] sm:$0xff] %v214_v12  ;;  %217 = vst [vmem:[%s171_s27 + $0x68] sm:$0xff] %v216_v13  ;;  %v220_v15 = vld [vmem:[%s2163_s26 + $0xd8] sm:$0xff] }
  0x19   : > { %219 = vst [vmem:[%s171_s27 + $0x70] sm:$0xff] %v218_v14  ;;  %221 = vst [vmem:[%s171_s27 + $0x78] sm:$0xff] %v220_v15 }
  0x1a PF: > { %p1639_p6 = scmp.ge.s32.totalorder %s2098_s16, 1  ;;  %p241_p7 = scmp.lt.s32.totalorder %s2098_s16, 3 }
  0x1c   : > { %p242_p8 = pnand %p1639_p6, %p241_p7 }
  0x1d   : > { %s248_s28 = sand.u32 (!%p242_p8), 1, %s2082_s12   ;;  %s1641_s29 = sshll.u32 (!%p242_p8), %s2090_s14, 7 }
  0x1e   : > { %245 = sbr.rel (%p242_p8) target bundleno = 421 (0x1a5), region = 51  ;;  %s1640_s30 = sshll.u32 (!%p242_p8), %s248_s28, 7 }
  0x1f   : > { %p294_p9 = scmp.lt.s32.totalorder (!%p242_p8), %s1641_s29, 255  ;;  %s2190_s8 = scalar_lea.vmem (!%p242_p8), [#allocation3], %s1640_s30 }
  0x20   : > { %p1644_p10 = scmp.ne.s32.totalorder (!%p242_p8), %s2090_s14, 0 }
  0x25   : > { %s2395_s29 = smov (!%p294_p9, %s1641_s29), 255  ;;  %324 = sbr.rel (%p1644_p10) target bundleno = 50 (0x32), region = 59 }
  0x26   : > { %s1799_s4 = sshll.u32 %s2395_s29, 3  ;;  %v327_v16 = vlaneseq (!%p1644_p10)  ;;  %v325_v18 = vld [vmem:[%s2386_s2] sm:$0x3] (!%p1644_p10) }
  0x27   : > { %s2188_s7 = scalar_lea.vmem %s2385_s1, %s1799_s4 }
  0x28   : > { %v328_v17 = vshrl.u32 (!%p1644_p10), %v327_v16, 7 }
  0x2a   : > { %v329_v19 = vsub.s32 (!%p1644_p10), 0, %v328_v17  ;;  %v333_v20 = vsub.s32 (!%p1644_p10), 1, %v328_v17 }
  0x2c   : > { %v330_v21 = vrot.slane %v325_v18, %v329_v19  ;;  %v334_v22 = vrot.slane %v325_v18, %v333_v20 }
  0x2e   : > { %337 = vst [vmem:[#allocation2] sm:$0xff] %v330_v21  ;;  %339 = vst [vmem:[#allocation2 + $0x10] sm:$0xff] %v330_v21 }
  0x2f   : > { %341 = vst [vmem:[#allocation2 + $0x20] sm:$0xff] %v330_v21  ;;  %343 = vst [vmem:[#allocation2 + $0x30] sm:$0xff] %v330_v21 }
  0x30   : > { %338 = vst [vmem:[#allocation2 + $0x8] sm:$0xff] %v334_v22  ;;  %340 = vst [vmem:[#allocation2 + $0x18] sm:$0xff] %v334_v22 }
  0x31   : > { %342 = vst [vmem:[#allocation2 + $0x28] sm:$0xff] %v334_v22  ;;  %344 = vst [vmem:[#allocation2 + $0x38] sm:$0xff] %v334_v22 }
  0x32 PF: > { %v1868_v23 = vld [vmem:[%s2188_s7 + $0x4] ss:$8 sps:$4 sm:$0xff]   ;;  %v1872_v25 = vld [vmem:[%s2188_s7] ss:$8 sps:$4 sm:$0xff]   ;;  %v1874_v27 = vld [vmem:[%s2188_s7 + $0x14] ss:$8 sps:$4 sm:$0xff]  }
  0x33   : > { %v1870_v24 = vld [vmem:[%s2188_s7 + $0x204] ss:$8 sps:$4 sm:$0xff]   ;;  %1217 = vmatprep.subr.bf16.mxu1 %v1868_v23  ;;  %v1873_v26 = vld [vmem:[%s2188_s7 + $0x200] ss:$8 sps:$4 sm:$0xff]   ;;  %v1876_v28 = vld [vmem:[%s2188_s7 + $0x214] ss:$8 sps:$4 sm:$0xff]  }
  0x34   : > { %1323 = vmatprep.subr.bf16.mxu0 %v1870_v24  ;;  %1218 = vmatpush1.bf16.msra.mxu1 %v1872_v25  ;;  %v1878_v29 = vld [vmem:[%s2188_s7 + $0x10] ss:$8 sps:$4 sm:$0xff]   ;;  %v1880_v31 = vld [vmem:[%s2188_s7 + $0x24] ss:$8 sps:$4 sm:$0xff]   ;;  %v1884_v33 = vld [vmem:[%s2188_s7 + $0x20] ss:$8 sps:$4 sm:$0xff]  }
  0x35   : > { %1324 = vmatpush1.bf16.msra.mxu0 %v1873_v26  ;;  %1219 = vmatprep.subr.bf16.mxu1 %v1874_v27  ;;  %v1879_v30 = vld [vmem:[%s2188_s7 + $0x210] ss:$8 sps:$4 sm:$0xff]   ;;  %v1882_v32 = vld [vmem:[%s2188_s7 + $0x224] ss:$8 sps:$4 sm:$0xff]   ;;  %v1885_v34 = vld [vmem:[%s2188_s7 + $0x220] ss:$8 sps:$4 sm:$0xff]  }
  0x36   : > { %1325 = vmatprep.subr.bf16.mxu0 %v1876_v28  ;;  %v1886_v35 = vld [vmem:[%s2188_s7 + $0x34] ss:$8 sps:$4 sm:$0xff]   ;;  %v1890_v37 = vld [vmem:[%s2188_s7 + $0x30] ss:$8 sps:$4 sm:$0xff]   ;;  %v1892_v39 = vld [vmem:[%s2188_s7 + $0x44] ss:$8 sps:$4 sm:$0xff]  }
  0x37   : > { %v1888_v36 = vld [vmem:[%s2188_s7 + $0x234] ss:$8 sps:$4 sm:$0xff]   ;;  %v1891_v38 = vld [vmem:[%s2188_s7 + $0x230] ss:$8 sps:$4 sm:$0xff]   ;;  %v1894_v40 = vld [vmem:[%s2188_s7 + $0x244] ss:$8 sps:$4 sm:$0xff]  }
  0x38   : > { %1220 = vmatpush1.bf16.msra.mxu1 %v1878_v29  ;;  %v1896_v41 = vld [vmem:[%s2188_s7 + $0x40] ss:$8 sps:$4 sm:$0xff]   ;;  %v1898_v43 = vld [vmem:[%s2188_s7 + $0x54] ss:$8 sps:$4 sm:$0xff]   ;;  %v1902_v45 = vld [vmem:[%s2188_s7 + $0x50] ss:$8 sps:$4 sm:$0xff]  }
  0x39   : > { %1326 = vmatpush1.bf16.msra.mxu0 %v1879_v30  ;;  %1221 = vmatprep.subr.bf16.mxu1 %v1880_v31  ;;  %v1897_v42 = vld [vmem:[%s2188_s7 + $0x240] ss:$8 sps:$4 sm:$0xff]   ;;  %v1900_v44 = vld [vmem:[%s2188_s7 + $0x254] ss:$8 sps:$4 sm:$0xff]   ;;  %v1903_v46 = vld [vmem:[%s2188_s7 + $0x250] ss:$8 sps:$4 sm:$0xff]  }
  0x3a   : > { %1327 = vmatprep.subr.bf16.mxu0 %v1882_v32  ;;  %v1904_v47 = vld [vmem:[%s2188_s7 + $0x64] ss:$8 sps:$4 sm:$0xff]   ;;  %v1908_v49 = vld [vmem:[%s2188_s7 + $0x60] ss:$8 sps:$4 sm:$0xff]   ;;  %v1910_v51 = vld [vmem:[%s2188_s7 + $0x74] ss:$8 sps:$4 sm:$0xff]  }
  0x3b   : > { %v1906_v48 = vld [vmem:[%s2188_s7 + $0x264] ss:$8 sps:$4 sm:$0xff]   ;;  %v1909_v50 = vld [vmem:[%s2188_s7 + $0x260] ss:$8 sps:$4 sm:$0xff]   ;;  %v1912_v52 = vld [vmem:[%s2188_s7 + $0x274] ss:$8 sps:$4 sm:$0xff]  }
  0x3c   : > { %1222 = vmatpush1.bf16.msra.mxu1 %v1884_v33  ;;  %v1914_v53 = vld [vmem:[%s2188_s7 + $0x70] ss:$8 sps:$4 sm:$0xff]   ;;  %v1916_v55 = vld [vmem:[%s2188_s7 + $0x84] ss:$8 sps:$4 sm:$0xff]   ;;  %v1920_v57 = vld [vmem:[%s2188_s7 + $0x80] ss:$8 sps:$4 sm:$0xff]  }
  0x3d   : > { %1328 = vmatpush1.bf16.msra.mxu0 %v1885_v34  ;;  %1223 = vmatprep.subr.bf16.mxu1 %v1886_v35  ;;  %v1915_v54 = vld [vmem:[%s2188_s7 + $0x270] ss:$8 sps:$4 sm:$0xff]   ;;  %v1918_v56 = vld [vmem:[%s2188_s7 + $0x284] ss:$8 sps:$4 sm:$0xff]   ;;  %v1921_v58 = vld [vmem:[%s2188_s7 + $0x280] ss:$8 sps:$4 sm:$0xff]  }
  0x3e   : > { %1329 = vmatprep.subr.bf16.mxu0 %v1888_v36  ;;  %v1922_v59 = vld [vmem:[%s2188_s7 + $0x94] ss:$8 sps:$4 sm:$0xff]   ;;  %v1926_v61 = vld [vmem:[%s2188_s7 + $0x90] ss:$8 sps:$4 sm:$0xff]   ;;  %v1928_v63 = vld [vmem:[%s2188_s7 + $0xa4] ss:$8 sps:$4 sm:$0xff]  }
  0x3f   : > { %v1924_v60 = vld [vmem:[%s2188_s7 + $0x294] ss:$8 sps:$4 sm:$0xff]   ;;  %v1927_v62 = vld [vmem:[%s2188_s7 + $0x290] ss:$8 sps:$4 sm:$0xff]   ;;  %v1930_v0 = vld [vmem:[%s2188_s7 + $0x2a4] ss:$8 sps:$4 sm:$0xff]  }
  0x40   : > { %1224 = vmatpush1.bf16.msra.mxu1 %v1890_v37  ;;  %v1932_v1 = vld [vmem:[%s2188_s7 + $0xa0] ss:$8 sps:$4 sm:$0xff]   ;;  %v1934_v3 = vld [vmem:[%s2188_s7 + $0xb4] ss:$8 sps:$4 sm:$0xff]   ;;  %v1938_v5 = vld [vmem:[%s2188_s7 + $0xb0] ss:$8 sps:$4 sm:$0xff]  }
  0x41   : > { %1330 = vmatpush1.bf16.msra.mxu0 %v1891_v38  ;;  %1225 = vmatprep.subr.bf16.mxu1 %v1892_v39  ;;  %v1933_v2 = vld [vmem:[%s2188_s7 + $0x2a0] ss:$8 sps:$4 sm:$0xff]   ;;  %v1936_v4 = vld [vmem:[%s2188_s7 + $0x2b4] ss:$8 sps:$4 sm:$0xff]   ;;  %v1939_v6 = vld [vmem:[%s2188_s7 + $0x2b0] ss:$8 sps:$4 sm:$0xff]  }
  0x42   : > { %1331 = vmatprep.subr.bf16.mxu0 %v1894_v40  ;;  %v353_v7 = vld [vmem:[%s2190_s8] sm:$0xff]  ;;  %v355_v12 = vld [vmem:[%s2190_s8 + $0x10] sm:$0xff]  ;;  %p1789_p11 = scmp.ne.s32.totalorder %s2090_s14, 1 }
  0x43   : > { %v357_v8 = vld [vmem:[%s2190_s8 + $0x20] sm:$0xff]  ;;  %v359_v13 = vld [vmem:[%s2190_s8 + $0x30] sm:$0xff] }
  0x44   : > { %1226 = vmatpush1.bf16.msra.mxu1 %v1896_v41  ;;  %v1940_v9 = vld [vmem:[%s2188_s7 + $0xc4] ss:$8 sps:$4 sm:$0xff]   ;;  %v1646_v11 = vcombine.high %v353_v7, %v357_v8  ;;  %v1650_v14 = vcombine.high %v355_v12, %v359_v13  ;;  %v1944_v15 = vld [vmem:[%s2188_s7 + $0xc0] ss:$8 sps:$4 sm:$0xff]   ;;  %v1946_v17 = vld [vmem:[%s2188_s7 + $0xd4] ss:$8 sps:$4 sm:$0xff]   ;;  %v1645_v31 = vcombine.low %v353_v7, %v357_v8  ;;  %v1649_v33 = vcombine.low %v355_v12, %v359_v13 }
  0x45   : > { %1332 = vmatpush1.bf16.msra.mxu0 %v1897_v42  ;;  %1227 = vmatprep.subr.bf16.mxu1 %v1898_v43  ;;  %v1942_v10 = vld [vmem:[%s2188_s7 + $0x2c4] ss:$8 sps:$4 sm:$0xff]   ;;  %v1945_v16 = vld [vmem:[%s2188_s7 + $0x2c0] ss:$8 sps:$4 sm:$0xff]   ;;  %v1948_v18 = vld [vmem:[%s2188_s7 + $0x2d4] ss:$8 sps:$4 sm:$0xff]  }
  0x46   : > { %1333 = vmatprep.subr.bf16.mxu0 %v1900_v44  ;;  %1249 = vmatprep.mubr.bf16.mxu1 %v1646_v11  ;;  %v1950_v19 = vld [vmem:[%s2188_s7 + $0xd0] ss:$8 sps:$4 sm:$0xff]   ;;  %v1952_v21 = vld [vmem:[%s2188_s7 + $0xe4] ss:$8 sps:$4 sm:$0xff]   ;;  %v1956_v23 = vld [vmem:[%s2188_s7 + $0xe0] ss:$8 sps:$4 sm:$0xff]  }
  0x47   : > { %1355 = vmatprep.mubr.bf16.mxu0 %v1650_v14  ;;  %v1951_v20 = vld [vmem:[%s2188_s7 + $0x2d0] ss:$8 sps:$4 sm:$0xff]   ;;  %v1954_v22 = vld [vmem:[%s2188_s7 + $0x2e4] ss:$8 sps:$4 sm:$0xff]   ;;  %v1957_v24 = vld [vmem:[%s2188_s7 + $0x2e0] ss:$8 sps:$4 sm:$0xff]  }
  0x48   : > { %1228 = vmatpush1.bf16.msra.mxu1 %v1902_v45  ;;  %v1958_v25 = vld [vmem:[%s2188_s7 + $0xf4] ss:$8 sps:$4 sm:$0xff]   ;;  %v1962_v27 = vld [vmem:[%s2188_s7 + $0xf0] ss:$8 sps:$4 sm:$0xff]   ;;  %v1966_v29 = vld [vmem:[%s2188_s7 + $0x104] ss:$8 sps:$4 sm:$0xff]  }
  0x49   : > { %1334 = vmatpush1.bf16.msra.mxu0 %v1903_v46  ;;  %1229 = vmatprep.subr.bf16.mxu1 %v1904_v47  ;;  %v1960_v26 = vld [vmem:[%s2188_s7 + $0x2f4] ss:$8 sps:$4 sm:$0xff]   ;;  %v1963_v28 = vld [vmem:[%s2188_s7 + $0x2f0] ss:$8 sps:$4 sm:$0xff]   ;;  %v1969_v30 = vld [vmem:[%s2188_s7 + $0x304] ss:$8 sps:$4 sm:$0xff]  }
  0x4a   : > { %1335 = vmatprep.subr.bf16.mxu0 %v1906_v48  ;;  %v1964_v32 = vld [vmem:[%s2188_s7 + $0x100] ss:$8 sps:$4 sm:$0xff]   ;;  %v1972_v35 = vld [vmem:[%s2188_s7 + $0x114] ss:$8 sps:$4 sm:$0xff]   ;;  %v1970_v37 = vld [vmem:[%s2188_s7 + $0x110] ss:$8 sps:$4 sm:$0xff]  }
  0x4b   : > { %v1967_v34 = vld [vmem:[%s2188_s7 + $0x300] ss:$8 sps:$4 sm:$0xff]   ;;  %v1975_v36 = vld [vmem:[%s2188_s7 + $0x314] ss:$8 sps:$4 sm:$0xff]   ;;  %v1973_v38 = vld [vmem:[%s2188_s7 + $0x310] ss:$8 sps:$4 sm:$0xff]  }
  0x4c   : > { %1230 = vmatpush1.bf16.msra.mxu1 %v1908_v49  ;;  %v1978_v39 = vld [vmem:[%s2188_s7 + $0x124] ss:$8 sps:$4 sm:$0xff]   ;;  %v1976_v41 = vld [vmem:[%s2188_s7 + $0x120] ss:$8 sps:$4 sm:$0xff]   ;;  %v1984_v43 = vld [vmem:[%s2188_s7 + $0x134] ss:$8 sps:$4 sm:$0xff]  }
  0x4d   : > { %1336 = vmatpush1.bf16.msra.mxu0 %v1909_v50  ;;  %1231 = vmatprep.subr.bf16.mxu1 %v1910_v51  ;;  %v1981_v40 = vld [vmem:[%s2188_s7 + $0x324] ss:$8 sps:$4 sm:$0xff]   ;;  %v1979_v42 = vld [vmem:[%s2188_s7 + $0x320] ss:$8 sps:$4 sm:$0xff]   ;;  %v1987_v44 = vld [vmem:[%s2188_s7 + $0x334] ss:$8 sps:$4 sm:$0xff]  }
  0x4e   : > { %1337 = vmatprep.subr.bf16.mxu0 %v1912_v52  ;;  %v1982_v45 = vld [vmem:[%s2188_s7 + $0x130] ss:$8 sps:$4 sm:$0xff]   ;;  %v1990_v47 = vld [vmem:[%s2188_s7 + $0x144] ss:$8 sps:$4 sm:$0xff]   ;;  %v1988_v49 = vld [vmem:[%s2188_s7 + $0x140] ss:$8 sps:$4 sm:$0xff]  }
  0x4f   : > { %v1985_v46 = vld [vmem:[%s2188_s7 + $0x330] ss:$8 sps:$4 sm:$0xff]   ;;  %v1993_v48 = vld [vmem:[%s2188_s7 + $0x344] ss:$8 sps:$4 sm:$0xff]   ;;  %v1991_v50 = vld [vmem:[%s2188_s7 + $0x340] ss:$8 sps:$4 sm:$0xff]  }
  0x50   : > { %1232 = vmatpush1.bf16.msra.mxu1 %v1914_v53  ;;  %v1996_v51 = vld [vmem:[%s2188_s7 + $0x154] ss:$8 sps:$4 sm:$0xff]   ;;  %v361_v53 = vld [vmem:[%s2190_s8 + $0x40] sm:$0xff]  ;;  %v2006_v11 = vld [vmem:[%s2188_s7 + $0x170] ss:$8 sps:$4 sm:$0xff]  }
  0x51   : > { %1338 = vmatpush1.bf16.msra.mxu0 %v1915_v54  ;;  %1233 = vmatprep.subr.bf16.mxu1 %v1916_v55  ;;  %v1999_v52 = vld [vmem:[%s2188_s7 + $0x354] ss:$8 sps:$4 sm:$0xff]   ;;  %v365_v54 = vld [vmem:[%s2190_s8 + $0x60] sm:$0xff]  ;;  %v2009_v12 = vld [vmem:[%s2188_s7 + $0x370] ss:$8 sps:$4 sm:$0xff]  }
  0x52   : > { %1339 = vmatprep.subr.bf16.mxu0 %v1918_v56  ;;  %v1654_v55 = vcombine.high %v361_v53, %v365_v54  ;;  %v363_v56 = vld [vmem:[%s2190_s8 + $0x50] sm:$0xff]  ;;  %v2014_v13 = vld [vmem:[%s2188_s7 + $0x184] ss:$8 sps:$4 sm:$0xff]  }
  0x53   : > { %v2011_v7 = vld [vmem:[%s2188_s7 + $0x374] ss:$8 sps:$4 sm:$0xff]   ;;  %v2017_v14 = vld [vmem:[%s2188_s7 + $0x384] ss:$8 sps:$4 sm:$0xff]  }
  0x54   : > { %1234 = vmatpush1.bf16.msra.mxu1 %v1920_v57  ;;  %v367_v57 = vld [vmem:[%s2190_s8 + $0x70] sm:$0xff] }
  0x55   : > { %1340 = vmatpush1.bf16.msra.mxu0 %v1921_v58  ;;  %1235 = vmatprep.subr.bf16.mxu1 %v1922_v59  ;;  %v1994_v58 = vld [vmem:[%s2188_s7 + $0x150] ss:$8 sps:$4 sm:$0xff]  }
  0x56   : > { %1341 = vmatprep.subr.bf16.mxu0 %v1924_v60  ;;  %v1997_v59 = vld [vmem:[%s2188_s7 + $0x350] ss:$8 sps:$4 sm:$0xff]   ;;  %v1658_v60 = vcombine.high %v363_v56, %v367_v57 }
  0x58   : > { %1236 = vmatpush1.bf16.msra.mxu1 %v1926_v61  ;;  %v1653_v61 = vcombine.low %v361_v53, %v365_v54 }
  0x59   : > { %1342 = vmatpush1.bf16.msra.mxu0 %v1927_v62  ;;  %1237 = vmatprep.subr.bf16.mxu1 %v1928_v63  ;;  %v1657_v62 = vcombine.low %v363_v56, %v367_v57  ;;  %v2002_v63 = vld [vmem:[%s2188_s7 + $0x164] ss:$8 sps:$4 sm:$0xff]  }
  0x5a   : > { %1343 = vmatprep.subr.bf16.mxu0 %v1930_v0  ;;  %v2005_v0 = vld [vmem:[%s2188_s7 + $0x364] ss:$8 sps:$4 sm:$0xff]  }
  0x5b   : > { %v345_v56 = vld [vmem:[#allocation2] sm:$0xff] }
  0x5c   : > { %1238 = vmatpush1.bf16.msra.mxu1 %v1932_v1  ;;  %v2000_v1 = vld [vmem:[%s2188_s7 + $0x160] ss:$8 sps:$4 sm:$0xff]  }
  0x5d   : > { %1344 = vmatpush1.bf16.msra.mxu0 %v1933_v2  ;;  %1239 = vmatprep.subr.bf16.mxu1 %v1934_v3  ;;  %v2003_v2 = vld [vmem:[%s2188_s7 + $0x360] ss:$8 sps:$4 sm:$0xff]  }
  0x5e   : > { %1345 = vmatprep.subr.bf16.mxu0 %v1936_v4  ;;  %v2297_v3 = vld [vmem:[%s2190_s8 + $0x8] sm:$0xff] }
  0x5f   : > { %v2300_v4 = vld [vmem:[%s2190_s8 + $0x28] sm:$0xff] }
  0x60   : > { %1240 = vmatpush1.bf16.msra.mxu1 %v1938_v5  ;;  %v2303_v5 = vld [vmem:[%s2190_s8 + $0x18] sm:$0xff]  ;;  %v1648_v8 = vcombine.high %v2297_v3, %v2300_v4 }
  0x61   : > { %1346 = vmatpush1.bf16.msra.mxu0 %v1939_v6  ;;  %1241 = vmatprep.subr.bf16.mxu1 %v1940_v9  ;;  %v2008_v6 = vld [vmem:[%s2188_s7 + $0x174] ss:$8 sps:$4 sm:$0xff]  }
  0x62   : > { %1347 = vmatprep.subr.bf16.mxu0 %v1942_v10  ;;  %v2310_v9 = vld [vmem:[%s2190_s8 + $0x38] sm:$0xff] }
  0x63   : > { %v1652_v10 = vcombine.high %v2303_v5, %v2310_v9 }
  0x64   : > { %1242 = vmatpush1.bf16.msra.mxu1 %v1944_v15  ;;  %v2012_v15 = vld [vmem:[%s2188_s7 + $0x180] ss:$8 sps:$4 sm:$0xff]  }
  0x65   : > { %1348 = vmatpush1.bf16.msra.mxu0 %v1945_v16  ;;  %1243 = vmatprep.subr.bf16.mxu1 %v1946_v17  ;;  %v2015_v16 = vld [vmem:[%s2188_s7 + $0x380] ss:$8 sps:$4 sm:$0xff]   ;;  %v2020_v17 = vld [vmem:[%s2188_s7 + $0x194] ss:$8 sps:$4 sm:$0xff]  }
  0x66   : > { %1349 = vmatprep.subr.bf16.mxu0 %v1948_v18  ;;  %v2023_v18 = vld [vmem:[%s2188_s7 + $0x394] ss:$8 sps:$4 sm:$0xff]  }
  0x68   : > { %1244 = vmatpush1.bf16.msra.mxu1 %v1950_v19  ;;  %v2018_v19 = vld [vmem:[%s2188_s7 + $0x190] ss:$8 sps:$4 sm:$0xff]  }
  0x69   : > { %1350 = vmatpush1.bf16.msra.mxu0 %v1951_v20  ;;  %1245 = vmatprep.subr.bf16.mxu1 %v1952_v21  ;;  %v2021_v20 = vld [vmem:[%s2188_s7 + $0x390] ss:$8 sps:$4 sm:$0xff]   ;;  %v2026_v21 = vld [vmem:[%s2188_s7 + $0x1a4] ss:$8 sps:$4 sm:$0xff]  }
  0x6a   : > { %1351 = vmatprep.subr.bf16.mxu0 %v1954_v22  ;;  %v2029_v22 = vld [vmem:[%s2188_s7 + $0x3a4] ss:$8 sps:$4 sm:$0xff]  }
  0x6c   : > { %1246 = vmatpush1.bf16.msra.mxu1 %v1956_v23  ;;  %v2024_v23 = vld [vmem:[%s2188_s7 + $0x1a0] ss:$8 sps:$4 sm:$0xff]  }
  0x6d   : > { %1352 = vmatpush1.bf16.msra.mxu0 %v1957_v24  ;;  %1247 = vmatprep.subr.bf16.mxu1 %v1958_v25  ;;  %v2027_v24 = vld [vmem:[%s2188_s7 + $0x3a0] ss:$8 sps:$4 sm:$0xff]   ;;  %v2032_v25 = vld [vmem:[%s2188_s7 + $0x1b4] ss:$8 sps:$4 sm:$0xff]  }
  0x6e   : > { %1353 = vmatprep.subr.bf16.mxu0 %v1960_v26  ;;  %v2035_v26 = vld [vmem:[%s2188_s7 + $0x3b4] ss:$8 sps:$4 sm:$0xff]  }
  0x70   : > { %1248 = vmatpush1.bf16.msra.mxu1 %v1962_v27  ;;  %v2030_v27 = vld [vmem:[%s2188_s7 + $0x1b0] ss:$8 sps:$4 sm:$0xff]  }
  0x71   : > { %1354 = vmatpush1.bf16.msra.mxu0 %v1963_v28  ;;  %1270 = vmatprep.subr.bf16.mxu1 %v1966_v29  ;;  %v2033_v28 = vld [vmem:[%s2188_s7 + $0x3b0] ss:$8 sps:$4 sm:$0xff]   ;;  %v2038_v29 = vld [vmem:[%s2188_s7 + $0x1c4] ss:$8 sps:$4 sm:$0xff]  }
  0x72   : > { %1376 = vmatprep.subr.bf16.mxu0 %v1969_v30  ;;  %v2041_v30 = vld [vmem:[%s2188_s7 + $0x3c4] ss:$8 sps:$4 sm:$0xff]  }
  0x73   : > { %1250 = vmatmul.mubr.bf16.vlgmr.msra.gmra.mrb[0].mxu1 %v1645_v31  ;;  %v2036_v31 = vld [vmem:[%s2188_s7 + $0x1c0] ss:$8 sps:$4 sm:$0xff]  }
  0x74   : > { %1356 = vmatmul.mubr.bf16.vlgmr.msra.gmra.mrb[0].mxu0 %v1649_v33  ;;  %1271 = vmatpush1.bf16.msra.mxu1 %v1964_v32  ;;  %v2039_v32 = vld [vmem:[%s2188_s7 + $0x3c0] ss:$8 sps:$4 sm:$0xff]   ;;  %v2044_v33 = vld [vmem:[%s2188_s7 + $0x1d4] ss:$8 sps:$4 sm:$0xff]  }
  0x75   : > { %1377 = vmatpush1.bf16.msra.mxu0 %v1967_v34  ;;  %1272 = vmatprep.subr.bf16.mxu1 %v1972_v35  ;;  %v2047_v34 = vld [vmem:[%s2188_s7 + $0x3d4] ss:$8 sps:$4 sm:$0xff]   ;;  %v2042_v35 = vld [vmem:[%s2188_s7 + $0x1d0] ss:$8 sps:$4 sm:$0xff]  }
  0x76   : > { %1378 = vmatprep.subr.bf16.mxu0 %v1975_v36  ;;  %1259 = vmatprep.mubr.bf16.mxu1 %v1654_v55  ;;  %v2045_v36 = vld [vmem:[%s2188_s7 + $0x3d0] ss:$8 sps:$4 sm:$0xff]  }
  0x77   : > { %1365 = vmatprep.mubr.bf16.mxu0 %v1658_v60  ;;  %v346_v60 = vld [vmem:[#allocation2 + $0x8] sm:$0xff] }
  0x78   : > { %1273 = vmatpush1.bf16.msra.mxu1 %v1970_v37  ;;  %v2050_v37 = vld [vmem:[%s2188_s7 + $0x1e4] ss:$8 sps:$4 sm:$0xff]  }
  0x79   : > { %1379 = vmatpush1.bf16.msra.mxu0 %v1973_v38  ;;  %1274 = vmatprep.subr.bf16.mxu1 %v1978_v39  ;;  %v2053_v38 = vld [vmem:[%s2188_s7 + $0x3e4] ss:$8 sps:$4 sm:$0xff]   ;;  %v2048_v39 = vld [vmem:[%s2188_s7 + $0x1e0] ss:$8 sps:$4 sm:$0xff]  }
  0x7a   : > { %1380 = vmatprep.subr.bf16.mxu0 %v1981_v40  ;;  %v2051_v40 = vld [vmem:[%s2188_s7 + $0x3e0] ss:$8 sps:$4 sm:$0xff]  }
  0x7b   : > { %1260 = vmatmul.mubr.bf16.gmra.mrb[4].mxu1 %v1653_v61 }
  0x7c   : > { %1275 = vmatpush1.bf16.msra.mxu1 %v1976_v41  ;;  %1366 = vmatmul.mubr.bf16.gmra.mrb[4].mxu0 %v1657_v62  ;;  %v2056_v41 = vld [vmem:[%s2188_s7 + $0x1f4] ss:$8 sps:$4 sm:$0xff]  }
  0x7d   : > { %1381 = vmatpush1.bf16.msra.mxu0 %v1979_v42  ;;  %1276 = vmatprep.subr.bf16.mxu1 %v1984_v43  ;;  %v2059_v42 = vld [vmem:[%s2188_s7 + $0x3f4] ss:$8 sps:$4 sm:$0xff]   ;;  %v2054_v43 = vld [vmem:[%s2188_s7 + $0x1f0] ss:$8 sps:$4 sm:$0xff]  }
  0x7e   : > { %1382 = vmatprep.subr.bf16.mxu0 %v1987_v44  ;;  %1302 = vmatprep.mubr.bf16.mxu1 %v1648_v8  ;;  %v2057_v44 = vld [vmem:[%s2188_s7 + $0x3f0] ss:$8 sps:$4 sm:$0xff]  }
  0x7f   : > { %1408 = vmatprep.mubr.bf16.mxu0 %v1652_v10 }
  0x80   : > { %1277 = vmatpush1.bf16.msra.mxu1 %v1982_v45  ;;  %v362_v45 = vld [vmem:[%s2190_s8 + $0x48] sm:$0xff] }
  0x81   : > { %1383 = vmatpush1.bf16.msra.mxu0 %v1985_v46  ;;  %1278 = vmatprep.subr.bf16.mxu1 %v1990_v47  ;;  %v366_v46 = vld [vmem:[%s2190_s8 + $0x68] sm:$0xff]  ;;  %v364_v47 = vld [vmem:[%s2190_s8 + $0x58] sm:$0xff] }
  0x82   : > { %1384 = vmatprep.subr.bf16.mxu0 %v1993_v48  ;;  %v368_v48 = vld [vmem:[%s2190_s8 + $0x78] sm:$0xff]  ;;  %v1655_v53 = vcombine.low %v362_v45, %v366_v46 }
  0x83   : > { %v1659_v54 = vcombine.low %v364_v47, %v368_v48 }
  0x84   : > { %1279 = vmatpush1.bf16.msra.mxu1 %v1988_v49  ;;  %v1647_v49 = vcombine.low %v2297_v3, %v2300_v4 }
  0x85   : > { %1385 = vmatpush1.bf16.msra.mxu0 %v1991_v50  ;;  %1280 = vmatprep.subr.bf16.mxu1 %v1996_v51  ;;  %v1651_v50 = vcombine.low %v2303_v5, %v2310_v9  ;;  %v1656_v51 = vcombine.high %v362_v45, %v366_v46  ;;  %v348_v5 = vld [vmem:[#allocation2 + $0x18] sm:$0xff] }
  0x86   : > { %1386 = vmatprep.subr.bf16.mxu0 %v1999_v52  ;;  %v1660_v52 = vcombine.high %v364_v47, %v368_v48 }
  0x88   : > { %1281 = vmatpush1.bf16.msra.mxu1 %v1994_v58 }
  0x89   : > { %1387 = vmatpush1.bf16.msra.mxu0 %v1997_v59  ;;  %1282 = vmatprep.subr.bf16.mxu1 %v2002_v63 }
  0x8a   : > { %1388 = vmatprep.subr.bf16.mxu0 %v2005_v0  ;;  %v347_v0 = vld [vmem:[#allocation2 + $0x10] sm:$0xff] }
  0x8c   : > { %1283 = vmatpush1.bf16.msra.mxu1 %v2000_v1 }
  0x8d   : > { %1389 = vmatpush1.bf16.msra.mxu0 %v2003_v2  ;;  %1284 = vmatprep.subr.bf16.mxu1 %v2008_v6 }
  0x8e   : > { %1390 = vmatprep.subr.bf16.mxu0 %v2011_v7 }
  0x90   : > { %1285 = vmatpush1.bf16.msra.mxu1 %v2006_v11 }
  0x91   : > { %1391 = vmatpush1.bf16.msra.mxu0 %v2009_v12  ;;  %1286 = vmatprep.subr.bf16.mxu1 %v2014_v13  ;;  %v349_v12 = vld [vmem:[#allocation2 + $0x20] sm:$0xff] }
  0x92   : > { %1392 = vmatprep.subr.bf16.mxu0 %v2017_v14 }
  0x94   : > { %1287 = vmatpush1.bf16.msra.mxu1 %v2012_v15 }
  0x95   : > { %1393 = vmatpush1.bf16.msra.mxu0 %v2015_v16  ;;  %1288 = vmatprep.subr.bf16.mxu1 %v2020_v17  ;;  %v350_v16 = vld [vmem:[#allocation2 + $0x28] sm:$0xff] }
  0x96   : > { %1394 = vmatprep.subr.bf16.mxu0 %v2023_v18 }
  0x98   : > { %1289 = vmatpush1.bf16.msra.mxu1 %v2018_v19 }
  0x99   : > { %1395 = vmatpush1.bf16.msra.mxu0 %v2021_v20  ;;  %1290 = vmatprep.subr.bf16.mxu1 %v2026_v21  ;;  %v351_v20 = vld [vmem:[#allocation2 + $0x30] sm:$0xff] }
  0x9a   : > { %1396 = vmatprep.subr.bf16.mxu0 %v2029_v22 }
  0x9c   : > { %1291 = vmatpush1.bf16.msra.mxu1 %v2024_v23 }
  0x9d   : > { %1397 = vmatpush1.bf16.msra.mxu0 %v2027_v24  ;;  %1292 = vmatprep.subr.bf16.mxu1 %v2032_v25  ;;  %v352_v25 = vld [vmem:[#allocation2 + $0x38] sm:$0xff] }
  0x9e   : > { %1398 = vmatprep.subr.bf16.mxu0 %v2035_v26 }
  0xa0   : > { %1293 = vmatpush1.bf16.msra.mxu1 %v2030_v27 }
  0xa1   : > { %1399 = vmatpush1.bf16.msra.mxu0 %v2033_v28  ;;  %1294 = vmatprep.subr.bf16.mxu1 %v2038_v29 }
  0xa2   : > { %1400 = vmatprep.subr.bf16.mxu0 %v2041_v30 }
  0xa4   : > { %1295 = vmatpush1.bf16.msra.mxu1 %v2036_v31 }
  0xa5   : > { %1401 = vmatpush1.bf16.msra.mxu0 %v2039_v32  ;;  %1296 = vmatprep.subr.bf16.mxu1 %v2044_v33 }
  0xa6   : > { %1402 = vmatprep.subr.bf16.mxu0 %v2047_v34 }
  0xa8   : > { %1297 = vmatpush1.bf16.msra.mxu1 %v2042_v35 }
  0xa9   : > { %1403 = vmatpush1.bf16.msra.mxu0 %v2045_v36  ;;  %1298 = vmatprep.subr.bf16.mxu1 %v2050_v37 }
  0xaa   : > { %1404 = vmatprep.subr.bf16.mxu0 %v2053_v38 }
  0xac   : > { %1299 = vmatpush1.bf16.msra.mxu1 %v2048_v39 }
  0xad   : > { %1405 = vmatpush1.bf16.msra.mxu0 %v2051_v40  ;;  %1300 = vmatprep.subr.bf16.mxu1 %v2056_v41 }
  0xae   : > { %1406 = vmatprep.subr.bf16.mxu0 %v2059_v42 }
  0xb0   : > { %1301 = vmatpush1.bf16.msra.mxu1 %v2054_v43 }
  0xb1   : > { %1407 = vmatpush1.bf16.msra.mxu0 %v2057_v44 }
  0xb3   : > { %1303 = vmatmul.mubr.bf16.vlgmr.msra.gmra.mrb[0].mxu1 %v1647_v49 }
  0xb4   : > { %1409 = vmatmul.mubr.bf16.vlgmr.msra.gmra.mrb[0].mxu0 %v1651_v50  ;;  %1312 = vmatprep.mubr.bf16.mxu1 %v1656_v51 }
  0xb5   : > { %1418 = vmatprep.mubr.bf16.mxu0 %v1660_v52 }
  0xbb   : > { %1313 = vmatmul.mubr.bf16.gmra.mrb[4].mxu1 %v1655_v53 }
  0xbc   : > { %1419 = vmatmul.mubr.bf16.gmra.mrb[4].mxu0 %v1659_v54 }
 0x186   : > { %v1304_v55 = vpop.f32.mrb[0].mxu1 }
 0x187   : > { %v1410_v57 = vpop.f32.mrb[0].mxu0  ;;  %v1306_v59 = vpop.f32.mrb[1].mxu1 }
 0x188   : > { %v1804_v58 = vadd.f32 %v1410_v57, %v1304_v55  ;;  %v1412_v61 = vpop.f32.mrb[1].mxu0  ;;  %v1308_v63 = vpop.f32.mrb[2].mxu1 }
 0x189   : > { %v1805_v62 = vadd.f32 %v1412_v61, %v1306_v59  ;;  %v1414_v1 = vpop.f32.mrb[2].mxu0  ;;  %v1310_v4 = vpop.f32.mrb[3].mxu1 }
 0x18a   : > { %v1429_v2 = vadd.f32 %v1804_v58, %v345_v56  ;;  %v1806_v3 = vadd.f32 %v1414_v1, %v1308_v63  ;;  %v1416_v6 = vpop.f32.mrb[3].mxu0 }
 0x18b   : > { %v1430_v7 = vadd.f32 %v1805_v62, %v346_v60  ;;  %v1807_v8 = vadd.f32 %v1416_v6, %v1310_v4 }
 0x18c   : > { %1437 = vst [vmem:[#allocation2] sm:$0xff] %v1429_v2  ;;  %v1431_v9 = vadd.f32 %v1806_v3, %v347_v0 }
 0x18d   : > { %1438 = vst [vmem:[#allocation2 + $0x8] sm:$0xff] %v1430_v7  ;;  %v1432_v10 = vadd.f32 %v1807_v8, %v348_v5 }
 0x18e   : > { %1439 = vst [vmem:[#allocation2 + $0x10] sm:$0xff] %v1431_v9  ;;  %v1314_v11 = vpop.f32.mrb[4].mxu1 }
 0x18f   : > { %1440 = vst [vmem:[#allocation2 + $0x18] sm:$0xff] %v1432_v10  ;;  %v1420_v13 = vpop.f32.mrb[4].mxu0  ;;  %v1316_v15 = vpop.f32.mrb[5].mxu1 }
 0x190   : > { %v1808_v14 = vadd.f32 %v1420_v13, %v1314_v11  ;;  %v1422_v17 = vpop.f32.mrb[5].mxu0  ;;  %v1318_v19 = vpop.f32.mrb[6].mxu1 }
 0x191   : > { %v1809_v18 = vadd.f32 %v1422_v17, %v1316_v15  ;;  %v1424_v21 = vpop.f32.mrb[6].mxu0  ;;  %v1320_v24 = vpop.f32.mrb[7].mxu1  ;;  %1448 = sbr.rel (%p1789_p11) target bundleno = 421 (0x1a5), region = 63 }
 0x192   : > { %v1433_v22 = vadd.f32 %v1808_v14, %v349_v12  ;;  %v1810_v23 = vadd.f32 %v1424_v21, %v1318_v19  ;;  %v1426_v26 = vpop.f32.mrb[7].mxu0 }
 0x193   : > { %v1434_v27 = vadd.f32 %v1809_v18, %v350_v16  ;;  %v1811_v28 = vadd.f32 %v1426_v26, %v1320_v24  ;;  %v1449_v31 = vld [vmem:[#allocation2] sm:$0xff] (!%p1789_p11) }
 0x194   : > { %1441 = vst [vmem:[#allocation2 + $0x20] sm:$0xff] %v1433_v22  ;;  %v1435_v29 = vadd.f32 %v1810_v23, %v351_v20  ;;  %v1450_v32 = vld [vmem:[#allocation2 + $0x8] sm:$0xff] (!%p1789_p11)  ;;  %vm1457_vm0 = vcmp.gt.f32.partialorder (!%p1789_p11), %v1449_v31, 0.0  ;;  %v1465_v34 = vmul.f32 (!%p1789_p11), 0.3, %v1449_v31 }
 0x195   : > { %1442 = vst [vmem:[#allocation2 + $0x28] sm:$0xff] %v1434_v27  ;;  %v1436_v30 = vadd.f32 %v1811_v28, %v352_v25  ;;  %v1451_v33 = vld [vmem:[#allocation2 + $0x10] sm:$0xff] (!%p1789_p11)  ;;  %vm1458_vm1 = vcmp.gt.f32.partialorder (!%p1789_p11), %v1450_v32, 0.0  ;;  %v1466_v35 = vmul.f32 (!%p1789_p11), 0.3, %v1450_v32 }
 0x196   : > { %1443 = vst [vmem:[#allocation2 + $0x30] sm:$0xff] %v1435_v29  ;;  %v1452_v36 = vld [vmem:[#allocation2 + $0x18] sm:$0xff] (!%p1789_p11)  ;;  %vm1459_vm2 = vcmp.gt.f32.partialorder (!%p1789_p11), %v1451_v33, 0.0  ;;  %v1467_v37 = vmul.f32 (!%p1789_p11), 0.3, %v1451_v33  ;;  %v1473_v40 = vsel (!%p1789_p11), %vm1457_vm0, %v1449_v31, %v1465_v34 }
 0x197   : > { %1444 = vst [vmem:[#allocation2 + $0x38] sm:$0xff] %v1436_v30  ;;  %v1474_v41 = vsel (!%p1789_p11), %vm1458_vm1, %v1450_v32, %v1466_v35  ;;  %vm1460_vm3 = vcmp.gt.f32.partialorder (!%p1789_p11), %v1452_v36, 0.0  ;;  %v1468_v42 = vmul.f32 (!%p1789_p11), 0.3, %v1452_v36 }
 0x198   : > { %v1800_v45 = vpack.c.bf16 %v1474_v41, %v1473_v40  ;;  %v1475_v46 = vsel %vm1459_vm2, %v1451_v33, %v1467_v37 }
 0x199   : > { %v1476_v47 = vsel %vm1460_vm3, %v1452_v36, %v1468_v42 }
 0x19a   : > { %1505 = vst [vmem:[%s2387_s3] sm:$0xff] %v1800_v45  ;;  %v1801_v50 = vpack.c.bf16 %v1476_v47, %v1475_v46 }
 0x19b   : > { %v1453_v38 = vld [vmem:[#allocation2 + $0x20] sm:$0xff] }
 0x19c   : > { %v1454_v39 = vld [vmem:[#allocation2 + $0x28] sm:$0xff]  ;;  %vm1461_vm4 = vcmp.gt.f32.partialorder %v1453_v38, 0.0  ;;  %v1469_v48 = vmul.f32 0.3, %v1453_v38  ;;  %1506 = vst [vmem:[%s2387_s3 + $0x8] sm:$0xff] %v1801_v50 }
 0x19d   : > { %v1455_v43 = vld [vmem:[#allocation2 + $0x30] sm:$0xff]  ;;  %vm1462_vm5 = vcmp.gt.f32.partialorder %v1454_v39, 0.0  ;;  %v1470_v49 = vmul.f32 0.3, %v1454_v39 }
 0x19e   : > { %v1456_v44 = vld [vmem:[#allocation2 + $0x38] sm:$0xff]  ;;  %vm1463_vm6 = vcmp.gt.f32.partialorder %v1455_v43, 0.0  ;;  %v1471_v51 = vmul.f32 0.3, %v1455_v43  ;;  %v1477_v53 = vsel %vm1461_vm4, %v1453_v38, %v1469_v48 }
 0x19f   : > { %vm1464_vm7 = vcmp.gt.f32.partialorder %v1456_v44, 0.0  ;;  %v1472_v52 = vmul.f32 0.3, %v1456_v44  ;;  %v1478_v54 = vsel %vm1462_vm5, %v1454_v39, %v1470_v49 }
 0x1a0   : > { %v1802_v55 = vpack.c.bf16 %v1478_v54, %v1477_v53  ;;  %v1479_v56 = vsel %vm1463_vm6, %v1455_v43, %v1471_v51 }
 0x1a1   : > { %v1480_v57 = vsel %vm1464_vm7, %v1456_v44, %v1472_v52 }
 0x1a2   : > { %v1803_v58 = vpack.c.bf16 %v1480_v57, %v1479_v56  ;;  %1507 = vst [vmem:[%s2387_s3 + $0x10] sm:$0xff] %v1802_v55 }
 0x1a4   : > { %1508 = vst [vmem:[%s2387_s3 + $0x18] sm:$0xff] %v1803_v58 }
 0x1a5 PF: > { %s13_s16 = sadd.s32 1, %s2098_s16   ;;  %s2388_s12 = smov %s2086_s13 }
 0x1a6   : > { %p10_p12 = scmp.ge.s32.totalorder %s13_s16, 4   ;;  %s2389_s13 = smov %s2155_s20 }
 0x1a7   : > { %s2390_s14 = smov %s2094_s15  ;;  %s2391_s15 = smov %s2393_s17 }
 0x1a8   :  { %12 = sbr.rel (!%p10_p12) target bundleno = 3 (0x3), region = 104 }

// kernel: discriminator_forward.9
= control target key start
LH: loop header
LB: loop body
LE: loop exit
PB: predicated region body
PF: predicated region fallthrough
CT: control target
= control target key end

     0   :  { %s1633_s12 = smov 0   ;;  %s1635_s13 = smov 0   ;;  %s1817_s0 = inlined_call_operand.vmem [shape: bf16[32,8192], index: 0, kind: input, shape index: {}]   ;;  %s1818_s1 = inlined_call_operand.vmem [shape: bf16[8192,128], index: 1, kind: input, shape index: {}]   ;;  %s1819_s2 = inlined_call_operand.vmem [shape: f32[1,128], index: 2, kind: input, shape index: {}]   ;;  %s1820_s3 = inlined_call_operand.vmem [shape: f32[32,128], index: 3, kind: output, shape index: {}]  }
   0x1   :  { %s1637_s14 = smov 0   ;;  %s1639_s15 = smov 0  }
   0x2   :  { %s1641_s16 = smov 0  }
   0x3 LB: > { %s25_s17 = sadd.s32 1, %s1607_s15  ;;  %p48_p1 = scmp.ne.s32.totalorder %s1599_s13, %s1595_s12  ;;  %s1611_s16 = sphi %s1641_s16, %s13_s16   ;;  %s1607_s15 = sphi %s1639_s15, %s1824_s15   ;;  %s1603_s14 = sphi %s1637_s14, %s1823_s14   ;;  %s1599_s13 = sphi %s1635_s13, %s1822_s13   ;;  %s1595_s12 = sphi %s1633_s12, %s1821_s12  }
   0x4   : > { %p26_p0 = scmp.ge.s32.totalorder %s25_s17, 8  ;;  %p49_p2 = scmp.eq.s32.totalorder %s1611_s16, 0 }
   0x5   : > { %s41_s19 = sadd.s32 1, %s1599_s13  ;;  %p1261_p5 = scmp.ge.s32.totalorder %s1611_s16, 8 }
   0x6   : > { %s1826_s17 = smov (%p26_p0, %s25_s17), 0  ;;  %p50_p3 = por %p49_p2, %p48_p1 }
   0x7   : > { %s37_s18 = ssub.s32 %s1607_s15, %s1826_s17  ;;  %162 = sbr.rel (%p1261_p5) target bundleno = 26 (0x1a), region = 20 }
   0x8   : > { %p39_p4 = scmp.eq.s32.totalorder %s37_s18, 0 }
   0xa   : > { %s1668_s20 = scalar_select %p39_p4, %s1599_s13, %s41_s19  }
   0xe   : > { %165 = sbr.rel (!%p50_p3) target bundleno = 26 (0x1a), region = 24  ;;  %s167_s21 = sand.u32 (%p50_p3), 1, %s1599_s13  }
   0xf   : > { %s1356_s22 = sshll.u32 (%p50_p3), %s1607_s15, 5  ;;  %s1262_s23 = sshll.u32 (%p50_p3), %s167_s21, 7 }
  0x10   : > { %s1676_s26 = scalar_lea.vmem (%p50_p3), %s1817_s0, %s1356_s22  ;;  %s169_s27 = scalar_lea.vmem (%p50_p3), [#allocation3], %s1262_s23 }
  0x11   : > { %v188_v0 = vld [vmem:[%s1676_s26] sm:$0xff] (%p50_p3)  ;;  %v190_v1 = vld [vmem:[%s1676_s26 + $0x8] sm:$0xff] (%p50_p3)  ;;  %v192_v2 = vld [vmem:[%s1676_s26 + $0x10] sm:$0xff] (%p50_p3) }
  0x12   : > { %189 = vst [vmem:[%s169_s27] sm:$0xff] (%p50_p3), %v188_v0  ;;  %191 = vst [vmem:[%s169_s27 + $0x8] sm:$0xff] (%p50_p3), %v190_v1  ;;  %v194_v3 = vld [vmem:[%s1676_s26 + $0x18] sm:$0xff] (%p50_p3)  ;;  %v196_v4 = vld [vmem:[%s1676_s26 + $0x100] sm:$0xff] (%p50_p3) }
  0x13   : > { %193 = vst [vmem:[%s169_s27 + $0x10] sm:$0xff] (%p50_p3), %v192_v2  ;;  %v198_v5 = vld [vmem:[%s1676_s26 + $0x108] sm:$0xff] (%p50_p3)  ;;  %195 = vst [vmem:[%s169_s27 + $0x18] sm:$0xff] (%p50_p3), %v194_v3  ;;  %v200_v6 = vld [vmem:[%s1676_s26 + $0x110] sm:$0xff] (%p50_p3) }
  0x14   : > { %197 = vst [vmem:[%s169_s27 + $0x20] sm:$0xff] (%p50_p3), %v196_v4  ;;  %199 = vst [vmem:[%s169_s27 + $0x28] sm:$0xff] (%p50_p3), %v198_v5  ;;  %v202_v7 = vld [vmem:[%s1676_s26 + $0x118] sm:$0xff] (%p50_p3)  ;;  %v204_v8 = vld [vmem:[%s1676_s26 + $0x200] sm:$0xff] (%p50_p3) }
  0x15   : > { %201 = vst [vmem:[%s169_s27 + $0x30] sm:$0xff] %v200_v6  ;;  %203 = vst [vmem:[%s169_s27 + $0x38] sm:$0xff] %v202_v7  ;;  %v206_v9 = vld [vmem:[%s1676_s26 + $0x208] sm:$0xff]  ;;  %v208_v10 = vld [vmem:[%s1676_s26 + $0x210] sm:$0xff] }
  0x16   : > { %205 = vst [vmem:[%s169_s27 + $0x40] sm:$0xff] %v204_v8  ;;  %v210_v11 = vld [vmem:[%s1676_s26 + $0x218] sm:$0xff]  ;;  %207 = vst [vmem:[%s169_s27 + $0x48] sm:$0xff] %v206_v9  ;;  %v212_v12 = vld [vmem:[%s1676_s26 + $0x300] sm:$0xff] }
  0x17   : > { %209 = vst [vmem:[%s169_s27 + $0x50] sm:$0xff] %v208_v10  ;;  %211 = vst [vmem:[%s169_s27 + $0x58] sm:$0xff] %v210_v11  ;;  %v214_v13 = vld [vmem:[%s1676_s26 + $0x308] sm:$0xff]  ;;  %v216_v14 = vld [vmem:[%s1676_s26 + $0x310] sm:$0xff] }
  0x18   : > { %213 = vst [vmem:[%s169_s27 + $0x60] sm:$0xff] %v212_v12  ;;  %215 = vst [vmem:[%s169_s27 + $0x68] sm:$0xff] %v214_v13  ;;  %v218_v15 = vld [vmem:[%s1676_s26 + $0x318] sm:$0xff] }
  0x19   : > { %217 = vst [vmem:[%s169_s27 + $0x70] sm:$0xff] %v216_v14  ;;  %219 = vst [vmem:[%s169_s27 + $0x78] sm:$0xff] %v218_v15 }
  0x1a PF: > { %p1265_p6 = scmp.ge.s32.totalorder %s1611_s16, 1  ;;  %p236_p7 = scmp.lt.s32.totalorder %s1611_s16, 9 }
  0x1c   : > { %p237_p8 = pnand %p1265_p6, %p236_p7 }
  0x1d   : > { %s243_s28 = sand.u32 (!%p237_p8), 1, %s1595_s12   ;;  %s1267_s29 = sshll.u32 (!%p237_p8), %s1603_s14, 7 }
  0x1e   : > { %240 = sbr.rel (%p237_p8) target bundleno = 350 (0x15e), region = 51  ;;  %s1266_s30 = sshll.u32 (!%p237_p8), %s243_s28, 7 }
  0x1f   : > { %p283_p9 = scmp.lt.s32.totalorder (!%p237_p8), %s1267_s29, 1023  ;;  %s1703_s8 = scalar_lea.vmem (!%p237_p8), [#allocation3], %s1266_s30 }
  0x20   : > { %p1269_p10 = scmp.ne.s32.totalorder (!%p237_p8), %s1603_s14, 0 }
  0x25   : > { %s1828_s29 = smov (!%p283_p9, %s1267_s29), 1023  ;;  %307 = sbr.rel (%p1269_p10) target bundleno = 44 (0x2c), region = 59 }
  0x26   : > { %s1268_s4 = sshll.u32 %s1828_s29, 2  ;;  %v1270_v16 = vld [vmem:[%s1819_s2] ss:$0 sm:$0xff] (!%p1269_p10) }
  0x27   : > { %s1701_s7 = scalar_lea.vmem %s1818_s1, %s1268_s4  ;;  %315 = vst [vmem:[#allocation2] sm:$0xff] (!%p1269_p10), %v1270_v16  ;;  %316 = vst [vmem:[#allocation2 + $0x8] sm:$0xff] (!%p1269_p10), %v1270_v16 }
  0x28   : > { %317 = vst [vmem:[#allocation2 + $0x10] sm:$0xff] (!%p1269_p10), %v1270_v16  ;;  %318 = vst [vmem:[#allocation2 + $0x18] sm:$0xff] (!%p1269_p10), %v1270_v16 }
  0x2c PF: > { %v1509_v17 = vld [vmem:[%s1701_s7 + $0x40] sm:$0xff]   ;;  %v1513_v21 = vld [vmem:[%s1701_s7 + $0x48] sm:$0xff]   ;;  %v1517_v25 = vld [vmem:[%s1701_s7 + $0x50] sm:$0xff]   ;;  %p1351_p11 = scmp.ne.s32.totalorder %s1603_s14, 7 }
  0x2d   : > { %v1510_v18 = vld [vmem:[%s1701_s7 + $0xc0] sm:$0xff]   ;;  %1357 = vmatprep.subr.bf16.mxu0 %v1509_v17  ;;  %v1514_v22 = vld [vmem:[%s1701_s7 + $0xc8] sm:$0xff]   ;;  %v1518_v26 = vld [vmem:[%s1701_s7 + $0xd0] sm:$0xff]  }
  0x2e   : > { %v1511_v19 = vld [vmem:[%s1701_s7] sm:$0xff]   ;;  %1385 = vmatprep.subr.bf16.mxu1 %v1510_v18  ;;  %v1515_v23 = vld [vmem:[%s1701_s7 + $0x8] sm:$0xff]   ;;  %v1519_v27 = vld [vmem:[%s1701_s7 + $0x10] sm:$0xff]  }
  0x2f   : > { %v1512_v20 = vld [vmem:[%s1701_s7 + $0x80] sm:$0xff]   ;;  %1358 = vmatpush3.bf16.msra.mxu0 %v1511_v19  ;;  %v1516_v24 = vld [vmem:[%s1701_s7 + $0x88] sm:$0xff]   ;;  %v1520_v28 = vld [vmem:[%s1701_s7 + $0x90] sm:$0xff]  }
  0x30   : > { %1386 = vmatpush3.bf16.msra.mxu1 %v1512_v20  ;;  %1359 = vmatprep.subr.bf16.mxu0 %v1513_v21  ;;  %v1521_v29 = vld [vmem:[%s1701_s7 + $0x58] sm:$0xff]   ;;  %v1525_v33 = vld [vmem:[%s1701_s7 + $0x60] sm:$0xff]   ;;  %v1529_v37 = vld [vmem:[%s1701_s7 + $0x68] sm:$0xff]  }
  0x31   : > { %1387 = vmatprep.subr.bf16.mxu1 %v1514_v22  ;;  %v1522_v30 = vld [vmem:[%s1701_s7 + $0xd8] sm:$0xff]   ;;  %v1526_v34 = vld [vmem:[%s1701_s7 + $0xe0] sm:$0xff]   ;;  %v1530_v38 = vld [vmem:[%s1701_s7 + $0xe8] sm:$0xff]  }
  0x32   : > { %v1523_v31 = vld [vmem:[%s1701_s7 + $0x18] sm:$0xff]   ;;  %v1527_v35 = vld [vmem:[%s1701_s7 + $0x20] sm:$0xff]   ;;  %v1531_v39 = vld [vmem:[%s1701_s7 + $0x28] sm:$0xff]  }
  0x33   : > { %1360 = vmatpush3.bf16.msra.mxu0 %v1515_v23  ;;  %v1524_v32 = vld [vmem:[%s1701_s7 + $0x98] sm:$0xff]   ;;  %v1528_v36 = vld [vmem:[%s1701_s7 + $0xa0] sm:$0xff]   ;;  %v1532_v40 = vld [vmem:[%s1701_s7 + $0xa8] sm:$0xff]  }
  0x34   : > { %1388 = vmatpush3.bf16.msra.mxu1 %v1516_v24  ;;  %1361 = vmatprep.subr.bf16.mxu0 %v1517_v25  ;;  %v1533_v41 = vld [vmem:[%s1701_s7 + $0x70] sm:$0xff]   ;;  %v1537_v45 = vld [vmem:[%s1701_s7 + $0x78] sm:$0xff]   ;;  %v323_v49 = vld [vmem:[%s1703_s8] sm:$0xff] }
  0x35   : > { %1389 = vmatprep.subr.bf16.mxu1 %v1518_v26  ;;  %v1534_v42 = vld [vmem:[%s1701_s7 + $0xf0] sm:$0xff]   ;;  %v1538_v46 = vld [vmem:[%s1701_s7 + $0xf8] sm:$0xff]   ;;  %v327_v50 = vld [vmem:[%s1703_s8 + $0x20] sm:$0xff] }
  0x36   : > { %v1535_v43 = vld [vmem:[%s1701_s7 + $0x30] sm:$0xff]   ;;  %v1539_v47 = vld [vmem:[%s1701_s7 + $0x38] sm:$0xff]   ;;  %v324_v51 = vld [vmem:[%s1703_s8 + $0x8] sm:$0xff]  ;;  %v1271_v52 = vcombine.low %v323_v49, %v327_v50  ;;  %v1272_v53 = vcombine.high %v323_v49, %v327_v50 }
  0x37   : > { %1362 = vmatpush3.bf16.msra.mxu0 %v1519_v27  ;;  %v1536_v44 = vld [vmem:[%s1701_s7 + $0xb0] sm:$0xff]   ;;  %v1540_v48 = vld [vmem:[%s1701_s7 + $0xb8] sm:$0xff]   ;;  %v328_v54 = vld [vmem:[%s1703_s8 + $0x28] sm:$0xff] }
  0x38   : > { %1390 = vmatpush3.bf16.msra.mxu1 %v1520_v28  ;;  %1363 = vmatprep.subr.bf16.mxu0 %v1521_v29  ;;  %v1273_v55 = vcombine.low %v324_v51, %v328_v54  ;;  %v1274_v56 = vcombine.high %v324_v51, %v328_v54  ;;  %v1541_v57 = vld [vmem:[%s1701_s7 + $0x140] sm:$0xff]   ;;  %v1545_v61 = vld [vmem:[%s1701_s7 + $0x148] sm:$0xff]   ;;  %v1549_v1 = vld [vmem:[%s1701_s7 + $0x150] sm:$0xff]  }
  0x39   : > { %1391 = vmatprep.subr.bf16.mxu1 %v1522_v30  ;;  %963 = vmatprep.mubr.bf16.mxu0 %v1272_v53  ;;  %v1542_v58 = vld [vmem:[%s1701_s7 + $0x1c0] sm:$0xff]   ;;  %v1546_v62 = vld [vmem:[%s1701_s7 + $0x1c8] sm:$0xff]   ;;  %v1550_v2 = vld [vmem:[%s1701_s7 + $0x1d0] sm:$0xff]  }
  0x3a   : > { %1012 = vmatprep.mubr.bf16.mxu1 %v1274_v56  ;;  %v1543_v59 = vld [vmem:[%s1701_s7 + $0x100] sm:$0xff]   ;;  %v1547_v63 = vld [vmem:[%s1701_s7 + $0x108] sm:$0xff]   ;;  %v1551_v3 = vld [vmem:[%s1701_s7 + $0x110] sm:$0xff]  }
  0x3b   : > { %1364 = vmatpush3.bf16.msra.mxu0 %v1523_v31  ;;  %v1544_v60 = vld [vmem:[%s1701_s7 + $0x180] sm:$0xff]   ;;  %v1548_v0 = vld [vmem:[%s1701_s7 + $0x188] sm:$0xff]   ;;  %v1552_v4 = vld [vmem:[%s1701_s7 + $0x190] sm:$0xff]  }
  0x3c   : > { %1392 = vmatpush3.bf16.msra.mxu1 %v1524_v32  ;;  %1365 = vmatprep.subr.bf16.mxu0 %v1525_v33  ;;  %v1553_v5 = vld [vmem:[%s1701_s7 + $0x158] sm:$0xff]   ;;  %v1557_v9 = vld [vmem:[%s1701_s7 + $0x160] sm:$0xff]   ;;  %v332_v16 = vld [vmem:[%s1703_s8 + $0x48] sm:$0xff] }
  0x3d   : > { %1393 = vmatprep.subr.bf16.mxu1 %v1526_v34  ;;  %v1554_v6 = vld [vmem:[%s1701_s7 + $0x1d8] sm:$0xff]   ;;  %v1558_v10 = vld [vmem:[%s1701_s7 + $0x1e0] sm:$0xff]   ;;  %v336_v17 = vld [vmem:[%s1703_s8 + $0x68] sm:$0xff] }
  0x3e   : > { %v1555_v7 = vld [vmem:[%s1701_s7 + $0x118] sm:$0xff]   ;;  %v1559_v11 = vld [vmem:[%s1701_s7 + $0x120] sm:$0xff]   ;;  %v1282_v19 = vcombine.high %v332_v16, %v336_v17  ;;  %v1561_v20 = vld [vmem:[%s1701_s7 + $0x168] sm:$0xff]   ;;  %v1281_v21 = vcombine.low %v332_v16, %v336_v17 }
  0x3f   : > { %1366 = vmatpush3.bf16.msra.mxu0 %v1527_v35  ;;  %v1556_v8 = vld [vmem:[%s1701_s7 + $0x198] sm:$0xff]   ;;  %v1560_v12 = vld [vmem:[%s1701_s7 + $0x1a0] sm:$0xff]   ;;  %v1562_v22 = vld [vmem:[%s1701_s7 + $0x1e8] sm:$0xff]  }
  0x40   : > { %1394 = vmatpush3.bf16.msra.mxu1 %v1528_v36  ;;  %1367 = vmatprep.subr.bf16.mxu0 %v1529_v37  ;;  %v331_v13 = vld [vmem:[%s1703_s8 + $0x40] sm:$0xff]  ;;  %v1563_v23 = vld [vmem:[%s1701_s7 + $0x128] sm:$0xff]   ;;  %v1565_v25 = vld [vmem:[%s1701_s7 + $0x170] sm:$0xff]  }
  0x41   : > { %1395 = vmatprep.subr.bf16.mxu1 %v1530_v38  ;;  %v335_v14 = vld [vmem:[%s1703_s8 + $0x60] sm:$0xff]  ;;  %v1564_v24 = vld [vmem:[%s1701_s7 + $0x1a8] sm:$0xff]   ;;  %v1566_v26 = vld [vmem:[%s1701_s7 + $0x1f0] sm:$0xff]  }
  0x42   : > { %v1280_v15 = vcombine.high %v331_v13, %v335_v14  ;;  %v1279_v18 = vcombine.low %v331_v13, %v335_v14  ;;  %v1567_v27 = vld [vmem:[%s1701_s7 + $0x130] sm:$0xff]   ;;  %v1569_v29 = vld [vmem:[%s1701_s7 + $0x178] sm:$0xff]  }
  0x43   : > { %1368 = vmatpush3.bf16.msra.mxu0 %v1531_v39  ;;  %v1568_v28 = vld [vmem:[%s1701_s7 + $0x1b0] sm:$0xff]   ;;  %v1570_v30 = vld [vmem:[%s1701_s7 + $0x1f8] sm:$0xff]  }
  0x44   : > { %1396 = vmatpush3.bf16.msra.mxu1 %v1532_v40  ;;  %1369 = vmatprep.subr.bf16.mxu0 %v1533_v41  ;;  %v1571_v31 = vld [vmem:[%s1701_s7 + $0x138] sm:$0xff]   ;;  %v325_v33 = vld [vmem:[%s1703_s8 + $0x10] sm:$0xff] }
  0x45   : > { %1397 = vmatprep.subr.bf16.mxu1 %v1534_v42  ;;  %v1572_v32 = vld [vmem:[%s1701_s7 + $0x1b8] sm:$0xff]   ;;  %v329_v34 = vld [vmem:[%s1703_s8 + $0x30] sm:$0xff] }
  0x46   : > { %v326_v35 = vld [vmem:[%s1703_s8 + $0x18] sm:$0xff]  ;;  %v1275_v37 = vcombine.low %v325_v33, %v329_v34  ;;  %v1276_v38 = vcombine.high %v325_v33, %v329_v34  ;;  %v333_v41 = vld [vmem:[%s1703_s8 + $0x50] sm:$0xff] }
  0x47   : > { %1370 = vmatpush3.bf16.msra.mxu0 %v1535_v43  ;;  %v330_v36 = vld [vmem:[%s1703_s8 + $0x38] sm:$0xff]  ;;  %v337_v42 = vld [vmem:[%s1703_s8 + $0x70] sm:$0xff] }
  0x48   : > { %1398 = vmatpush3.bf16.msra.mxu1 %v1536_v44  ;;  %1371 = vmatprep.subr.bf16.mxu0 %v1537_v45  ;;  %v1277_v39 = vcombine.low %v326_v35, %v330_v36  ;;  %v1278_v40 = vcombine.high %v326_v35, %v330_v36  ;;  %v334_v43 = vld [vmem:[%s1703_s8 + $0x58] sm:$0xff]  ;;  %v1284_v44 = vcombine.high %v333_v41, %v337_v42 }
  0x49   : > { %1399 = vmatprep.subr.bf16.mxu1 %v1538_v46  ;;  %v338_v45 = vld [vmem:[%s1703_s8 + $0x78] sm:$0xff] }
  0x4a   : > { %v1286_v46 = vcombine.high %v334_v43, %v338_v45 }
  0x4b   : > { %1372 = vmatpush3.bf16.msra.mxu0 %v1539_v47  ;;  %v1283_v47 = vcombine.low %v333_v41, %v337_v42 }
  0x4c   : > { %1400 = vmatpush3.bf16.msra.mxu1 %v1540_v48  ;;  %1413 = vmatprep.subr.bf16.mxu0 %v1541_v57  ;;  %v1285_v48 = vcombine.low %v334_v43, %v338_v45 }
  0x4d   : > { %1441 = vmatprep.subr.bf16.mxu1 %v1542_v58 }
  0x4e   : > { %964 = vmatmul.mubr.bf16.vlgmr.msra.gmra.mrb[0].mxu0 %v1271_v52 }
  0x4f   : > { %1013 = vmatmul.mubr.bf16.vlgmr.msra.gmra.mrb[0].mxu1 %v1273_v55  ;;  %1414 = vmatpush3.bf16.msra.mxu0 %v1543_v59 }
  0x50   : > { %1442 = vmatpush3.bf16.msra.mxu1 %v1544_v60  ;;  %1415 = vmatprep.subr.bf16.mxu0 %v1545_v61 }
  0x51   : > { %1443 = vmatprep.subr.bf16.mxu1 %v1546_v62  ;;  %971 = vmatprep.mubr.bf16.mxu0 %v1280_v15 }
  0x52   : > { %1020 = vmatprep.mubr.bf16.mxu1 %v1282_v19 }
  0x53   : > { %1416 = vmatpush3.bf16.msra.mxu0 %v1547_v63 }
  0x54   : > { %1444 = vmatpush3.bf16.msra.mxu1 %v1548_v0  ;;  %1417 = vmatprep.subr.bf16.mxu0 %v1549_v1 }
  0x55   : > { %1445 = vmatprep.subr.bf16.mxu1 %v1550_v2 }
  0x56   : > { %972 = vmatmul.mubr.bf16.gmra.mrb[4].mxu0 %v1279_v18 }
  0x57   : > { %1418 = vmatpush3.bf16.msra.mxu0 %v1551_v3  ;;  %1021 = vmatmul.mubr.bf16.gmra.mrb[4].mxu1 %v1281_v21 }
  0x58   : > { %1446 = vmatpush3.bf16.msra.mxu1 %v1552_v4  ;;  %1419 = vmatprep.subr.bf16.mxu0 %v1553_v5 }
  0x59   : > { %1447 = vmatprep.subr.bf16.mxu1 %v1554_v6  ;;  %1061 = vmatprep.mubr.bf16.mxu0 %v1276_v38 }
  0x5a   : > { %1110 = vmatprep.mubr.bf16.mxu1 %v1278_v40 }
  0x5b   : > { %1420 = vmatpush3.bf16.msra.mxu0 %v1555_v7 }
  0x5c   : > { %1448 = vmatpush3.bf16.msra.mxu1 %v1556_v8  ;;  %1421 = vmatprep.subr.bf16.mxu0 %v1557_v9 }
  0x5d   : > { %1449 = vmatprep.subr.bf16.mxu1 %v1558_v10 }
  0x5f   : > { %1422 = vmatpush3.bf16.msra.mxu0 %v1559_v11 }
  0x60   : > { %1450 = vmatpush3.bf16.msra.mxu1 %v1560_v12  ;;  %1423 = vmatprep.subr.bf16.mxu0 %v1561_v20 }
  0x61   : > { %1451 = vmatprep.subr.bf16.mxu1 %v1562_v22 }
  0x63   : > { %1424 = vmatpush3.bf16.msra.mxu0 %v1563_v23 }
  0x64   : > { %1452 = vmatpush3.bf16.msra.mxu1 %v1564_v24  ;;  %1425 = vmatprep.subr.bf16.mxu0 %v1565_v25 }
  0x65   : > { %1453 = vmatprep.subr.bf16.mxu1 %v1566_v26  ;;  %v319_v26 = vld [vmem:[#allocation2] sm:$0xff] }
  0x67   : > { %1426 = vmatpush3.bf16.msra.mxu0 %v1567_v27 }
  0x68   : > { %1454 = vmatpush3.bf16.msra.mxu1 %v1568_v28  ;;  %1427 = vmatprep.subr.bf16.mxu0 %v1569_v29  ;;  %v320_v29 = vld [vmem:[#allocation2 + $0x8] sm:$0xff] }
  0x69   : > { %1455 = vmatprep.subr.bf16.mxu1 %v1570_v30 }
  0x6b   : > { %1428 = vmatpush3.bf16.msra.mxu0 %v1571_v31 }
  0x6c   : > { %1456 = vmatpush3.bf16.msra.mxu1 %v1572_v32 }
  0x6e   : > { %1062 = vmatmul.mubr.bf16.vlgmr.msra.gmra.mrb[8].mxu0 %v1275_v37 }
  0x6f   : > { %1111 = vmatmul.mubr.bf16.vlgmr.msra.gmra.mrb[8].mxu1 %v1277_v39  ;;  %1069 = vmatprep.mubr.bf16.mxu0 %v1284_v44 }
  0x70   : > { %1118 = vmatprep.mubr.bf16.mxu1 %v1286_v46  ;;  %v321_v46 = vld [vmem:[#allocation2 + $0x10] sm:$0xff] }
  0x76   : > { %1070 = vmatmul.mubr.bf16.gmra.mrb[12].mxu0 %v1283_v47 }
  0x77   : > { %1119 = vmatmul.mubr.bf16.gmra.mrb[12].mxu1 %v1285_v48 }
 0x121   : > { %v1373_v49 = vpop.f32.mrb[0].mxu0 }
 0x122   : > { %v1401_v50 = vpop.f32.mrb[0].mxu1  ;;  %v1374_v51 = vpop.f32.mrb[1].mxu0 }
 0x123   : > { %v1375_v52 = vadd.f32 %v1374_v51, %v1373_v49  ;;  %v1402_v53 = vpop.f32.mrb[1].mxu1  ;;  %v1376_v54 = vpop.f32.mrb[2].mxu0  ;;  %v322_v49 = vld [vmem:[#allocation2 + $0x18] sm:$0xff] }
 0x124   : > { %v1403_v55 = vadd.f32 %v1402_v53, %v1401_v50  ;;  %v1404_v56 = vpop.f32.mrb[2].mxu1  ;;  %v1377_v57 = vpop.f32.mrb[3].mxu0 }
 0x125   : > { %v1378_v58 = vadd.f32 %v1377_v57, %v1376_v54  ;;  %v1405_v59 = vpop.f32.mrb[3].mxu1 }
 0x126   : > { %v1015_v60 = vadd.f32 %v1403_v55, %v1375_v52  ;;  %v1406_v61 = vadd.f32 %v1405_v59, %v1404_v56 }
 0x128   : > { %v1018_v62 = vadd.f32 %v1406_v61, %v1378_v58 }
 0x129   : > { %v1379_v63 = vpop.f32.mrb[4].mxu0 }
 0x12a   : > { %v1407_v0 = vpop.f32.mrb[4].mxu1  ;;  %v1380_v1 = vpop.f32.mrb[5].mxu0 }
 0x12b   : > { %v1381_v2 = vadd.f32 %v1380_v1, %v1379_v63  ;;  %v1408_v3 = vpop.f32.mrb[5].mxu1  ;;  %v1382_v4 = vpop.f32.mrb[6].mxu0 }
 0x12c   : > { %v1409_v5 = vadd.f32 %v1408_v3, %v1407_v0  ;;  %v1410_v6 = vpop.f32.mrb[6].mxu1  ;;  %v1383_v7 = vpop.f32.mrb[7].mxu0 }
 0x12d   : > { %v1384_v8 = vadd.f32 %v1383_v7, %v1382_v4  ;;  %v1411_v9 = vpop.f32.mrb[7].mxu1 }
 0x12e   : > { %v1023_v10 = vadd.f32 %v1409_v5, %v1381_v2  ;;  %v1412_v11 = vadd.f32 %v1411_v9, %v1410_v6 }
 0x130   : > { %v1026_v12 = vadd.f32 %v1412_v11, %v1384_v8 }
 0x141   : > { %v1429_v13 = vpop.f32.mrb[8].mxu0 }
 0x142   : > { %v1457_v14 = vpop.f32.mrb[8].mxu1  ;;  %v1430_v15 = vpop.f32.mrb[9].mxu0 }
 0x143   : > { %v1458_v16 = vpop.f32.mrb[9].mxu1  ;;  %v1431_v17 = vadd.f32 %v1430_v15, %v1429_v13  ;;  %v1432_v19 = vpop.f32.mrb[10].mxu0 }
 0x144   : > { %v1459_v18 = vadd.f32 %v1458_v16, %v1457_v14  ;;  %v1460_v20 = vpop.f32.mrb[10].mxu1  ;;  %v1433_v21 = vpop.f32.mrb[11].mxu0 }
 0x145   : > { %v1461_v22 = vpop.f32.mrb[11].mxu1  ;;  %v1064_v23 = vadd.f32 %v1431_v17, %v1015_v60  ;;  %v1434_v24 = vadd.f32 %v1433_v21, %v1432_v19 }
 0x146   : > { %v1462_v25 = vadd.f32 %v1461_v22, %v1460_v20 }
 0x147   : > { %v1113_v27 = vadd.f32 %v1459_v18, %v1064_v23  ;;  %v1067_v28 = vadd.f32 %v1434_v24, %v1018_v62 }
 0x149   : > { %v1127_v30 = vadd.f32 %v1113_v27, %v319_v26  ;;  %v1116_v31 = vadd.f32 %v1462_v25, %v1067_v28  ;;  %v1435_v32 = vpop.f32.mrb[12].mxu0 }
 0x14a   : > { %v1463_v33 = vpop.f32.mrb[12].mxu1  ;;  %v1436_v34 = vpop.f32.mrb[13].mxu0 }
 0x14b   : > { %v1464_v35 = vpop.f32.mrb[13].mxu1  ;;  %1131 = vst [vmem:[#allocation2] sm:$0xff] %v1127_v30  ;;  %v1128_v36 = vadd.f32 %v1116_v31, %v320_v29  ;;  %v1437_v37 = vadd.f32 %v1436_v34, %v1435_v32  ;;  %v1438_v39 = vpop.f32.mrb[14].mxu0 }
 0x14c   : > { %v1465_v38 = vadd.f32 %v1464_v35, %v1463_v33  ;;  %v1466_v40 = vpop.f32.mrb[14].mxu1  ;;  %v1439_v41 = vpop.f32.mrb[15].mxu0 }
 0x14d   : > { %v1467_v42 = vpop.f32.mrb[15].mxu1  ;;  %1132 = vst [vmem:[#allocation2 + $0x8] sm:$0xff] %v1128_v36  ;;  %v1072_v43 = vadd.f32 %v1437_v37, %v1023_v10  ;;  %v1440_v44 = vadd.f32 %v1439_v41, %v1438_v39 }
 0x14e   : > { %v1468_v45 = vadd.f32 %v1467_v42, %v1466_v40 }
 0x14f   : > { %v1121_v47 = vadd.f32 %v1465_v38, %v1072_v43  ;;  %v1075_v48 = vadd.f32 %v1440_v44, %v1026_v12  ;;  %1138 = sbr.rel (%p1351_p11) target bundleno = 350 (0x15e), region = 63 }
 0x151   : > { %v1129_v50 = vadd.f32 %v1121_v47, %v321_v46  ;;  %v1124_v51 = vadd.f32 %v1468_v45, %v1075_v48 }
 0x152   : > { %v1139_v53 = vld [vmem:[#allocation2] sm:$0xff] (!%p1351_p11) }
 0x153   : > { %1133 = vst [vmem:[#allocation2 + $0x10] sm:$0xff] %v1129_v50  ;;  %v1130_v52 = vadd.f32 %v1124_v51, %v322_v49  ;;  %1143 = vst [vmem:[%s1820_s3] sm:$0xff] (!%p1351_p11), %v1139_v53 }
 0x154   : > { %v1140_v54 = vld [vmem:[#allocation2 + $0x8] sm:$0xff] (!%p1351_p11) }
 0x155   : > { %1134 = vst [vmem:[#allocation2 + $0x18] sm:$0xff] %v1130_v52  ;;  %1144 = vst [vmem:[%s1820_s3 + $0x8] sm:$0xff] (!%p1351_p11), %v1140_v54 }
 0x15a   : > { %v1141_v55 = vld [vmem:[#allocation2 + $0x10] sm:$0xff] }
 0x15b   : > { %1145 = vst [vmem:[%s1820_s3 + $0x10] sm:$0xff] %v1141_v55 }
 0x15c   : > { %v1142_v56 = vld [vmem:[#allocation2 + $0x18] sm:$0xff] }
 0x15d   : > { %1146 = vst [vmem:[%s1820_s3 + $0x18] sm:$0xff] %v1142_v56 }
 0x15e PF: > { %s13_s16 = sadd.s32 1, %s1611_s16   ;;  %s1821_s12 = smov %s1599_s13 }
 0x15f   : > { %p10_p12 = scmp.ge.s32.totalorder %s13_s16, 10   ;;  %s1822_s13 = smov %s1668_s20 }
 0x160   : > { %s1823_s14 = smov %s1607_s15  ;;  %s1824_s15 = smov %s1826_s17 }
 0x161   :  { %12 = sbr.rel (!%p10_p12) target bundleno = 3 (0x3), region = 104 }

// kernel: discriminator_forward.8
= control target key start
LH: loop header
LB: loop body
LE: loop exit
PB: predicated region body
PF: predicated region fallthrough
CT: control target
= control target key end

     0   :  { %s3554_s12 = smov 0   ;;  %s3556_s13 = smov 0   ;;  %s3967_s0 = inlined_call_operand.vmem [shape: bf16[32,4096], index: 0, kind: input, shape index: {}]   ;;  %s3968_s1 = inlined_call_operand.vmem [shape: bf16[4096,512], index: 1, kind: input, shape index: {}]   ;;  %s3969_s2 = inlined_call_operand.vmem [shape: f32[1,512], index: 2, kind: input, shape index: {}]   ;;  %s3970_s3 = inlined_call_operand.vmem [shape: bf16[32,512], index: 3, kind: output, shape index: {}]  }
   0x1   :  { %s3558_s14 = smov 0   ;;  %s3560_s15 = smov 0  }
   0x2   :  { %s3562_s16 = smov 0  }
   0x3 LB: > { %s25_s17 = sadd.s32 1, %s3528_s15  ;;  %p48_p1 = scmp.ne.s32.totalorder %s3520_s13, %s3516_s12  ;;  %s3532_s16 = sphi %s3562_s16, %s13_s16   ;;  %s3528_s15 = sphi %s3560_s15, %s3974_s15   ;;  %s3524_s14 = sphi %s3558_s14, %s3973_s14   ;;  %s3520_s13 = sphi %s3556_s13, %s3972_s13   ;;  %s3516_s12 = sphi %s3554_s12, %s3971_s12  }
   0x4   : > { %p26_p0 = scmp.ge.s32.totalorder %s25_s17, 4  ;;  %p49_p2 = scmp.eq.s32.totalorder %s3532_s16, 0 }
   0x5   : > { %s41_s19 = sadd.s32 1, %s3520_s13  ;;  %p2717_p5 = scmp.ge.s32.totalorder %s3532_s16, 4 }
   0x6   : > { %s3976_s17 = smov (%p26_p0, %s25_s17), 0  ;;  %p50_p3 = por %p49_p2, %p48_p1 }
   0x7   : > { %s37_s18 = ssub.s32 %s3528_s15, %s3976_s17  ;;  %164 = sbr.rel (%p2717_p5) target bundleno = 26 (0x1a), region = 20 }
   0x8   : > { %p39_p4 = scmp.eq.s32.totalorder %s37_s18, 0 }
   0xa   : > { %s3589_s20 = scalar_select %p39_p4, %s3520_s13, %s41_s19  }
   0xe   : > { %167 = sbr.rel (!%p50_p3) target bundleno = 26 (0x1a), region = 24  ;;  %s169_s21 = sand.u32 (%p50_p3), 1, %s3520_s13  }
   0xf   : > { %s3012_s22 = sshll.u32 (%p50_p3), %s3528_s15, 5  ;;  %s2718_s23 = sshll.u32 (%p50_p3), %s169_s21, 7 }
  0x10   : > { %s3597_s26 = scalar_lea.vmem (%p50_p3), %s3967_s0, %s3012_s22  ;;  %s171_s27 = scalar_lea.vmem (%p50_p3), [#allocation3], %s2718_s23 }
  0x11   : > { %v190_v0 = vld [vmem:[%s3597_s26] sm:$0xff] (%p50_p3)  ;;  %v192_v1 = vld [vmem:[%s3597_s26 + $0x8] sm:$0xff] (%p50_p3)  ;;  %v194_v2 = vld [vmem:[%s3597_s26 + $0x10] sm:$0xff] (%p50_p3) }
  0x12   : > { %191 = vst [vmem:[%s171_s27] sm:$0xff] (%p50_p3), %v190_v0  ;;  %193 = vst [vmem:[%s171_s27 + $0x8] sm:$0xff] (%p50_p3), %v192_v1  ;;  %v196_v3 = vld [vmem:[%s3597_s26 + $0x18] sm:$0xff] (%p50_p3)  ;;  %v198_v4 = vld [vmem:[%s3597_s26 + $0x80] sm:$0xff] (%p50_p3) }
  0x13   : > { %195 = vst [vmem:[%s171_s27 + $0x10] sm:$0xff] (%p50_p3), %v194_v2  ;;  %v200_v5 = vld [vmem:[%s3597_s26 + $0x88] sm:$0xff] (%p50_p3)  ;;  %197 = vst [vmem:[%s171_s27 + $0x18] sm:$0xff] (%p50_p3), %v196_v3  ;;  %v202_v6 = vld [vmem:[%s3597_s26 + $0x90] sm:$0xff] (%p50_p3) }
  0x14   : > { %199 = vst [vmem:[%s171_s27 + $0x20] sm:$0xff] (%p50_p3), %v198_v4  ;;  %201 = vst [vmem:[%s171_s27 + $0x28] sm:$0xff] (%p50_p3), %v200_v5  ;;  %v204_v7 = vld [vmem:[%s3597_s26 + $0x98] sm:$0xff] (%p50_p3)  ;;  %v206_v8 = vld [vmem:[%s3597_s26 + $0x100] sm:$0xff] (%p50_p3) }
  0x15   : > { %203 = vst [vmem:[%s171_s27 + $0x30] sm:$0xff] %v202_v6  ;;  %205 = vst [vmem:[%s171_s27 + $0x38] sm:$0xff] %v204_v7  ;;  %v208_v9 = vld [vmem:[%s3597_s26 + $0x108] sm:$0xff]  ;;  %v210_v10 = vld [vmem:[%s3597_s26 + $0x110] sm:$0xff] }
  0x16   : > { %207 = vst [vmem:[%s171_s27 + $0x40] sm:$0xff] %v206_v8  ;;  %v212_v11 = vld [vmem:[%s3597_s26 + $0x118] sm:$0xff]  ;;  %209 = vst [vmem:[%s171_s27 + $0x48] sm:$0xff] %v208_v9  ;;  %v214_v12 = vld [vmem:[%s3597_s26 + $0x180] sm:$0xff] }
  0x17   : > { %211 = vst [vmem:[%s171_s27 + $0x50] sm:$0xff] %v210_v10  ;;  %213 = vst [vmem:[%s171_s27 + $0x58] sm:$0xff] %v212_v11  ;;  %v216_v13 = vld [vmem:[%s3597_s26 + $0x188] sm:$0xff]  ;;  %v218_v14 = vld [vmem:[%s3597_s26 + $0x190] sm:$0xff] }
  0x18   : > { %215 = vst [vmem:[%s171_s27 + $0x60] sm:$0xff] %v214_v12  ;;  %217 = vst [vmem:[%s171_s27 + $0x68] sm:$0xff] %v216_v13  ;;  %v220_v15 = vld [vmem:[%s3597_s26 + $0x198] sm:$0xff] }
  0x19   : > { %219 = vst [vmem:[%s171_s27 + $0x70] sm:$0xff] %v218_v14  ;;  %221 = vst [vmem:[%s171_s27 + $0x78] sm:$0xff] %v220_v15 }
  0x1a PF: > { %p2721_p6 = scmp.ge.s32.totalorder %s3532_s16, 1  ;;  %p241_p7 = scmp.lt.s32.totalorder %s3532_s16, 5 }
  0x1c   : > { %p242_p8 = pnand %p2721_p6, %p241_p7 }
  0x1d   : > { %s248_s28 = sand.u32 (!%p242_p8), 1, %s3516_s12   ;;  %s2723_s29 = sshll.u32 (!%p242_p8), %s3524_s14, 7 }
  0x1e   : > { %245 = sbr.rel (%p242_p8) target bundleno = 553 (0x229), region = 51  ;;  %s2722_s30 = sshll.u32 (!%p242_p8), %s248_s28, 7 }
  0x1f   : > { %p294_p9 = scmp.lt.s32.totalorder (!%p242_p8), %s2723_s29, 511  ;;  %s3624_s8 = scalar_lea.vmem (!%p242_p8), [#allocation3], %s2722_s30 }
  0x20   : > { %p2726_p10 = scmp.ne.s32.totalorder (!%p242_p8), %s3524_s14, 0 }
  0x25   : > { %s3978_s29 = smov (!%p294_p9, %s2723_s29), 511  ;;  %324 = sbr.rel (%p2726_p10) target bundleno = 54 (0x36), region = 59 }
  0x26   : > { %s3013_s4 = sshll.u32 %s3978_s29, 4  ;;  %v327_v16 = vlaneseq (!%p2726_p10)  ;;  %v325_v18 = vld [vmem:[%s3969_s2] sm:$0xf] (!%p2726_p10) }
  0x27   : > { %s3622_s7 = scalar_lea.vmem %s3968_s1, %s3013_s4 }
  0x28   : > { %v328_v17 = vshrl.u32 (!%p2726_p10), %v327_v16, 7 }
  0x2a   : > { %v329_v19 = vsub.s32 (!%p2726_p10), 0, %v328_v17  ;;  %v333_v20 = vsub.s32 (!%p2726_p10), 1, %v328_v17  ;;  %v337_v21 = vsub.s32 (!%p2726_p10), 2, %v328_v17  ;;  %v341_v22 = vsub.s32 (!%p2726_p10), 3, %v328_v17 }
  0x2c   : > { %v330_v23 = vrot.slane %v325_v18, %v329_v19  ;;  %v334_v24 = vrot.slane %v325_v18, %v333_v20  ;;  %v338_v25 = vrot.slane %v325_v18, %v337_v21  ;;  %v342_v26 = vrot.slane %v325_v18, %v341_v22 }
  0x2e   : > { %347 = vst [vmem:[#allocation2] sm:$0xff] %v330_v23  ;;  %351 = vst [vmem:[#allocation2 + $0x20] sm:$0xff] %v330_v23 }
  0x2f   : > { %355 = vst [vmem:[#allocation2 + $0x40] sm:$0xff] %v330_v23  ;;  %359 = vst [vmem:[#allocation2 + $0x60] sm:$0xff] %v330_v23 }
  0x30   : > { %348 = vst [vmem:[#allocation2 + $0x8] sm:$0xff] %v334_v24  ;;  %352 = vst [vmem:[#allocation2 + $0x28] sm:$0xff] %v334_v24 }
  0x31   : > { %356 = vst [vmem:[#allocation2 + $0x48] sm:$0xff] %v334_v24  ;;  %360 = vst [vmem:[#allocation2 + $0x68] sm:$0xff] %v334_v24 }
  0x32   : > { %349 = vst [vmem:[#allocation2 + $0x10] sm:$0xff] %v338_v25  ;;  %353 = vst [vmem:[#allocation2 + $0x30] sm:$0xff] %v338_v25 }
  0x33   : > { %357 = vst [vmem:[#allocation2 + $0x50] sm:$0xff] %v338_v25  ;;  %361 = vst [vmem:[#allocation2 + $0x70] sm:$0xff] %v338_v25 }
  0x34   : > { %350 = vst [vmem:[#allocation2 + $0x18] sm:$0xff] %v342_v26  ;;  %354 = vst [vmem:[#allocation2 + $0x38] sm:$0xff] %v342_v26 }
  0x35   : > { %358 = vst [vmem:[#allocation2 + $0x58] sm:$0xff] %v342_v26  ;;  %362 = vst [vmem:[#allocation2 + $0x78] sm:$0xff] %v342_v26 }
  0x36 PF: > { %v3110_v27 = vld [vmem:[%s3622_s7 + $0x4] ss:$16 sps:$4 sm:$0xff]   ;;  %v3112_v28 = vld [vmem:[%s3622_s7 + $0xc] ss:$16 sps:$4 sm:$0xff]   ;;  %v3114_v29 = vld [vmem:[%s3622_s7] ss:$16 sps:$4 sm:$0xff]  }
  0x37   : > { %2011 = vmatprep.subr.bf16.mxu0 %v3110_v27  ;;  %v3115_v30 = vld [vmem:[%s3622_s7 + $0x8] ss:$16 sps:$4 sm:$0xff]   ;;  %2223 = vmatprep.subr.bf16.mxu1 %v3112_v28  ;;  %v3116_v31 = vld [vmem:[%s3622_s7 + $0x24] ss:$16 sps:$4 sm:$0xff]   ;;  %v3118_v32 = vld [vmem:[%s3622_s7 + $0x2c] ss:$16 sps:$4 sm:$0xff]  }
  0x38   : > { %2012 = vmatpush1.bf16.msra.mxu0 %v3114_v29  ;;  %2224 = vmatpush1.bf16.msra.mxu1 %v3115_v30  ;;  %v3120_v33 = vld [vmem:[%s3622_s7 + $0x20] ss:$16 sps:$4 sm:$0xff]   ;;  %v3121_v34 = vld [vmem:[%s3622_s7 + $0x28] ss:$16 sps:$4 sm:$0xff]   ;;  %v3122_v35 = vld [vmem:[%s3622_s7 + $0x44] ss:$16 sps:$4 sm:$0xff]  }
  0x39   : > { %2013 = vmatprep.subr.bf16.mxu0 %v3116_v31  ;;  %2225 = vmatprep.subr.bf16.mxu1 %v3118_v32  ;;  %v3124_v36 = vld [vmem:[%s3622_s7 + $0x4c] ss:$16 sps:$4 sm:$0xff]   ;;  %v3126_v37 = vld [vmem:[%s3622_s7 + $0x40] ss:$16 sps:$4 sm:$0xff]   ;;  %v3127_v38 = vld [vmem:[%s3622_s7 + $0x48] ss:$16 sps:$4 sm:$0xff]  }
  0x3a   : > { %v3128_v39 = vld [vmem:[%s3622_s7 + $0x64] ss:$16 sps:$4 sm:$0xff]   ;;  %v3130_v40 = vld [vmem:[%s3622_s7 + $0x6c] ss:$16 sps:$4 sm:$0xff]   ;;  %v3132_v41 = vld [vmem:[%s3622_s7 + $0x60] ss:$16 sps:$4 sm:$0xff]  }
  0x3b   : > { %v3133_v42 = vld [vmem:[%s3622_s7 + $0x68] ss:$16 sps:$4 sm:$0xff]   ;;  %v3134_v43 = vld [vmem:[%s3622_s7 + $0x84] ss:$16 sps:$4 sm:$0xff]   ;;  %v3136_v44 = vld [vmem:[%s3622_s7 + $0x8c] ss:$16 sps:$4 sm:$0xff]  }
  0x3c   : > { %2014 = vmatpush1.bf16.msra.mxu0 %v3120_v33  ;;  %2226 = vmatpush1.bf16.msra.mxu1 %v3121_v34  ;;  %v3138_v45 = vld [vmem:[%s3622_s7 + $0x80] ss:$16 sps:$4 sm:$0xff]   ;;  %v3139_v46 = vld [vmem:[%s3622_s7 + $0x88] ss:$16 sps:$4 sm:$0xff]   ;;  %v3140_v47 = vld [vmem:[%s3622_s7 + $0xa4] ss:$16 sps:$4 sm:$0xff]  }
  0x3d   : > { %2015 = vmatprep.subr.bf16.mxu0 %v3122_v35  ;;  %2227 = vmatprep.subr.bf16.mxu1 %v3124_v36  ;;  %v3142_v48 = vld [vmem:[%s3622_s7 + $0xac] ss:$16 sps:$4 sm:$0xff]   ;;  %v3144_v49 = vld [vmem:[%s3622_s7 + $0xa0] ss:$16 sps:$4 sm:$0xff]   ;;  %v3145_v50 = vld [vmem:[%s3622_s7 + $0xa8] ss:$16 sps:$4 sm:$0xff]  }
  0x3e   : > { %v3146_v51 = vld [vmem:[%s3622_s7 + $0xc4] ss:$16 sps:$4 sm:$0xff]   ;;  %v3148_v52 = vld [vmem:[%s3622_s7 + $0xcc] ss:$16 sps:$4 sm:$0xff]   ;;  %v3150_v53 = vld [vmem:[%s3622_s7 + $0xc0] ss:$16 sps:$4 sm:$0xff]  }
  0x3f   : > { %v3151_v54 = vld [vmem:[%s3622_s7 + $0xc8] ss:$16 sps:$4 sm:$0xff]   ;;  %v3152_v55 = vld [vmem:[%s3622_s7 + $0xe4] ss:$16 sps:$4 sm:$0xff]   ;;  %v3154_v56 = vld [vmem:[%s3622_s7 + $0xec] ss:$16 sps:$4 sm:$0xff]  }
  0x40   : > { %2016 = vmatpush1.bf16.msra.mxu0 %v3126_v37  ;;  %2228 = vmatpush1.bf16.msra.mxu1 %v3127_v38  ;;  %v3156_v57 = vld [vmem:[%s3622_s7 + $0xe0] ss:$16 sps:$4 sm:$0xff]   ;;  %v3157_v58 = vld [vmem:[%s3622_s7 + $0xe8] ss:$16 sps:$4 sm:$0xff]   ;;  %v3158_v59 = vld [vmem:[%s3622_s7 + $0x104] ss:$16 sps:$4 sm:$0xff]  }
  0x41   : > { %2017 = vmatprep.subr.bf16.mxu0 %v3128_v39  ;;  %2229 = vmatprep.subr.bf16.mxu1 %v3130_v40  ;;  %v3160_v60 = vld [vmem:[%s3622_s7 + $0x10c] ss:$16 sps:$4 sm:$0xff]   ;;  %v3162_v61 = vld [vmem:[%s3622_s7 + $0x100] ss:$16 sps:$4 sm:$0xff]   ;;  %v3163_v62 = vld [vmem:[%s3622_s7 + $0x108] ss:$16 sps:$4 sm:$0xff]  }
  0x42   : > { %v3164_v63 = vld [vmem:[%s3622_s7 + $0x124] ss:$16 sps:$4 sm:$0xff]   ;;  %v3166_v0 = vld [vmem:[%s3622_s7 + $0x12c] ss:$16 sps:$4 sm:$0xff]   ;;  %v3168_v1 = vld [vmem:[%s3622_s7 + $0x120] ss:$16 sps:$4 sm:$0xff]  }
  0x43   : > { %v3169_v2 = vld [vmem:[%s3622_s7 + $0x128] ss:$16 sps:$4 sm:$0xff]   ;;  %v3170_v3 = vld [vmem:[%s3622_s7 + $0x144] ss:$16 sps:$4 sm:$0xff]   ;;  %v3172_v4 = vld [vmem:[%s3622_s7 + $0x14c] ss:$16 sps:$4 sm:$0xff]  }
  0x44   : > { %2018 = vmatpush1.bf16.msra.mxu0 %v3132_v41  ;;  %2230 = vmatpush1.bf16.msra.mxu1 %v3133_v42  ;;  %v3174_v5 = vld [vmem:[%s3622_s7 + $0x140] ss:$16 sps:$4 sm:$0xff]   ;;  %v3175_v6 = vld [vmem:[%s3622_s7 + $0x148] ss:$16 sps:$4 sm:$0xff]   ;;  %v3176_v7 = vld [vmem:[%s3622_s7 + $0x164] ss:$16 sps:$4 sm:$0xff]  }
  0x45   : > { %2019 = vmatprep.subr.bf16.mxu0 %v3134_v43  ;;  %2231 = vmatprep.subr.bf16.mxu1 %v3136_v44  ;;  %v3178_v8 = vld [vmem:[%s3622_s7 + $0x16c] ss:$16 sps:$4 sm:$0xff]   ;;  %v379_v9 = vld [vmem:[%s3624_s8] sm:$0xff]  ;;  %v3181_v12 = vld [vmem:[%s3622_s7 + $0x168] ss:$16 sps:$4 sm:$0xff]   ;;  %p2999_p11 = scmp.ne.s32.totalorder %s3524_s14, 3 }
  0x46   : > { %v383_v10 = vld [vmem:[%s3624_s8 + $0x20] sm:$0xff]  ;;  %v3184_v15 = vld [vmem:[%s3622_s7 + $0x18c] ss:$16 sps:$4 sm:$0xff]   ;;  %v3187_v17 = vld [vmem:[%s3622_s7 + $0x188] ss:$16 sps:$4 sm:$0xff]  }
  0x47   : > { %v3180_v11 = vld [vmem:[%s3622_s7 + $0x160] ss:$16 sps:$4 sm:$0xff]   ;;  %v2728_v13 = vcombine.high %v379_v9, %v383_v10  ;;  %v3182_v14 = vld [vmem:[%s3622_s7 + $0x184] ss:$16 sps:$4 sm:$0xff]   ;;  %v3190_v19 = vld [vmem:[%s3622_s7 + $0x1ac] ss:$16 sps:$4 sm:$0xff]   ;;  %v2727_v32 = vcombine.low %v379_v9, %v383_v10 }
  0x48   : > { %2020 = vmatpush1.bf16.msra.mxu0 %v3138_v45  ;;  %2232 = vmatpush1.bf16.msra.mxu1 %v3139_v46  ;;  %v3186_v16 = vld [vmem:[%s3622_s7 + $0x180] ss:$16 sps:$4 sm:$0xff]   ;;  %v3188_v18 = vld [vmem:[%s3622_s7 + $0x1a4] ss:$16 sps:$4 sm:$0xff]   ;;  %v3193_v21 = vld [vmem:[%s3622_s7 + $0x1a8] ss:$16 sps:$4 sm:$0xff]  }
  0x49   : > { %2021 = vmatprep.subr.bf16.mxu0 %v3140_v47  ;;  %2233 = vmatprep.subr.bf16.mxu1 %v3142_v48  ;;  %v3192_v20 = vld [vmem:[%s3622_s7 + $0x1a0] ss:$16 sps:$4 sm:$0xff]   ;;  %v3194_v22 = vld [vmem:[%s3622_s7 + $0x1c4] ss:$16 sps:$4 sm:$0xff]   ;;  %v3196_v23 = vld [vmem:[%s3622_s7 + $0x1cc] ss:$16 sps:$4 sm:$0xff]  }
  0x4a   : > { %2043 = vmatprep.mubr.bf16.mxu0 %v2728_v13  ;;  %2255 = vmatprep.mubr.bf16.mxu1 %v2728_v13  ;;  %v3198_v24 = vld [vmem:[%s3622_s7 + $0x1c0] ss:$16 sps:$4 sm:$0xff]   ;;  %v3199_v25 = vld [vmem:[%s3622_s7 + $0x1c8] ss:$16 sps:$4 sm:$0xff]   ;;  %v3200_v26 = vld [vmem:[%s3622_s7 + $0x1e4] ss:$16 sps:$4 sm:$0xff]  }
  0x4b   : > { %v3202_v27 = vld [vmem:[%s3622_s7 + $0x1ec] ss:$16 sps:$4 sm:$0xff]   ;;  %v3204_v28 = vld [vmem:[%s3622_s7 + $0x1e0] ss:$16 sps:$4 sm:$0xff]   ;;  %v3205_v29 = vld [vmem:[%s3622_s7 + $0x1e8] ss:$16 sps:$4 sm:$0xff]  }
  0x4c   : > { %2022 = vmatpush1.bf16.msra.mxu0 %v3144_v49  ;;  %2234 = vmatpush1.bf16.msra.mxu1 %v3145_v50  ;;  %v3208_v30 = vld [vmem:[%s3622_s7 + $0x204] ss:$16 sps:$4 sm:$0xff]   ;;  %v3211_v31 = vld [vmem:[%s3622_s7 + $0x20c] ss:$16 sps:$4 sm:$0xff]   ;;  %v3206_v33 = vld [vmem:[%s3622_s7 + $0x200] ss:$16 sps:$4 sm:$0xff]  }
  0x4d   : > { %2023 = vmatprep.subr.bf16.mxu0 %v3146_v51  ;;  %2235 = vmatprep.subr.bf16.mxu1 %v3148_v52  ;;  %v3209_v34 = vld [vmem:[%s3622_s7 + $0x208] ss:$16 sps:$4 sm:$0xff]   ;;  %v3214_v35 = vld [vmem:[%s3622_s7 + $0x224] ss:$16 sps:$4 sm:$0xff]   ;;  %v3217_v36 = vld [vmem:[%s3622_s7 + $0x22c] ss:$16 sps:$4 sm:$0xff]  }
  0x4e   : > { %v3212_v37 = vld [vmem:[%s3622_s7 + $0x220] ss:$16 sps:$4 sm:$0xff]   ;;  %v3215_v38 = vld [vmem:[%s3622_s7 + $0x228] ss:$16 sps:$4 sm:$0xff]   ;;  %v3220_v39 = vld [vmem:[%s3622_s7 + $0x244] ss:$16 sps:$4 sm:$0xff]  }
  0x4f   : > { %v3223_v40 = vld [vmem:[%s3622_s7 + $0x24c] ss:$16 sps:$4 sm:$0xff]   ;;  %v3218_v41 = vld [vmem:[%s3622_s7 + $0x240] ss:$16 sps:$4 sm:$0xff]   ;;  %v3221_v42 = vld [vmem:[%s3622_s7 + $0x248] ss:$16 sps:$4 sm:$0xff]  }
  0x50   : > { %2024 = vmatpush1.bf16.msra.mxu0 %v3150_v53  ;;  %2236 = vmatpush1.bf16.msra.mxu1 %v3151_v54  ;;  %v3226_v43 = vld [vmem:[%s3622_s7 + $0x264] ss:$16 sps:$4 sm:$0xff]   ;;  %v3229_v44 = vld [vmem:[%s3622_s7 + $0x26c] ss:$16 sps:$4 sm:$0xff]   ;;  %v3224_v45 = vld [vmem:[%s3622_s7 + $0x260] ss:$16 sps:$4 sm:$0xff]  }
  0x51   : > { %2025 = vmatprep.subr.bf16.mxu0 %v3152_v55  ;;  %2237 = vmatprep.subr.bf16.mxu1 %v3154_v56  ;;  %v3227_v46 = vld [vmem:[%s3622_s7 + $0x268] ss:$16 sps:$4 sm:$0xff]   ;;  %v3232_v47 = vld [vmem:[%s3622_s7 + $0x284] ss:$16 sps:$4 sm:$0xff]   ;;  %v3235_v48 = vld [vmem:[%s3622_s7 + $0x28c] ss:$16 sps:$4 sm:$0xff]  }
  0x52   : > { %v3230_v49 = vld [vmem:[%s3622_s7 + $0x280] ss:$16 sps:$4 sm:$0xff]   ;;  %v3233_v50 = vld [vmem:[%s3622_s7 + $0x288] ss:$16 sps:$4 sm:$0xff]   ;;  %v3238_v51 = vld [vmem:[%s3622_s7 + $0x2a4] ss:$16 sps:$4 sm:$0xff]  }
  0x53   : > { %v3241_v52 = vld [vmem:[%s3622_s7 + $0x2ac] ss:$16 sps:$4 sm:$0xff]   ;;  %v387_v53 = vld [vmem:[%s3624_s8 + $0x40] sm:$0xff]  ;;  %v3257_v9 = vld [vmem:[%s3622_s7 + $0x308] ss:$16 sps:$4 sm:$0xff]  }
  0x54   : > { %2026 = vmatpush1.bf16.msra.mxu0 %v3156_v57  ;;  %2238 = vmatpush1.bf16.msra.mxu1 %v3157_v58  ;;  %v391_v54 = vld [vmem:[%s3624_s8 + $0x60] sm:$0xff]  ;;  %v3239_v57 = vld [vmem:[%s3622_s7 + $0x2a8] ss:$16 sps:$4 sm:$0xff]  }
  0x55   : > { %2027 = vmatprep.subr.bf16.mxu0 %v3158_v59  ;;  %2239 = vmatprep.subr.bf16.mxu1 %v3160_v60  ;;  %v2736_v55 = vcombine.high %v387_v53, %v391_v54  ;;  %v3236_v56 = vld [vmem:[%s3622_s7 + $0x2a0] ss:$16 sps:$4 sm:$0xff]   ;;  %v2735_v58 = vcombine.low %v387_v53, %v391_v54  ;;  %v3244_v59 = vld [vmem:[%s3622_s7 + $0x2c4] ss:$16 sps:$4 sm:$0xff]   ;;  %v3247_v60 = vld [vmem:[%s3622_s7 + $0x2cc] ss:$16 sps:$4 sm:$0xff]  }
  0x56   : > { %v3262_v10 = vld [vmem:[%s3622_s7 + $0x324] ss:$16 sps:$4 sm:$0xff]   ;;  %v3263_v13 = vld [vmem:[%s3622_s7 + $0x328] ss:$16 sps:$4 sm:$0xff]  }
  0x57   : > { %v3788_v54 = vld [vmem:[%s3624_s8 + $0x30] sm:$0xff] }
  0x58   : > { %2028 = vmatpush1.bf16.msra.mxu0 %v3162_v61  ;;  %2240 = vmatpush1.bf16.msra.mxu1 %v3163_v62  ;;  %v3725_v61 = vld [vmem:[%s3624_s8 + $0x8] sm:$0xff] }
  0x59   : > { %2029 = vmatprep.subr.bf16.mxu0 %v3164_v63  ;;  %2241 = vmatprep.subr.bf16.mxu1 %v3166_v0  ;;  %v3728_v62 = vld [vmem:[%s3624_s8 + $0x28] sm:$0xff]  ;;  %v3242_v63 = vld [vmem:[%s3622_s7 + $0x2c0] ss:$16 sps:$4 sm:$0xff]  }
  0x5a   : > { %v3245_v0 = vld [vmem:[%s3622_s7 + $0x2c8] ss:$16 sps:$4 sm:$0xff]  }
  0x5c   : > { %2030 = vmatpush1.bf16.msra.mxu0 %v3168_v1  ;;  %2242 = vmatpush1.bf16.msra.mxu1 %v3169_v2  ;;  %v2730_v1 = vcombine.high %v3725_v61, %v3728_v62  ;;  %v3250_v2 = vld [vmem:[%s3622_s7 + $0x2e4] ss:$16 sps:$4 sm:$0xff]  }
  0x5d   : > { %2031 = vmatprep.subr.bf16.mxu0 %v3170_v3  ;;  %2243 = vmatprep.subr.bf16.mxu1 %v3172_v4  ;;  %v3253_v3 = vld [vmem:[%s3622_s7 + $0x2ec] ss:$16 sps:$4 sm:$0xff]   ;;  %v3248_v4 = vld [vmem:[%s3622_s7 + $0x2e0] ss:$16 sps:$4 sm:$0xff]  }
  0x60   : > { %2032 = vmatpush1.bf16.msra.mxu0 %v3174_v5  ;;  %2244 = vmatpush1.bf16.msra.mxu1 %v3175_v6  ;;  %v3251_v5 = vld [vmem:[%s3622_s7 + $0x2e8] ss:$16 sps:$4 sm:$0xff]   ;;  %v3256_v6 = vld [vmem:[%s3622_s7 + $0x304] ss:$16 sps:$4 sm:$0xff]  }
  0x61   : > { %2033 = vmatprep.subr.bf16.mxu0 %v3176_v7  ;;  %2245 = vmatprep.subr.bf16.mxu1 %v3178_v8  ;;  %v3259_v7 = vld [vmem:[%s3622_s7 + $0x30c] ss:$16 sps:$4 sm:$0xff]   ;;  %v3254_v8 = vld [vmem:[%s3622_s7 + $0x300] ss:$16 sps:$4 sm:$0xff]  }
  0x64   : > { %2034 = vmatpush1.bf16.msra.mxu0 %v3180_v11  ;;  %2246 = vmatpush1.bf16.msra.mxu1 %v3181_v12  ;;  %v3265_v11 = vld [vmem:[%s3622_s7 + $0x32c] ss:$16 sps:$4 sm:$0xff]   ;;  %v3260_v12 = vld [vmem:[%s3622_s7 + $0x320] ss:$16 sps:$4 sm:$0xff]  }
  0x65   : > { %2035 = vmatprep.subr.bf16.mxu0 %v3182_v14  ;;  %2247 = vmatprep.subr.bf16.mxu1 %v3184_v15  ;;  %v3268_v14 = vld [vmem:[%s3622_s7 + $0x344] ss:$16 sps:$4 sm:$0xff]   ;;  %v3271_v15 = vld [vmem:[%s3622_s7 + $0x34c] ss:$16 sps:$4 sm:$0xff]  }
  0x68   : > { %2036 = vmatpush1.bf16.msra.mxu0 %v3186_v16  ;;  %2248 = vmatpush1.bf16.msra.mxu1 %v3187_v17  ;;  %v3266_v16 = vld [vmem:[%s3622_s7 + $0x340] ss:$16 sps:$4 sm:$0xff]   ;;  %v3269_v17 = vld [vmem:[%s3622_s7 + $0x348] ss:$16 sps:$4 sm:$0xff]  }
  0x69   : > { %2037 = vmatprep.subr.bf16.mxu0 %v3188_v18  ;;  %2249 = vmatprep.subr.bf16.mxu1 %v3190_v19  ;;  %v3274_v18 = vld [vmem:[%s3622_s7 + $0x364] ss:$16 sps:$4 sm:$0xff]   ;;  %v3277_v19 = vld [vmem:[%s3622_s7 + $0x36c] ss:$16 sps:$4 sm:$0xff]  }
  0x6c   : > { %2038 = vmatpush1.bf16.msra.mxu0 %v3192_v20  ;;  %2250 = vmatpush1.bf16.msra.mxu1 %v3193_v21  ;;  %v3272_v20 = vld [vmem:[%s3622_s7 + $0x360] ss:$16 sps:$4 sm:$0xff]   ;;  %v3275_v21 = vld [vmem:[%s3622_s7 + $0x368] ss:$16 sps:$4 sm:$0xff]  }
  0x6d   : > { %2039 = vmatprep.subr.bf16.mxu0 %v3194_v22  ;;  %2251 = vmatprep.subr.bf16.mxu1 %v3196_v23  ;;  %v3280_v22 = vld [vmem:[%s3622_s7 + $0x384] ss:$16 sps:$4 sm:$0xff]   ;;  %v3283_v23 = vld [vmem:[%s3622_s7 + $0x38c] ss:$16 sps:$4 sm:$0xff]  }
  0x70   : > { %2040 = vmatpush1.bf16.msra.mxu0 %v3198_v24  ;;  %2252 = vmatpush1.bf16.msra.mxu1 %v3199_v25  ;;  %v3278_v24 = vld [vmem:[%s3622_s7 + $0x380] ss:$16 sps:$4 sm:$0xff]   ;;  %v3281_v25 = vld [vmem:[%s3622_s7 + $0x388] ss:$16 sps:$4 sm:$0xff]  }
  0x71   : > { %2041 = vmatprep.subr.bf16.mxu0 %v3200_v26  ;;  %2253 = vmatprep.subr.bf16.mxu1 %v3202_v27  ;;  %v3286_v26 = vld [vmem:[%s3622_s7 + $0x3a4] ss:$16 sps:$4 sm:$0xff]   ;;  %v3289_v27 = vld [vmem:[%s3622_s7 + $0x3ac] ss:$16 sps:$4 sm:$0xff]  }
  0x74   : > { %2042 = vmatpush1.bf16.msra.mxu0 %v3204_v28  ;;  %2254 = vmatpush1.bf16.msra.mxu1 %v3205_v29  ;;  %v3284_v28 = vld [vmem:[%s3622_s7 + $0x3a0] ss:$16 sps:$4 sm:$0xff]   ;;  %v3287_v29 = vld [vmem:[%s3622_s7 + $0x3a8] ss:$16 sps:$4 sm:$0xff]  }
  0x75   : > { %2064 = vmatprep.subr.bf16.mxu0 %v3208_v30  ;;  %2276 = vmatprep.subr.bf16.mxu1 %v3211_v31  ;;  %v3292_v30 = vld [vmem:[%s3622_s7 + $0x3c4] ss:$16 sps:$4 sm:$0xff]   ;;  %v3295_v31 = vld [vmem:[%s3622_s7 + $0x3cc] ss:$16 sps:$4 sm:$0xff]  }
  0x77   : > { %2044 = vmatmul.mubr.bf16.vlgmr.msra.gmra.mrb[0].mxu0 %v2727_v32  ;;  %2256 = vmatmul.mubr.bf16.vlgmr.msra.gmra.mrb[0].mxu1 %v2727_v32  ;;  %v3290_v32 = vld [vmem:[%s3622_s7 + $0x3c0] ss:$16 sps:$4 sm:$0xff]  }
  0x78   : > { %2065 = vmatpush1.bf16.msra.mxu0 %v3206_v33  ;;  %2277 = vmatpush1.bf16.msra.mxu1 %v3209_v34  ;;  %v3293_v33 = vld [vmem:[%s3622_s7 + $0x3c8] ss:$16 sps:$4 sm:$0xff]   ;;  %v3298_v34 = vld [vmem:[%s3622_s7 + $0x3e4] ss:$16 sps:$4 sm:$0xff]  }
  0x79   : > { %2066 = vmatprep.subr.bf16.mxu0 %v3214_v35  ;;  %2278 = vmatprep.subr.bf16.mxu1 %v3217_v36  ;;  %v3301_v35 = vld [vmem:[%s3622_s7 + $0x3ec] ss:$16 sps:$4 sm:$0xff]   ;;  %v3296_v36 = vld [vmem:[%s3622_s7 + $0x3e0] ss:$16 sps:$4 sm:$0xff]  }
  0x7a   : > { %2053 = vmatprep.mubr.bf16.mxu0 %v2736_v55  ;;  %2265 = vmatprep.mubr.bf16.mxu1 %v2736_v55  ;;  %v3314_v55 = vld [vmem:[%s3622_s7 + $0x440] ss:$16 sps:$4 sm:$0xff]  }
  0x7c   : > { %2067 = vmatpush1.bf16.msra.mxu0 %v3212_v37  ;;  %2279 = vmatpush1.bf16.msra.mxu1 %v3215_v38  ;;  %v3299_v37 = vld [vmem:[%s3622_s7 + $0x3e8] ss:$16 sps:$4 sm:$0xff]   ;;  %v3304_v38 = vld [vmem:[%s3622_s7 + $0x404] ss:$16 sps:$4 sm:$0xff]  }
  0x7d   : > { %2068 = vmatprep.subr.bf16.mxu0 %v3220_v39  ;;  %2280 = vmatprep.subr.bf16.mxu1 %v3223_v40  ;;  %v3307_v39 = vld [vmem:[%s3622_s7 + $0x40c] ss:$16 sps:$4 sm:$0xff]   ;;  %v3302_v40 = vld [vmem:[%s3622_s7 + $0x400] ss:$16 sps:$4 sm:$0xff]  }
  0x7f   : > { %2054 = vmatmul.mubr.bf16.gmra.mrb[4].mxu0 %v2735_v58  ;;  %2266 = vmatmul.mubr.bf16.gmra.mrb[4].mxu1 %v2735_v58  ;;  %v3325_v58 = vld [vmem:[%s3622_s7 + $0x46c] ss:$16 sps:$4 sm:$0xff]  }
  0x80   : > { %2069 = vmatpush1.bf16.msra.mxu0 %v3218_v41  ;;  %2281 = vmatpush1.bf16.msra.mxu1 %v3221_v42  ;;  %v3305_v41 = vld [vmem:[%s3622_s7 + $0x408] ss:$16 sps:$4 sm:$0xff]   ;;  %v2729_v42 = vcombine.low %v3725_v61, %v3728_v62  ;;  %v3328_v62 = vld [vmem:[%s3622_s7 + $0x484] ss:$16 sps:$4 sm:$0xff]  }
  0x81   : > { %2070 = vmatprep.subr.bf16.mxu0 %v3226_v43  ;;  %2282 = vmatprep.subr.bf16.mxu1 %v3229_v44  ;;  %v388_v43 = vld [vmem:[%s3624_s8 + $0x48] sm:$0xff] }
  0x82   : > { %2096 = vmatprep.mubr.bf16.mxu0 %v2730_v1  ;;  %2308 = vmatprep.mubr.bf16.mxu1 %v2730_v1  ;;  %v392_v44 = vld [vmem:[%s3624_s8 + $0x68] sm:$0xff] }
  0x83   : > { %v2737_v53 = vcombine.low %v388_v43, %v392_v44  ;;  %v3323_v61 = vld [vmem:[%s3622_s7 + $0x468] ss:$16 sps:$4 sm:$0xff]  }
  0x84   : > { %2071 = vmatpush1.bf16.msra.mxu0 %v3224_v45  ;;  %2283 = vmatpush1.bf16.msra.mxu1 %v3227_v46  ;;  %v3310_v45 = vld [vmem:[%s3622_s7 + $0x424] ss:$16 sps:$4 sm:$0xff]   ;;  %v3313_v46 = vld [vmem:[%s3622_s7 + $0x42c] ss:$16 sps:$4 sm:$0xff]   ;;  %v3329_v1 = vld [vmem:[%s3622_s7 + $0x488] ss:$16 sps:$4 sm:$0xff]  }
  0x85   : > { %2072 = vmatprep.subr.bf16.mxu0 %v3232_v47  ;;  %2284 = vmatprep.subr.bf16.mxu1 %v3235_v48  ;;  %v2738_v47 = vcombine.high %v388_v43, %v392_v44  ;;  %v3308_v48 = vld [vmem:[%s3622_s7 + $0x420] ss:$16 sps:$4 sm:$0xff]   ;;  %v3397_v43 = vld [vmem:[%s3622_s7 + $0x5ec] ss:$16 sps:$4 sm:$0xff]  }
  0x86   : > { %v3392_v44 = vld [vmem:[%s3622_s7 + $0x5e0] ss:$16 sps:$4 sm:$0xff]  }
  0x88   : > { %2073 = vmatpush1.bf16.msra.mxu0 %v3230_v49  ;;  %2285 = vmatpush1.bf16.msra.mxu1 %v3233_v50  ;;  %v3311_v49 = vld [vmem:[%s3622_s7 + $0x428] ss:$16 sps:$4 sm:$0xff]   ;;  %v3316_v50 = vld [vmem:[%s3622_s7 + $0x444] ss:$16 sps:$4 sm:$0xff]  }
  0x89   : > { %2074 = vmatprep.subr.bf16.mxu0 %v3238_v51  ;;  %2286 = vmatprep.subr.bf16.mxu1 %v3241_v52  ;;  %v3319_v51 = vld [vmem:[%s3622_s7 + $0x44c] ss:$16 sps:$4 sm:$0xff]   ;;  %v3785_v52 = vld [vmem:[%s3624_s8 + $0x10] sm:$0xff] }
  0x8c   : > { %2075 = vmatpush1.bf16.msra.mxu0 %v3236_v56  ;;  %2287 = vmatpush1.bf16.msra.mxu1 %v3239_v57  ;;  %v3317_v56 = vld [vmem:[%s3622_s7 + $0x448] ss:$16 sps:$4 sm:$0xff]   ;;  %v3322_v57 = vld [vmem:[%s3622_s7 + $0x464] ss:$16 sps:$4 sm:$0xff]  }
  0x8d   : > { %2076 = vmatprep.subr.bf16.mxu0 %v3244_v59  ;;  %2288 = vmatprep.subr.bf16.mxu1 %v3247_v60  ;;  %v2732_v59 = vcombine.high %v3785_v52, %v3788_v54  ;;  %v3320_v60 = vld [vmem:[%s3622_s7 + $0x460] ss:$16 sps:$4 sm:$0xff]  }
  0x90   : > { %2077 = vmatpush1.bf16.msra.mxu0 %v3242_v63  ;;  %2289 = vmatpush1.bf16.msra.mxu1 %v3245_v0  ;;  %v3331_v63 = vld [vmem:[%s3622_s7 + $0x48c] ss:$16 sps:$4 sm:$0xff]   ;;  %v3326_v0 = vld [vmem:[%s3622_s7 + $0x480] ss:$16 sps:$4 sm:$0xff]  }
  0x91   : > { %2078 = vmatprep.subr.bf16.mxu0 %v3250_v2  ;;  %2290 = vmatprep.subr.bf16.mxu1 %v3253_v3  ;;  %v3334_v2 = vld [vmem:[%s3622_s7 + $0x4a4] ss:$16 sps:$4 sm:$0xff]   ;;  %v3337_v3 = vld [vmem:[%s3622_s7 + $0x4ac] ss:$16 sps:$4 sm:$0xff]  }
  0x94   : > { %2079 = vmatpush1.bf16.msra.mxu0 %v3248_v4  ;;  %2291 = vmatpush1.bf16.msra.mxu1 %v3251_v5  ;;  %v3332_v4 = vld [vmem:[%s3622_s7 + $0x4a0] ss:$16 sps:$4 sm:$0xff]   ;;  %v3335_v5 = vld [vmem:[%s3622_s7 + $0x4a8] ss:$16 sps:$4 sm:$0xff]  }
  0x95   : > { %2080 = vmatprep.subr.bf16.mxu0 %v3256_v6  ;;  %2292 = vmatprep.subr.bf16.mxu1 %v3259_v7  ;;  %v3340_v6 = vld [vmem:[%s3622_s7 + $0x4c4] ss:$16 sps:$4 sm:$0xff]   ;;  %v3343_v7 = vld [vmem:[%s3622_s7 + $0x4cc] ss:$16 sps:$4 sm:$0xff]  }
  0x98   : > { %2081 = vmatpush1.bf16.msra.mxu0 %v3254_v8  ;;  %2293 = vmatpush1.bf16.msra.mxu1 %v3257_v9  ;;  %v3338_v8 = vld [vmem:[%s3622_s7 + $0x4c0] ss:$16 sps:$4 sm:$0xff]   ;;  %v3341_v9 = vld [vmem:[%s3622_s7 + $0x4c8] ss:$16 sps:$4 sm:$0xff]  }
  0x99   : > { %2082 = vmatprep.subr.bf16.mxu0 %v3262_v10  ;;  %2294 = vmatprep.subr.bf16.mxu1 %v3265_v11  ;;  %v3346_v10 = vld [vmem:[%s3622_s7 + $0x4e4] ss:$16 sps:$4 sm:$0xff]   ;;  %v3349_v11 = vld [vmem:[%s3622_s7 + $0x4ec] ss:$16 sps:$4 sm:$0xff]  }
  0x9c   : > { %2083 = vmatpush1.bf16.msra.mxu0 %v3260_v12  ;;  %2295 = vmatpush1.bf16.msra.mxu1 %v3263_v13  ;;  %v3344_v12 = vld [vmem:[%s3622_s7 + $0x4e0] ss:$16 sps:$4 sm:$0xff]   ;;  %v3347_v13 = vld [vmem:[%s3622_s7 + $0x4e8] ss:$16 sps:$4 sm:$0xff]  }
  0x9d   : > { %2084 = vmatprep.subr.bf16.mxu0 %v3268_v14  ;;  %2296 = vmatprep.subr.bf16.mxu1 %v3271_v15  ;;  %v3352_v14 = vld [vmem:[%s3622_s7 + $0x504] ss:$16 sps:$4 sm:$0xff]   ;;  %v3355_v15 = vld [vmem:[%s3622_s7 + $0x50c] ss:$16 sps:$4 sm:$0xff]  }
  0xa0   : > { %2085 = vmatpush1.bf16.msra.mxu0 %v3266_v16  ;;  %2297 = vmatpush1.bf16.msra.mxu1 %v3269_v17  ;;  %v3350_v16 = vld [vmem:[%s3622_s7 + $0x500] ss:$16 sps:$4 sm:$0xff]   ;;  %v3353_v17 = vld [vmem:[%s3622_s7 + $0x508] ss:$16 sps:$4 sm:$0xff]  }
  0xa1   : > { %2086 = vmatprep.subr.bf16.mxu0 %v3274_v18  ;;  %2298 = vmatprep.subr.bf16.mxu1 %v3277_v19  ;;  %v3358_v18 = vld [vmem:[%s3622_s7 + $0x524] ss:$16 sps:$4 sm:$0xff]   ;;  %v3361_v19 = vld [vmem:[%s3622_s7 + $0x52c] ss:$16 sps:$4 sm:$0xff]  }
  0xa4   : > { %2087 = vmatpush1.bf16.msra.mxu0 %v3272_v20  ;;  %2299 = vmatpush1.bf16.msra.mxu1 %v3275_v21  ;;  %v3356_v20 = vld [vmem:[%s3622_s7 + $0x520] ss:$16 sps:$4 sm:$0xff]   ;;  %v3359_v21 = vld [vmem:[%s3622_s7 + $0x528] ss:$16 sps:$4 sm:$0xff]  }
  0xa5   : > { %2088 = vmatprep.subr.bf16.mxu0 %v3280_v22  ;;  %2300 = vmatprep.subr.bf16.mxu1 %v3283_v23  ;;  %v3364_v22 = vld [vmem:[%s3622_s7 + $0x544] ss:$16 sps:$4 sm:$0xff]   ;;  %v3367_v23 = vld [vmem:[%s3622_s7 + $0x54c] ss:$16 sps:$4 sm:$0xff]  }
  0xa8   : > { %2089 = vmatpush1.bf16.msra.mxu0 %v3278_v24  ;;  %2301 = vmatpush1.bf16.msra.mxu1 %v3281_v25  ;;  %v3362_v24 = vld [vmem:[%s3622_s7 + $0x540] ss:$16 sps:$4 sm:$0xff]   ;;  %v3365_v25 = vld [vmem:[%s3622_s7 + $0x548] ss:$16 sps:$4 sm:$0xff]  }
  0xa9   : > { %2090 = vmatprep.subr.bf16.mxu0 %v3286_v26  ;;  %2302 = vmatprep.subr.bf16.mxu1 %v3289_v27  ;;  %v3370_v26 = vld [vmem:[%s3622_s7 + $0x564] ss:$16 sps:$4 sm:$0xff]   ;;  %v3373_v27 = vld [vmem:[%s3622_s7 + $0x56c] ss:$16 sps:$4 sm:$0xff]  }
  0xac   : > { %2091 = vmatpush1.bf16.msra.mxu0 %v3284_v28  ;;  %2303 = vmatpush1.bf16.msra.mxu1 %v3287_v29  ;;  %v3368_v28 = vld [vmem:[%s3622_s7 + $0x560] ss:$16 sps:$4 sm:$0xff]   ;;  %v3371_v29 = vld [vmem:[%s3622_s7 + $0x568] ss:$16 sps:$4 sm:$0xff]  }
  0xad   : > { %2092 = vmatprep.subr.bf16.mxu0 %v3292_v30  ;;  %2304 = vmatprep.subr.bf16.mxu1 %v3295_v31  ;;  %v3376_v30 = vld [vmem:[%s3622_s7 + $0x584] ss:$16 sps:$4 sm:$0xff]   ;;  %v3379_v31 = vld [vmem:[%s3622_s7 + $0x58c] ss:$16 sps:$4 sm:$0xff]  }
  0xb0   : > { %2093 = vmatpush1.bf16.msra.mxu0 %v3290_v32  ;;  %2305 = vmatpush1.bf16.msra.mxu1 %v3293_v33  ;;  %v3374_v32 = vld [vmem:[%s3622_s7 + $0x580] ss:$16 sps:$4 sm:$0xff]   ;;  %v3377_v33 = vld [vmem:[%s3622_s7 + $0x588] ss:$16 sps:$4 sm:$0xff]  }
  0xb1   : > { %2094 = vmatprep.subr.bf16.mxu0 %v3298_v34  ;;  %2306 = vmatprep.subr.bf16.mxu1 %v3301_v35  ;;  %v3382_v34 = vld [vmem:[%s3622_s7 + $0x5a4] ss:$16 sps:$4 sm:$0xff]   ;;  %v3385_v35 = vld [vmem:[%s3622_s7 + $0x5ac] ss:$16 sps:$4 sm:$0xff]  }
  0xb4   : > { %2095 = vmatpush1.bf16.msra.mxu0 %v3296_v36  ;;  %2307 = vmatpush1.bf16.msra.mxu1 %v3299_v37  ;;  %v3380_v36 = vld [vmem:[%s3622_s7 + $0x5a0] ss:$16 sps:$4 sm:$0xff]   ;;  %v3383_v37 = vld [vmem:[%s3622_s7 + $0x5a8] ss:$16 sps:$4 sm:$0xff]  }
  0xb5   : > { %2117 = vmatprep.subr.bf16.mxu0 %v3304_v38  ;;  %2329 = vmatprep.subr.bf16.mxu1 %v3307_v39  ;;  %v3388_v38 = vld [vmem:[%s3622_s7 + $0x5c4] ss:$16 sps:$4 sm:$0xff]   ;;  %v3391_v39 = vld [vmem:[%s3622_s7 + $0x5cc] ss:$16 sps:$4 sm:$0xff]  }
  0xb7   : > { %2097 = vmatmul.mubr.bf16.vlgmr.msra.gmra.mrb[0].mxu0 %v2729_v42  ;;  %2309 = vmatmul.mubr.bf16.vlgmr.msra.gmra.mrb[0].mxu1 %v2729_v42  ;;  %v3394_v42 = vld [vmem:[%s3622_s7 + $0x5e4] ss:$16 sps:$4 sm:$0xff]  }
  0xb8   : > { %2118 = vmatpush1.bf16.msra.mxu0 %v3302_v40  ;;  %2330 = vmatpush1.bf16.msra.mxu1 %v3305_v41  ;;  %v3386_v40 = vld [vmem:[%s3622_s7 + $0x5c0] ss:$16 sps:$4 sm:$0xff]   ;;  %v3389_v41 = vld [vmem:[%s3622_s7 + $0x5c8] ss:$16 sps:$4 sm:$0xff]  }
  0xb9   : > { %2119 = vmatprep.subr.bf16.mxu0 %v3310_v45  ;;  %2331 = vmatprep.subr.bf16.mxu1 %v3313_v46  ;;  %v3395_v45 = vld [vmem:[%s3622_s7 + $0x5e8] ss:$16 sps:$4 sm:$0xff]   ;;  %v3400_v46 = vld [vmem:[%s3622_s7 + $0x604] ss:$16 sps:$4 sm:$0xff]  }
  0xba   : > { %2106 = vmatprep.mubr.bf16.mxu0 %v2738_v47  ;;  %2318 = vmatprep.mubr.bf16.mxu1 %v2738_v47  ;;  %v3403_v47 = vld [vmem:[%s3622_s7 + $0x60c] ss:$16 sps:$4 sm:$0xff]  }
  0xbc   : > { %2120 = vmatpush1.bf16.msra.mxu0 %v3308_v48  ;;  %2332 = vmatpush1.bf16.msra.mxu1 %v3311_v49  ;;  %v2731_v48 = vcombine.low %v3785_v52, %v3788_v54  ;;  %v389_v49 = vld [vmem:[%s3624_s8 + $0x50] sm:$0xff]  ;;  %v3407_v54 = vld [vmem:[%s3622_s7 + $0x628] ss:$16 sps:$4 sm:$0xff]  }
  0xbd   : > { %2121 = vmatprep.subr.bf16.mxu0 %v3316_v50  ;;  %2333 = vmatprep.subr.bf16.mxu1 %v3319_v51  ;;  %v393_v50 = vld [vmem:[%s3624_s8 + $0x70] sm:$0xff] }
  0xbe   : > { %v3398_v51 = vld [vmem:[%s3622_s7 + $0x600] ss:$16 sps:$4 sm:$0xff]  }
  0xbf   : > { %2107 = vmatmul.mubr.bf16.gmra.mrb[4].mxu0 %v2737_v53  ;;  %2319 = vmatmul.mubr.bf16.gmra.mrb[4].mxu1 %v2737_v53  ;;  %v3401_v53 = vld [vmem:[%s3622_s7 + $0x608] ss:$16 sps:$4 sm:$0xff]   ;;  %v3404_v52 = vld [vmem:[%s3622_s7 + $0x620] ss:$16 sps:$4 sm:$0xff]  }
  0xc0   : > { %2122 = vmatpush1.bf16.msra.mxu0 %v3314_v55  ;;  %2334 = vmatpush1.bf16.msra.mxu1 %v3317_v56  ;;  %v3406_v55 = vld [vmem:[%s3622_s7 + $0x624] ss:$16 sps:$4 sm:$0xff]   ;;  %v3409_v56 = vld [vmem:[%s3622_s7 + $0x62c] ss:$16 sps:$4 sm:$0xff]  }
  0xc1   : > { %2123 = vmatprep.subr.bf16.mxu0 %v3322_v57  ;;  %2335 = vmatprep.subr.bf16.mxu1 %v3325_v58  ;;  %v2740_v57 = vcombine.high %v389_v49, %v393_v50  ;;  %v3412_v58 = vld [vmem:[%s3622_s7 + $0x644] ss:$16 sps:$4 sm:$0xff]  }
  0xc2   : > { %2149 = vmatprep.mubr.bf16.mxu0 %v2732_v59  ;;  %2361 = vmatprep.mubr.bf16.mxu1 %v2732_v59  ;;  %v3415_v59 = vld [vmem:[%s3622_s7 + $0x64c] ss:$16 sps:$4 sm:$0xff]  }
  0xc4   : > { %2124 = vmatpush1.bf16.msra.mxu0 %v3320_v60  ;;  %2336 = vmatpush1.bf16.msra.mxu1 %v3323_v61  ;;  %v2739_v60 = vcombine.low %v389_v49, %v393_v50  ;;  %v3861_v61 = vld [vmem:[%s3624_s8 + $0x18] sm:$0xff]  ;;  %v3490_v50 = vld [vmem:[%s3622_s7 + $0x7e4] ss:$16 sps:$4 sm:$0xff]  }
  0xc5   : > { %2125 = vmatprep.subr.bf16.mxu0 %v3328_v62  ;;  %2337 = vmatprep.subr.bf16.mxu1 %v3331_v63  ;;  %v3864_v62 = vld [vmem:[%s3624_s8 + $0x38] sm:$0xff]  ;;  %v3410_v63 = vld [vmem:[%s3622_s7 + $0x640] ss:$16 sps:$4 sm:$0xff]  }
  0xc6   : > { %v3485_v49 = vld [vmem:[%s3622_s7 + $0x7c8] ss:$16 sps:$4 sm:$0xff]  }
  0xc8   : > { %2126 = vmatpush1.bf16.msra.mxu0 %v3326_v0  ;;  %2338 = vmatpush1.bf16.msra.mxu1 %v3329_v1  ;;  %v3413_v0 = vld [vmem:[%s3622_s7 + $0x648] ss:$16 sps:$4 sm:$0xff]   ;;  %v3418_v1 = vld [vmem:[%s3622_s7 + $0x664] ss:$16 sps:$4 sm:$0xff]  }
  0xc9   : > { %2127 = vmatprep.subr.bf16.mxu0 %v3334_v2  ;;  %2339 = vmatprep.subr.bf16.mxu1 %v3337_v3  ;;  %v3421_v2 = vld [vmem:[%s3622_s7 + $0x66c] ss:$16 sps:$4 sm:$0xff]   ;;  %v2734_v3 = vcombine.high %v3861_v61, %v3864_v62 }
  0xcc   : > { %2128 = vmatpush1.bf16.msra.mxu0 %v3332_v4  ;;  %2340 = vmatpush1.bf16.msra.mxu1 %v3335_v5  ;;  %v3416_v4 = vld [vmem:[%s3622_s7 + $0x660] ss:$16 sps:$4 sm:$0xff]   ;;  %v3419_v5 = vld [vmem:[%s3622_s7 + $0x668] ss:$16 sps:$4 sm:$0xff]  }
  0xcd   : > { %2129 = vmatprep.subr.bf16.mxu0 %v3340_v6  ;;  %2341 = vmatprep.subr.bf16.mxu1 %v3343_v7  ;;  %v3424_v6 = vld [vmem:[%s3622_s7 + $0x684] ss:$16 sps:$4 sm:$0xff]   ;;  %v3427_v7 = vld [vmem:[%s3622_s7 + $0x68c] ss:$16 sps:$4 sm:$0xff]  }
  0xd0   : > { %2130 = vmatpush1.bf16.msra.mxu0 %v3338_v8  ;;  %2342 = vmatpush1.bf16.msra.mxu1 %v3341_v9  ;;  %v3422_v8 = vld [vmem:[%s3622_s7 + $0x680] ss:$16 sps:$4 sm:$0xff]   ;;  %v3425_v9 = vld [vmem:[%s3622_s7 + $0x688] ss:$16 sps:$4 sm:$0xff]  }
  0xd1   : > { %2131 = vmatprep.subr.bf16.mxu0 %v3346_v10  ;;  %2343 = vmatprep.subr.bf16.mxu1 %v3349_v11  ;;  %v3430_v10 = vld [vmem:[%s3622_s7 + $0x6a4] ss:$16 sps:$4 sm:$0xff]   ;;  %v3433_v11 = vld [vmem:[%s3622_s7 + $0x6ac] ss:$16 sps:$4 sm:$0xff]  }
  0xd4   : > { %2132 = vmatpush1.bf16.msra.mxu0 %v3344_v12  ;;  %2344 = vmatpush1.bf16.msra.mxu1 %v3347_v13  ;;  %v3428_v12 = vld [vmem:[%s3622_s7 + $0x6a0] ss:$16 sps:$4 sm:$0xff]   ;;  %v3431_v13 = vld [vmem:[%s3622_s7 + $0x6a8] ss:$16 sps:$4 sm:$0xff]  }
  0xd5   : > { %2133 = vmatprep.subr.bf16.mxu0 %v3352_v14  ;;  %2345 = vmatprep.subr.bf16.mxu1 %v3355_v15  ;;  %v3436_v14 = vld [vmem:[%s3622_s7 + $0x6c4] ss:$16 sps:$4 sm:$0xff]   ;;  %v3439_v15 = vld [vmem:[%s3622_s7 + $0x6cc] ss:$16 sps:$4 sm:$0xff]  }
  0xd8   : > { %2134 = vmatpush1.bf16.msra.mxu0 %v3350_v16  ;;  %2346 = vmatpush1.bf16.msra.mxu1 %v3353_v17  ;;  %v3434_v16 = vld [vmem:[%s3622_s7 + $0x6c0] ss:$16 sps:$4 sm:$0xff]   ;;  %v3437_v17 = vld [vmem:[%s3622_s7 + $0x6c8] ss:$16 sps:$4 sm:$0xff]  }
  0xd9   : > { %2135 = vmatprep.subr.bf16.mxu0 %v3358_v18  ;;  %2347 = vmatprep.subr.bf16.mxu1 %v3361_v19  ;;  %v3442_v18 = vld [vmem:[%s3622_s7 + $0x6e4] ss:$16 sps:$4 sm:$0xff]   ;;  %v3445_v19 = vld [vmem:[%s3622_s7 + $0x6ec] ss:$16 sps:$4 sm:$0xff]  }
  0xdc   : > { %2136 = vmatpush1.bf16.msra.mxu0 %v3356_v20  ;;  %2348 = vmatpush1.bf16.msra.mxu1 %v3359_v21  ;;  %v3440_v20 = vld [vmem:[%s3622_s7 + $0x6e0] ss:$16 sps:$4 sm:$0xff]   ;;  %v3443_v21 = vld [vmem:[%s3622_s7 + $0x6e8] ss:$16 sps:$4 sm:$0xff]  }
  0xdd   : > { %2137 = vmatprep.subr.bf16.mxu0 %v3364_v22  ;;  %2349 = vmatprep.subr.bf16.mxu1 %v3367_v23  ;;  %v3448_v22 = vld [vmem:[%s3622_s7 + $0x704] ss:$16 sps:$4 sm:$0xff]   ;;  %v3451_v23 = vld [vmem:[%s3622_s7 + $0x70c] ss:$16 sps:$4 sm:$0xff]  }
  0xe0   : > { %2138 = vmatpush1.bf16.msra.mxu0 %v3362_v24  ;;  %2350 = vmatpush1.bf16.msra.mxu1 %v3365_v25  ;;  %v3446_v24 = vld [vmem:[%s3622_s7 + $0x700] ss:$16 sps:$4 sm:$0xff]   ;;  %v3449_v25 = vld [vmem:[%s3622_s7 + $0x708] ss:$16 sps:$4 sm:$0xff]  }
  0xe1   : > { %2139 = vmatprep.subr.bf16.mxu0 %v3370_v26  ;;  %2351 = vmatprep.subr.bf16.mxu1 %v3373_v27  ;;  %v3454_v26 = vld [vmem:[%s3622_s7 + $0x724] ss:$16 sps:$4 sm:$0xff]   ;;  %v3457_v27 = vld [vmem:[%s3622_s7 + $0x72c] ss:$16 sps:$4 sm:$0xff]  }
  0xe4   : > { %2140 = vmatpush1.bf16.msra.mxu0 %v3368_v28  ;;  %2352 = vmatpush1.bf16.msra.mxu1 %v3371_v29  ;;  %v3452_v28 = vld [vmem:[%s3622_s7 + $0x720] ss:$16 sps:$4 sm:$0xff]   ;;  %v3455_v29 = vld [vmem:[%s3622_s7 + $0x728] ss:$16 sps:$4 sm:$0xff]  }
  0xe5   : > { %2141 = vmatprep.subr.bf16.mxu0 %v3376_v30  ;;  %2353 = vmatprep.subr.bf16.mxu1 %v3379_v31  ;;  %v3460_v30 = vld [vmem:[%s3622_s7 + $0x744] ss:$16 sps:$4 sm:$0xff]   ;;  %v3463_v31 = vld [vmem:[%s3622_s7 + $0x74c] ss:$16 sps:$4 sm:$0xff]  }
  0xe8   : > { %2142 = vmatpush1.bf16.msra.mxu0 %v3374_v32  ;;  %2354 = vmatpush1.bf16.msra.mxu1 %v3377_v33  ;;  %v3458_v32 = vld [vmem:[%s3622_s7 + $0x740] ss:$16 sps:$4 sm:$0xff]   ;;  %v3461_v33 = vld [vmem:[%s3622_s7 + $0x748] ss:$16 sps:$4 sm:$0xff]  }
  0xe9   : > { %2143 = vmatprep.subr.bf16.mxu0 %v3382_v34  ;;  %2355 = vmatprep.subr.bf16.mxu1 %v3385_v35  ;;  %v3466_v34 = vld [vmem:[%s3622_s7 + $0x764] ss:$16 sps:$4 sm:$0xff]   ;;  %v3469_v35 = vld [vmem:[%s3622_s7 + $0x76c] ss:$16 sps:$4 sm:$0xff]  }
  0xec   : > { %2144 = vmatpush1.bf16.msra.mxu0 %v3380_v36  ;;  %2356 = vmatpush1.bf16.msra.mxu1 %v3383_v37  ;;  %v3464_v36 = vld [vmem:[%s3622_s7 + $0x760] ss:$16 sps:$4 sm:$0xff]   ;;  %v3467_v37 = vld [vmem:[%s3622_s7 + $0x768] ss:$16 sps:$4 sm:$0xff]  }
  0xed   : > { %2145 = vmatprep.subr.bf16.mxu0 %v3388_v38  ;;  %2357 = vmatprep.subr.bf16.mxu1 %v3391_v39  ;;  %v3472_v38 = vld [vmem:[%s3622_s7 + $0x784] ss:$16 sps:$4 sm:$0xff]   ;;  %v3475_v39 = vld [vmem:[%s3622_s7 + $0x78c] ss:$16 sps:$4 sm:$0xff]  }
  0xf0   : > { %2146 = vmatpush1.bf16.msra.mxu0 %v3386_v40  ;;  %2358 = vmatpush1.bf16.msra.mxu1 %v3389_v41  ;;  %v3470_v40 = vld [vmem:[%s3622_s7 + $0x780] ss:$16 sps:$4 sm:$0xff]   ;;  %v3473_v41 = vld [vmem:[%s3622_s7 + $0x788] ss:$16 sps:$4 sm:$0xff]  }
  0xf1   : > { %2147 = vmatprep.subr.bf16.mxu0 %v3394_v42  ;;  %2359 = vmatprep.subr.bf16.mxu1 %v3397_v43  ;;  %v3478_v42 = vld [vmem:[%s3622_s7 + $0x7a4] ss:$16 sps:$4 sm:$0xff]   ;;  %v3481_v43 = vld [vmem:[%s3622_s7 + $0x7ac] ss:$16 sps:$4 sm:$0xff]  }
  0xf4   : > { %2148 = vmatpush1.bf16.msra.mxu0 %v3392_v44  ;;  %2360 = vmatpush1.bf16.msra.mxu1 %v3395_v45  ;;  %v3476_v44 = vld [vmem:[%s3622_s7 + $0x7a0] ss:$16 sps:$4 sm:$0xff]   ;;  %v3479_v45 = vld [vmem:[%s3622_s7 + $0x7a8] ss:$16 sps:$4 sm:$0xff]  }
  0xf5   : > { %2170 = vmatprep.subr.bf16.mxu0 %v3400_v46  ;;  %2382 = vmatprep.subr.bf16.mxu1 %v3403_v47  ;;  %v3484_v46 = vld [vmem:[%s3622_s7 + $0x7c4] ss:$16 sps:$4 sm:$0xff]   ;;  %v3487_v47 = vld [vmem:[%s3622_s7 + $0x7cc] ss:$16 sps:$4 sm:$0xff]  }
  0xf7   : > { %2150 = vmatmul.mubr.bf16.vlgmr.msra.gmra.mrb[0].mxu0 %v2731_v48  ;;  %2362 = vmatmul.mubr.bf16.vlgmr.msra.gmra.mrb[0].mxu1 %v2731_v48  ;;  %v3482_v48 = vld [vmem:[%s3622_s7 + $0x7c0] ss:$16 sps:$4 sm:$0xff]  }
  0xf8   : > { %2171 = vmatpush1.bf16.msra.mxu0 %v3398_v51  ;;  %2383 = vmatpush1.bf16.msra.mxu1 %v3401_v53  ;;  %v3493_v51 = vld [vmem:[%s3622_s7 + $0x7ec] ss:$16 sps:$4 sm:$0xff]   ;;  %v3488_v53 = vld [vmem:[%s3622_s7 + $0x7e0] ss:$16 sps:$4 sm:$0xff]  }
  0xf9   : > { %2172 = vmatprep.subr.bf16.mxu0 %v3406_v55  ;;  %2384 = vmatprep.subr.bf16.mxu1 %v3409_v56  ;;  %v3491_v55 = vld [vmem:[%s3622_s7 + $0x7e8] ss:$16 sps:$4 sm:$0xff]  }
  0xfa   : > { %2159 = vmatprep.mubr.bf16.mxu0 %v2740_v57  ;;  %2371 = vmatprep.mubr.bf16.mxu1 %v2740_v57  ;;  %v390_v56 = vld [vmem:[%s3624_s8 + $0x58] sm:$0xff] }
  0xfb   : > { %v394_v57 = vld [vmem:[%s3624_s8 + $0x78] sm:$0xff] }
  0xfc   : > { %2173 = vmatpush1.bf16.msra.mxu0 %v3404_v52  ;;  %2385 = vmatpush1.bf16.msra.mxu1 %v3407_v54  ;;  %v2733_v52 = vcombine.low %v3861_v61, %v3864_v62  ;;  %v2742_v54 = vcombine.high %v390_v56, %v394_v57 }
  0xfd   : > { %2174 = vmatprep.subr.bf16.mxu0 %v3412_v58  ;;  %2386 = vmatprep.subr.bf16.mxu1 %v3415_v59  ;;  %v2741_v58 = vcombine.low %v390_v56, %v394_v57  ;;  %v363_v59 = vld [vmem:[#allocation2] sm:$0xff] }
  0xff   : > { %2160 = vmatmul.mubr.bf16.gmra.mrb[4].mxu0 %v2739_v60  ;;  %2372 = vmatmul.mubr.bf16.gmra.mrb[4].mxu1 %v2739_v60  ;;  %v365_v60 = vld [vmem:[#allocation2 + $0x10] sm:$0xff] }
 0x100   : > { %2175 = vmatpush1.bf16.msra.mxu0 %v3410_v63  ;;  %2387 = vmatpush1.bf16.msra.mxu1 %v3413_v0  ;;  %v364_v63 = vld [vmem:[#allocation2 + $0x8] sm:$0xff]  ;;  %v366_v0 = vld [vmem:[#allocation2 + $0x18] sm:$0xff] }
 0x101   : > { %2176 = vmatprep.subr.bf16.mxu0 %v3418_v1  ;;  %2388 = vmatprep.subr.bf16.mxu1 %v3421_v2 }
 0x102   : > { %2202 = vmatprep.mubr.bf16.mxu0 %v2734_v3  ;;  %2414 = vmatprep.mubr.bf16.mxu1 %v2734_v3  ;;  %v367_v3 = vld [vmem:[#allocation2 + $0x20] sm:$0xff] }
 0x104   : > { %2177 = vmatpush1.bf16.msra.mxu0 %v3416_v4  ;;  %2389 = vmatpush1.bf16.msra.mxu1 %v3419_v5  ;;  %v369_v4 = vld [vmem:[#allocation2 + $0x30] sm:$0xff] }
 0x105   : > { %2178 = vmatprep.subr.bf16.mxu0 %v3424_v6  ;;  %2390 = vmatprep.subr.bf16.mxu1 %v3427_v7  ;;  %v368_v7 = vld [vmem:[#allocation2 + $0x28] sm:$0xff] }
 0x108   : > { %2179 = vmatpush1.bf16.msra.mxu0 %v3422_v8  ;;  %2391 = vmatpush1.bf16.msra.mxu1 %v3425_v9  ;;  %v370_v8 = vld [vmem:[#allocation2 + $0x38] sm:$0xff] }
 0x109   : > { %2180 = vmatprep.subr.bf16.mxu0 %v3430_v10  ;;  %2392 = vmatprep.subr.bf16.mxu1 %v3433_v11 }
 0x10c   : > { %2181 = vmatpush1.bf16.msra.mxu0 %v3428_v12  ;;  %2393 = vmatpush1.bf16.msra.mxu1 %v3431_v13 }
 0x10d   : > { %2182 = vmatprep.subr.bf16.mxu0 %v3436_v14  ;;  %2394 = vmatprep.subr.bf16.mxu1 %v3439_v15 }
 0x110   : > { %2183 = vmatpush1.bf16.msra.mxu0 %v3434_v16  ;;  %2395 = vmatpush1.bf16.msra.mxu1 %v3437_v17 }
 0x111   : > { %2184 = vmatprep.subr.bf16.mxu0 %v3442_v18  ;;  %2396 = vmatprep.subr.bf16.mxu1 %v3445_v19  ;;  %v371_v19 = vld [vmem:[#allocation2 + $0x40] sm:$0xff] }
 0x114   : > { %2185 = vmatpush1.bf16.msra.mxu0 %v3440_v20  ;;  %2397 = vmatpush1.bf16.msra.mxu1 %v3443_v21  ;;  %v373_v20 = vld [vmem:[#allocation2 + $0x50] sm:$0xff]  ;;  %v372_v21 = vld [vmem:[#allocation2 + $0x48] sm:$0xff] }
 0x115   : > { %2186 = vmatprep.subr.bf16.mxu0 %v3448_v22  ;;  %2398 = vmatprep.subr.bf16.mxu1 %v3451_v23  ;;  %v374_v22 = vld [vmem:[#allocation2 + $0x58] sm:$0xff] }
 0x118   : > { %2187 = vmatpush1.bf16.msra.mxu0 %v3446_v24  ;;  %2399 = vmatpush1.bf16.msra.mxu1 %v3449_v25  ;;  %v375_v25 = vld [vmem:[#allocation2 + $0x60] sm:$0xff] }
 0x119   : > { %2188 = vmatprep.subr.bf16.mxu0 %v3454_v26  ;;  %2400 = vmatprep.subr.bf16.mxu1 %v3457_v27  ;;  %v377_v26 = vld [vmem:[#allocation2 + $0x70] sm:$0xff] }
 0x11c   : > { %2189 = vmatpush1.bf16.msra.mxu0 %v3452_v28  ;;  %2401 = vmatpush1.bf16.msra.mxu1 %v3455_v29 }
 0x11d   : > { %2190 = vmatprep.subr.bf16.mxu0 %v3460_v30  ;;  %2402 = vmatprep.subr.bf16.mxu1 %v3463_v31  ;;  %v376_v31 = vld [vmem:[#allocation2 + $0x68] sm:$0xff] }
 0x120   : > { %2191 = vmatpush1.bf16.msra.mxu0 %v3458_v32  ;;  %2403 = vmatpush1.bf16.msra.mxu1 %v3461_v33  ;;  %v378_v32 = vld [vmem:[#allocation2 + $0x78] sm:$0xff] }
 0x121   : > { %2192 = vmatprep.subr.bf16.mxu0 %v3466_v34  ;;  %2404 = vmatprep.subr.bf16.mxu1 %v3469_v35 }
 0x124   : > { %2193 = vmatpush1.bf16.msra.mxu0 %v3464_v36  ;;  %2405 = vmatpush1.bf16.msra.mxu1 %v3467_v37 }
 0x125   : > { %2194 = vmatprep.subr.bf16.mxu0 %v3472_v38  ;;  %2406 = vmatprep.subr.bf16.mxu1 %v3475_v39 }
 0x128   : > { %2195 = vmatpush1.bf16.msra.mxu0 %v3470_v40  ;;  %2407 = vmatpush1.bf16.msra.mxu1 %v3473_v41 }
 0x129   : > { %2196 = vmatprep.subr.bf16.mxu0 %v3478_v42  ;;  %2408 = vmatprep.subr.bf16.mxu1 %v3481_v43 }
 0x12c   : > { %2197 = vmatpush1.bf16.msra.mxu0 %v3476_v44  ;;  %2409 = vmatpush1.bf16.msra.mxu1 %v3479_v45 }
 0x12d   : > { %2198 = vmatprep.subr.bf16.mxu0 %v3484_v46  ;;  %2410 = vmatprep.subr.bf16.mxu1 %v3487_v47 }
 0x130   : > { %2199 = vmatpush1.bf16.msra.mxu0 %v3482_v48  ;;  %2411 = vmatpush1.bf16.msra.mxu1 %v3485_v49 }
 0x131   : > { %2200 = vmatprep.subr.bf16.mxu0 %v3490_v50  ;;  %2412 = vmatprep.subr.bf16.mxu1 %v3493_v51 }
 0x134   : > { %2201 = vmatpush1.bf16.msra.mxu0 %v3488_v53  ;;  %2413 = vmatpush1.bf16.msra.mxu1 %v3491_v55 }
 0x137   : > { %2203 = vmatmul.mubr.bf16.vlgmr.msra.gmra.mrb[0].mxu0 %v2733_v52  ;;  %2415 = vmatmul.mubr.bf16.vlgmr.msra.gmra.mrb[0].mxu1 %v2733_v52 }
 0x138   : > { %2212 = vmatprep.mubr.bf16.mxu0 %v2742_v54  ;;  %2424 = vmatprep.mubr.bf16.mxu1 %v2742_v54 }
 0x13f   : > { %2213 = vmatmul.mubr.bf16.gmra.mrb[4].mxu0 %v2741_v58  ;;  %2425 = vmatmul.mubr.bf16.gmra.mrb[4].mxu1 %v2741_v58 }
 0x20a   : > { %v2204_v1 = vpop.f32.mrb[0].mxu0  ;;  %v2416_v2 = vpop.f32.mrb[0].mxu1 }
 0x20b   : > { %v2435_v5 = vadd.f32 %v2204_v1, %v363_v59  ;;  %v2437_v61 = vadd.f32 %v2416_v2, %v365_v60  ;;  %v2206_v62 = vpop.f32.mrb[1].mxu0  ;;  %v2418_v6 = vpop.f32.mrb[1].mxu1 }
 0x20c   : > { %v2436_v9 = vadd.f32 %v2206_v62, %v364_v63  ;;  %v2438_v10 = vadd.f32 %v2418_v6, %v366_v0  ;;  %v2208_v11 = vpop.f32.mrb[2].mxu0  ;;  %v2420_v12 = vpop.f32.mrb[2].mxu1 }
 0x20d   : > { %2451 = vst [vmem:[#allocation2] sm:$0xff] %v2435_v5  ;;  %2453 = vst [vmem:[#allocation2 + $0x10] sm:$0xff] %v2437_v61  ;;  %v2439_v13 = vadd.f32 %v2208_v11, %v367_v3  ;;  %v2441_v14 = vadd.f32 %v2420_v12, %v369_v4  ;;  %v2210_v15 = vpop.f32.mrb[3].mxu0  ;;  %v2422_v16 = vpop.f32.mrb[3].mxu1 }
 0x20e   : > { %2452 = vst [vmem:[#allocation2 + $0x8] sm:$0xff] %v2436_v9  ;;  %2454 = vst [vmem:[#allocation2 + $0x18] sm:$0xff] %v2438_v10  ;;  %v2440_v17 = vadd.f32 %v2210_v15, %v368_v7  ;;  %v2442_v18 = vadd.f32 %v2422_v16, %v370_v8 }
 0x20f   : > { %2455 = vst [vmem:[#allocation2 + $0x20] sm:$0xff] %v2439_v13  ;;  %2457 = vst [vmem:[#allocation2 + $0x30] sm:$0xff] %v2441_v14 }
 0x210   : > { %2456 = vst [vmem:[#allocation2 + $0x28] sm:$0xff] %v2440_v17  ;;  %2458 = vst [vmem:[#allocation2 + $0x38] sm:$0xff] %v2442_v18 }
 0x212   : > { %v2214_v23 = vpop.f32.mrb[4].mxu0  ;;  %v2426_v24 = vpop.f32.mrb[4].mxu1  ;;  %2470 = sbr.rel (%p2999_p11) target bundleno = 553 (0x229), region = 63 }
 0x213   : > { %v2443_v27 = vadd.f32 %v2214_v23, %v371_v19  ;;  %v2445_v28 = vadd.f32 %v2426_v24, %v373_v20  ;;  %v2216_v29 = vpop.f32.mrb[5].mxu0  ;;  %v2428_v30 = vpop.f32.mrb[5].mxu1 }
 0x214   : > { %v2444_v33 = vadd.f32 %v2216_v29, %v372_v21  ;;  %v2446_v34 = vadd.f32 %v2428_v30, %v374_v22  ;;  %v2218_v35 = vpop.f32.mrb[6].mxu0  ;;  %v2430_v36 = vpop.f32.mrb[6].mxu1  ;;  %v2471_v43 = vld [vmem:[#allocation2] sm:$0xff] (!%p2999_p11)  ;;  %v2473_v45 = vld [vmem:[#allocation2 + $0x10] sm:$0xff] (!%p2999_p11) }
 0x215   : > { %2459 = vst [vmem:[#allocation2 + $0x40] sm:$0xff] %v2443_v27  ;;  %2461 = vst [vmem:[#allocation2 + $0x50] sm:$0xff] %v2445_v28  ;;  %v2447_v37 = vadd.f32 %v2218_v35, %v375_v25  ;;  %v2449_v38 = vadd.f32 %v2430_v36, %v377_v26  ;;  %v2220_v39 = vpop.f32.mrb[7].mxu0  ;;  %v2432_v40 = vpop.f32.mrb[7].mxu1  ;;  %v2472_v44 = vld [vmem:[#allocation2 + $0x8] sm:$0xff] (!%p2999_p11)  ;;  %vm2487_vm0 = vcmp.gt.f32.partialorder (!%p2999_p11), %v2471_v43, 0.0 }
 0x216   : > { %2460 = vst [vmem:[#allocation2 + $0x48] sm:$0xff] %v2444_v33  ;;  %2462 = vst [vmem:[#allocation2 + $0x58] sm:$0xff] %v2446_v34  ;;  %v2448_v41 = vadd.f32 %v2220_v39, %v376_v31  ;;  %v2450_v42 = vadd.f32 %v2432_v40, %v378_v32  ;;  %vm2488_vm1 = vcmp.gt.f32.partialorder (!%p2999_p11), %v2472_v44, 0.0  ;;  %v2503_v46 = vmul.f32 (!%p2999_p11), 0.3, %v2471_v43  ;;  %v2474_v48 = vld [vmem:[#allocation2 + $0x18] sm:$0xff] (!%p2999_p11) }
 0x217   : > { %2463 = vst [vmem:[#allocation2 + $0x60] sm:$0xff] %v2447_v37  ;;  %2465 = vst [vmem:[#allocation2 + $0x70] sm:$0xff] %v2449_v38  ;;  %v2504_v47 = vmul.f32 (!%p2999_p11), 0.3, %v2472_v44  ;;  %vm2489_vm2 = vcmp.gt.f32.partialorder (!%p2999_p11), %v2473_v45, 0.0  ;;  %v2475_v50 = vld [vmem:[#allocation2 + $0x20] sm:$0xff] (!%p2999_p11) }
 0x218   : > { %2464 = vst [vmem:[#allocation2 + $0x68] sm:$0xff] %v2448_v41  ;;  %2466 = vst [vmem:[#allocation2 + $0x78] sm:$0xff] %v2450_v42  ;;  %v2505_v49 = vmul.f32 (!%p2999_p11), 0.3, %v2473_v45  ;;  %v2476_v51 = vld [vmem:[#allocation2 + $0x28] sm:$0xff] (!%p2999_p11)  ;;  %v2519_v53 = vsel (!%p2999_p11), %vm2487_vm0, %v2471_v43, %v2503_v46  ;;  %vm2490_vm3 = vcmp.gt.f32.partialorder (!%p2999_p11), %v2474_v48, 0.0 }
 0x219   : > { %v2520_v55 = vsel %vm2488_vm1, %v2472_v44, %v2504_v47  ;;  %v2506_v56 = vmul.f32 0.3, %v2474_v48  ;;  %v2477_v57 = vld [vmem:[#allocation2 + $0x30] sm:$0xff]  ;;  %v2478_v52 = vld [vmem:[#allocation2 + $0x38] sm:$0xff]  ;;  %vm2491_vm4 = vcmp.gt.f32.partialorder %v2475_v50, 0.0  ;;  %vm2492_vm5 = vcmp.gt.f32.partialorder %v2476_v51, 0.0 }
 0x21a   : > { %v3014_v54 = vpack.c.bf16 %v2520_v55, %v2519_v53  ;;  %v2521_v58 = vsel %vm2489_vm2, %v2473_v45, %v2505_v49  ;;  %v2507_v0 = vmul.f32 0.3, %v2475_v50  ;;  %v2508_v1 = vmul.f32 0.3, %v2476_v51 }
 0x21b   : > { %v2522_v63 = vsel %vm2490_vm3, %v2474_v48, %v2506_v56  ;;  %vm2493_vm6 = vcmp.gt.f32.partialorder %v2477_v57, 0.0  ;;  %vm2494_vm7 = vcmp.gt.f32.partialorder %v2478_v52, 0.0  ;;  %v2509_v4 = vmul.f32 0.3, %v2477_v57 }
 0x21c   : > { %v2479_v59 = vld [vmem:[#allocation2 + $0x40] sm:$0xff]  ;;  %v2481_v2 = vld [vmem:[#allocation2 + $0x50] sm:$0xff]  ;;  %2583 = vst [vmem:[%s3970_s3] sm:$0xff] %v3014_v54  ;;  %v3015_v3 = vpack.c.bf16 %v2522_v63, %v2521_v58  ;;  %v2510_v5 = vmul.f32 0.3, %v2478_v52  ;;  %v2523_v62 = vsel %vm2491_vm4, %v2475_v50, %v2507_v0  ;;  %v2524_v6 = vsel %vm2492_vm5, %v2476_v51, %v2508_v1 }
 0x21d   : > { %v2480_v60 = vld [vmem:[#allocation2 + $0x48] sm:$0xff]  ;;  %v2482_v61 = vld [vmem:[#allocation2 + $0x58] sm:$0xff]  ;;  %vm2495_vm8 = vcmp.gt.f32.partialorder %v2479_v59, 0.0  ;;  %v3016_v8 = vpack.c.bf16 %v2524_v6, %v2523_v62  ;;  %v2525_v9 = vsel %vm2493_vm6, %v2477_v57, %v2509_v4  ;;  %v2511_v11 = vmul.f32 0.3, %v2479_v59 }
 0x21e   : > { %vm2496_vm9 = vcmp.gt.f32.partialorder %v2480_v60, 0.0  ;;  %v2483_v7 = vld [vmem:[#allocation2 + $0x60] sm:$0xff]  ;;  %2584 = vst [vmem:[%s3970_s3 + $0x8] sm:$0xff] %v3015_v3  ;;  %v2526_v10 = vsel %vm2494_vm7, %v2478_v52, %v2510_v5  ;;  %v2512_v14 = vmul.f32 0.3, %v2480_v60  ;;  %vm2497_vm10 = vcmp.gt.f32.partialorder %v2481_v2, 0.0 }
 0x21f   : > { %v2484_v12 = vld [vmem:[#allocation2 + $0x68] sm:$0xff]  ;;  %v3017_v13 = vpack.c.bf16 %v2526_v10, %v2525_v9  ;;  %vm2498_vm11 = vcmp.gt.f32.partialorder %v2482_v61, 0.0  ;;  %v2485_v15 = vld [vmem:[#allocation2 + $0x70] sm:$0xff]  ;;  %2585 = vst [vmem:[%s3970_s3 + $0x10] sm:$0xff] %v3016_v8  ;;  %v2527_v16 = vsel %vm2495_vm8, %v2479_v59, %v2511_v11  ;;  %v2513_v17 = vmul.f32 0.3, %v2481_v2 }
 0x220   : > { %v2514_v18 = vmul.f32 0.3, %v2482_v61  ;;  %vm2499_vm12 = vcmp.gt.f32.partialorder %v2483_v7, 0.0  ;;  %v2486_v19 = vld [vmem:[#allocation2 + $0x78] sm:$0xff]  ;;  %v2528_v20 = vsel %vm2496_vm9, %v2480_v60, %v2512_v14  ;;  %vm2500_vm13 = vcmp.gt.f32.partialorder %v2484_v12, 0.0 }
 0x221   : > { %2586 = vst [vmem:[%s3970_s3 + $0x18] sm:$0xff] %v3017_v13  ;;  %v2515_v21 = vmul.f32 0.3, %v2483_v7  ;;  %v2516_v22 = vmul.f32 0.3, %v2484_v12  ;;  %v3018_v23 = vpack.c.bf16 %v2528_v20, %v2527_v16  ;;  %v2529_v24 = vsel %vm2497_vm10, %v2481_v2, %v2513_v17 }
 0x222   : > { %v2530_v25 = vsel %vm2498_vm11, %v2482_v61, %v2514_v18  ;;  %vm2501_vm14 = vcmp.gt.f32.partialorder %v2485_v15, 0.0  ;;  %vm2502_vm15 = vcmp.gt.f32.partialorder %v2486_v19, 0.0  ;;  %v2517_v30 = vmul.f32 0.3, %v2485_v15 }
 0x223   : > { %v3019_v26 = vpack.c.bf16 %v2530_v25, %v2529_v24  ;;  %v2531_v27 = vsel %vm2499_vm12, %v2483_v7, %v2515_v21  ;;  %v2532_v28 = vsel %vm2500_vm13, %v2484_v12, %v2516_v22  ;;  %2587 = vst [vmem:[%s3970_s3 + $0x20] sm:$0xff] %v3018_v23  ;;  %v2518_v31 = vmul.f32 0.3, %v2486_v19 }
 0x224   : > { %v3020_v29 = vpack.c.bf16 %v2532_v28, %v2531_v27  ;;  %v2533_v32 = vsel %vm2501_vm14, %v2485_v15, %v2517_v30 }
 0x225   : > { %2588 = vst [vmem:[%s3970_s3 + $0x28] sm:$0xff] %v3019_v26  ;;  %v2534_v33 = vsel %vm2502_vm15, %v2486_v19, %v2518_v31 }
 0x226   : > { %2589 = vst [vmem:[%s3970_s3 + $0x30] sm:$0xff] %v3020_v29  ;;  %v3021_v34 = vpack.c.bf16 %v2534_v33, %v2533_v32 }
 0x228   : > { %2590 = vst [vmem:[%s3970_s3 + $0x38] sm:$0xff] %v3021_v34 }
 0x229 PF: > { %s13_s16 = sadd.s32 1, %s3532_s16   ;;  %s3971_s12 = smov %s3520_s13 }
 0x22a   : > { %p10_p12 = scmp.ge.s32.totalorder %s13_s16, 6   ;;  %s3972_s13 = smov %s3589_s20 }
 0x22b   : > { %s3973_s14 = smov %s3528_s15  ;;  %s3974_s15 = smov %s3976_s17 }
 0x22c   :  { %12 = sbr.rel (!%p10_p12) target bundleno = 3 (0x3), region = 104 }

</bundles_post_ra>
